<compile_context>
chip_gen: v7x
topology: tpu7x:2x2x1
jax: 0.10.0
libtpu: 0.0.40
codegen_flags: <defaults>
</compile_context>

<pallas_src>
import functools

import jax
import jax.numpy as jnp
from jax.experimental import pallas as pl
from jax.experimental.pallas import tpu as pltpu


# ----------------------------- helpers ------------------------------------- #

def _round_up(x, m):
    return ((x + m - 1) // m) * m


def _bn_fold(gamma, beta, rmean, rvar, eps=1e-5):
    scale = gamma / jnp.sqrt(rvar + eps)
    shift = beta - rmean * scale
    return scale, shift


def _init_bn(key, dim):
    k1, k2, k3, k4 = jax.random.split(key, 4)
    gamma = 1.0 + 0.1 * jax.random.normal(k1, (dim,), jnp.float32)
    beta = 0.1 * jax.random.normal(k2, (dim,), jnp.float32)
    rmean = 0.1 * jax.random.normal(k3, (dim,), jnp.float32)
    rvar = 0.5 + jax.random.uniform(k4, (dim,), jnp.float32)
    return _bn_fold(gamma, beta, rmean, rvar)


# --------------------------- fused forward kernel --------------------------- #

def _gat_mme_kernel(x_ref, nan_ref, adj_ref,
                    w1_ref, sh1_ref, w2_ref, sh2_ref, wd_ref, bd_ref,
                    *rest, n_modalities, n_uniq, layer_meta):
    o_ref = rest[-1]
    lrefs = rest[:-1]
    N = x_ref.shape[1]

    # -------- encoders (bias+BN folded) + lower-median NaN imputation -------- #
    feat = None
    for mi in range(n_modalities):
        x = x_ref[mi]                                                 # (N, IN_P) bf16
        h1 = jnp.dot(x, w1_ref[mi], preferred_element_type=jnp.float32) + sh1_ref[mi]
        h2 = jnp.dot(h1.astype(jnp.bfloat16), w2_ref[mi],
                     preferred_element_type=jnp.float32) + sh2_ref[mi]
        dec = jnp.dot(h2.astype(jnp.bfloat16), wd_ref[mi],
                      preferred_element_type=jnp.float32) + bd_ref[mi]  # (N, DEC_P)

        # torch.median (lower median) of each column over valid rows: rank-select.
        nanm = nan_ref[mi]                                            # (N, 1), 1.0 = NaN row
        is_nan = nanm > 0.0
        vals = jnp.where(is_nan, jnp.inf, dec)                        # invalid rows -> +inf
        mcount = jnp.sum(1.0 - nanm, keepdims=True)                   # (1, 1) valid-row count
        target = jnp.floor((mcount - 1.0) * 0.5)                      # lower-median rank
        ridx = jax.lax.broadcasted_iota(jnp.int32, dec.shape, 0)
        rank = jnp.zeros_like(dec)
        for k in range(N):                                            # O(N^2) VPU compares
            vk = vals[k:k + 1, :]
            lower = (vk < vals) | ((vk == vals) & (ridx > k))         # stable tie-break
            rank = rank + jnp.where(lower, 1.0, 0.0)
        median = jnp.sum(jnp.where(rank == target,
                                   jnp.where(is_nan, 0.0, dec), 0.0),
                         axis=0, keepdims=True)                       # (1, DEC_P)
        imput = jnp.where(is_nan, median, dec)
        feat = imput if feat is None else feat + imput
    feat_bf = (feat * (1.0 / n_modalities)).astype(jnp.bfloat16)      # (N, DEC_P)

    # -------- additive edge masks from deduped int8 adj^T (hoisted once) ------ #
    addms = []
    for u in range(n_uniq):
        a = adj_ref[u].astype(jnp.float32)                            # (N_dst, N_src)
        addms.append(jnp.where(a > 0.0, 0.0, -1e30))

    # ------------------------------ GAT stack -------------------------------- #
    for l, (H, f_out, is_last, aidx) in enumerate(layer_meta):
        w_ref, ar_ref, al_ref, c0_ref, c1_ref = lrefs[5 * l: 5 * l + 5]
        addm = addms[aidx]

        # one fat bf16 matmul for all heads' feature transform
        z = jnp.dot(feat_bf, w_ref[...], preferred_element_type=jnp.float32)  # (N, H*f_out)
        z_bf = z.astype(jnp.bfloat16)

        # all heads' attention projections in two bf16 matmuls
        er_all = jnp.dot(z_bf, ar_ref[...],
                         preferred_element_type=jnp.float32)          # (N, H)   per-dst
        el_allT = jnp.einsum("hf,nf->hn", al_ref[...], z_bf,
                             preferred_element_type=jnp.float32)       # (H, N)   per-src

        outs = []
        for hd in range(H):
            z_h = z_bf[:, hd * f_out:(hd + 1) * f_out]
            e = er_all[:, hd:hd + 1] + el_allT[hd:hd + 1, :]          # (N_dst, N_src)
            e = jnp.where(e > 0, e, 0.2 * e) + addm                   # LeakyReLU + mask, f32
            mrow = jnp.max(e, axis=-1, keepdims=True)
            p = jnp.exp(e - mrow)
            inv = pl.reciprocal(jnp.sum(p, axis=-1, keepdims=True), approx=True)
            agg = jnp.dot(p.astype(jnp.bfloat16), z_h,
                          preferred_element_type=jnp.float32) * inv    # deferred normalize
            outs.append(agg)

        if is_last:
            acc = outs[0]
            for t in outs[1:]:
                acc = acc + t
            o_ref[...] = acc * c0_ref[...] + c1_ref[...]              # mean heads + mean bias
        else:
            cat = jnp.concatenate(outs, axis=-1)                      # flatten(1), head order
            feat_bf = (cat * c0_ref[...] + c1_ref[...]).astype(jnp.bfloat16)  # eval-BN (+bias)


def gat_mme_forward(adjs, h, params):
    """adjs: list (one dense (src,dst) adjacency per GAT layer); h: (N, sum(input_dims))."""
    enc = params["enc"]
    gat = params["gat"]
    M = enc["num_modalities"]
    input_dims = enc["input_dims"]
    IN_P = enc["in_pad"]
    N = h.shape[0]

    # per-modality slices: NaN-row mask + zero-fill, pad lanes, pre-cast to bf16
    xs, nan_masks = [], []
    prev = 0
    for dim in input_dims:
        x = h[:, prev:prev + dim]
        isn = jnp.isnan(x)
        nan_masks.append(isn.any(axis=1).astype(jnp.float32)[:, None])
        x = jnp.where(isn, 0.0, x)
        xs.append(jnp.pad(x, ((0, 0), (0, IN_P - dim))).astype(jnp.bfloat16))
        prev += dim
    x_stack = jnp.stack(xs)                                           # (M, N, IN_P) bf16
    nan_stack = jnp.stack(nan_masks)                                  # (M, N, 1)    f32

    # dedupe graphs shared across layers (common case: same graph every layer)
    uniq, layer_to_uniq = [], []
    for a in adjs:
        hit = next((ui for ui, ua in enumerate(uniq) if a is ua), None)
        if hit is None:
            uniq.append(a)
            hit = len(uniq) - 1
        layer_to_uniq.append(hit)
    # adj[src, dst] -> transposed (dst, src) int8; additive mask built in-kernel
    adjT = jnp.stack([(u.T > 0).astype(jnp.int8) for u in uniq])      # (U, N, N) int8

    args = [x_stack, nan_stack, adjT,
            enc["w1"], enc["sh1"], enc["w2"], enc["sh2"], enc["wd"], enc["bd"]]
    layer_meta = []
    L = len(gat)
    for l, gp in enumerate(gat):
        args += [gp["w"], gp["ar"], gp["al"], gp["c0"], gp["c1"]]
        layer_meta.append((gp["heads"], gp["fout"], l == L - 1, layer_to_uniq[l]))

    out_pad = gat[-1]["c1"].shape[-1]                                 # lane-dense (128) store
    kern = functools.partial(_gat_mme_kernel, n_modalities=M,
                             n_uniq=adjT.shape[0], layer_meta=tuple(layer_meta))
    in_specs = [pl.BlockSpec(a.shape, lambda i, nd=a.ndim: (0,) * nd) for a in args]
    out = pl.pallas_call(
        kern,
        out_shape=jax.ShapeDtypeStruct((N, out_pad), jnp.float32),
        grid=(1,),
        in_specs=in_specs,
        out_specs=pl.BlockSpec((N, out_pad), lambda i: (0, 0)),
        compiler_params=pltpu.CompilerParams(dimension_semantics=("arbitrary",)),
    )(*args)
    return out[:, :params["num_classes"]]


# ------------------------- deterministic param init ------------------------- #

def init_params(key, input_dims, latent_dims, decoder_dim, hidden_feats,
                num_classes, heads):
    M = len(input_dims)
    IN_P = _round_up(max(input_dims), 32)
    HID, HID_P = 500, 512
    LAT_P = _round_up(max(latent_dims), 16)
    DEC_P = _round_up(decoder_dim, 128)

    # encoder: fold Linear bias + eval-BN into (weight, shift) pairs, in f32, then bf16
    w1 = jnp.zeros((M, IN_P, HID_P), jnp.float32)
    sh1 = jnp.zeros((M, 1, HID_P), jnp.float32)
    w2 = jnp.zeros((M, HID_P, LAT_P), jnp.float32)
    sh2 = jnp.zeros((M, 1, LAT_P), jnp.float32)
    wd = jnp.zeros((M, LAT_P, DEC_P), jnp.float32)
    bd = jnp.zeros((M, 1, DEC_P), jnp.float32)
    for mi, (in_dim, lat) in enumerate(zip(input_dims, latent_dims)):
        key, *ks = jax.random.split(key, 9)
        s1, t1 = _init_bn(ks[6], HID)
        s2, t2 = _init_bn(ks[7], lat)
        w1r = 0.1 * jax.random.normal(ks[0], (in_dim, HID))
        b1r = 0.1 * jax.random.normal(ks[1], (HID,))
        w2r = 0.1 * jax.random.normal(ks[2], (HID, lat))
        b2r = 0.1 * jax.random.normal(ks[3], (lat,))
        wdr = 0.1 * jax.random.normal(ks[4], (lat, decoder_dim))
        bdr = 0.1 * jax.random.normal(ks[5], (decoder_dim,))
        w1 = w1.at[mi, :in_dim, :HID].set(w1r * s1[None, :])
        sh1 = sh1.at[mi, 0, :HID].set(b1r * s1 + t1)
        w2 = w2.at[mi, :HID, :lat].set(w2r * s2[None, :])
        sh2 = sh2.at[mi, 0, :lat].set(b2r * s2 + t2)
        wd = wd.at[mi, :lat, :decoder_dim].set(wdr)
        bd = bd.at[mi, 0, :decoder_dim].set(bdr)
    enc = dict(num_modalities=M, input_dims=tuple(input_dims), in_pad=IN_P,
               w1=w1.astype(jnp.bfloat16), sh1=sh1,
               w2=w2.astype(jnp.bfloat16), sh2=sh2,
               wd=wd.astype(jnp.bfloat16), bd=bd)

    # GAT layers: head-blocked fat weights, block-diagonal attention matrices,
    # BN/bias folded into per-layer (scale, shift) = (c0, c1)
    num_layers = len(hidden_feats) + 1
    gat = []
    f_in_real, f_in_pad = decoder_dim, DEC_P
    for l in range(num_layers):
        is_last = (l == num_layers - 1)
        H = heads[l]
        F = hidden_feats[l] if not is_last else num_classes
        F_pad = _round_up(F, 128) if is_last else F                  # lane-dense final store
        key, *ks = jax.random.split(key, 6)
        wr = 0.1 * jax.random.normal(ks[0], (H, f_in_real, F))
        alr = 0.1 * jax.random.normal(ks[1], (H, F))
        arr = 0.1 * jax.random.normal(ks[2], (H, F))
        br = 0.1 * jax.random.normal(ks[3], (H, F))

        w = jnp.zeros((f_in_pad, H * F_pad), jnp.float32)
        arm = jnp.zeros((H * F_pad, H), jnp.float32)                 # a_r, block-diagonal
        alt = jnp.zeros((H, H * F_pad), jnp.float32)                 # a_l, block rows
        for hd in range(H):
            w = w.at[:f_in_real, hd * F_pad:hd * F_pad + F].set(wr[hd])
            arm = arm.at[hd * F_pad:hd * F_pad + F, hd].set(arr[hd])
            alt = alt.at[hd, hd * F_pad:hd * F_pad + F].set(alr[hd])

        if not is_last:
            bn_s, bn_t = _init_bn(ks[4], H * F)
            c0 = bn_s.reshape(1, H * F)
            c1 = (br.reshape(H * F) * bn_s + bn_t).reshape(1, H * F)  # bias folded into shift
        else:
            c0 = jnp.full((1, F_pad), 1.0 / H, jnp.float32)           # mean over heads
            c1 = jnp.zeros((1, F_pad), jnp.float32).at[0, :F].set(jnp.mean(br, axis=0))

        gat.append(dict(heads=H, fout=F_pad,
                        w=w.astype(jnp.bfloat16),
                        ar=arm.astype(jnp.bfloat16),
                        al=alt.astype(jnp.bfloat16),
                        c0=c0, c1=c1))
        f_in_real, f_in_pad = H * F, H * F
    return dict(enc=enc, gat=gat, num_classes=num_classes)


# ----------------------------------- main ----------------------------------- #

if __name__ == "__main__":
    key = jax.random.PRNGKey(0)

    # small, module-consistent config
    N = 16
    input_dims = [12, 20]
    latent_dims = [8, 10]
    decoder_dim = 32
    hidden_feats = [16, 16]        # -> num_layers = 3
    num_classes = 4
    heads = [3, 3, 3]

    key, kp, kh, ka = jax.random.split(key, 4)
    params = init_params(kp, input_dims, latent_dims, decoder_dim,
                         hidden_feats, num_classes, heads)

    # node feature matrix with one NaN row per modality slice
    h = jax.random.normal(kh, (N, sum(input_dims)), jnp.float32)
    h = h.at[3, 0:input_dims[0]].set(jnp.nan)
    h = h.at[7, input_dims[0]:].set(jnp.nan)

    # dense adjacency (src, dst) with self-loops; same graph feeds every GAT layer,
    # so the wrapper dedupes the three layer masks to a single (N, N) int8 mask.
    rand = jax.random.uniform(ka, (N, N))
    adj = (rand < 0.3).astype(jnp.float32)
    adj = jnp.maximum(adj, jnp.eye(N, dtype=jnp.float32))    # in-degree >= 1
    fwd = jax.jit(lambda a, x: gat_mme_forward([a, a, a], x, params))

    out = jax.block_until_ready(fwd(adj, h))

    assert out.shape == (N, num_classes)
    assert bool(jnp.isfinite(out).all())
    print("KERNEL_OK")
</pallas_src>

<mosaic_0001>
module attributes {stable_mosaic.version = 11 : i64} {
  func.func @_gat_mme_kernel(%arg0: i32, %arg1: memref<2x16x32xbf16, #tpu.memory_space<vmem>>, %arg2: memref<2x16x1xf32, #tpu.memory_space<vmem>>, %arg3: memref<1x16x16xi8, #tpu.memory_space<vmem>>, %arg4: memref<2x32x512xbf16, #tpu.memory_space<vmem>>, %arg5: memref<2x1x512xf32, #tpu.memory_space<vmem>>, %arg6: memref<2x512x16xbf16, #tpu.memory_space<vmem>>, %arg7: memref<2x1x16xf32, #tpu.memory_space<vmem>>, %arg8: memref<2x16x128xbf16, #tpu.memory_space<vmem>>, %arg9: memref<2x1x128xf32, #tpu.memory_space<vmem>>, %arg10: memref<128x48xbf16, #tpu.memory_space<vmem>>, %arg11: memref<48x3xbf16, #tpu.memory_space<vmem>>, %arg12: memref<3x48xbf16, #tpu.memory_space<vmem>>, %arg13: memref<1x48xf32, #tpu.memory_space<vmem>>, %arg14: memref<1x48xf32, #tpu.memory_space<vmem>>, %arg15: memref<48x48xbf16, #tpu.memory_space<vmem>>, %arg16: memref<48x3xbf16, #tpu.memory_space<vmem>>, %arg17: memref<3x48xbf16, #tpu.memory_space<vmem>>, %arg18: memref<1x48xf32, #tpu.memory_space<vmem>>, %arg19: memref<1x48xf32, #tpu.memory_space<vmem>>, %arg20: memref<48x384xbf16, #tpu.memory_space<vmem>>, %arg21: memref<384x3xbf16, #tpu.memory_space<vmem>>, %arg22: memref<3x384xbf16, #tpu.memory_space<vmem>>, %arg23: memref<1x128xf32, #tpu.memory_space<vmem>>, %arg24: memref<1x128xf32, #tpu.memory_space<vmem>>, %arg25: memref<16x128xf32, #tpu.memory_space<vmem>>) attributes {dimension_semantics = [#tpu.dimension_semantics<arbitrary>], iteration_bounds = array<i64: 1>, scalar_prefetch = 0 : i64, scratch_operands = 0 : i64, tpu.core_type = #tpu.core_type<tc>, window_params = [{pipeline_mode = #tpu.pipeline_mode<synchronous>, transform_indices = @transform_0, window_bounds = array<i64: 2, 16, 32>}, {pipeline_mode = #tpu.pipeline_mode<synchronous>, transform_indices = @transform_1, window_bounds = array<i64: 2, 16, 1>}, {pipeline_mode = #tpu.pipeline_mode<synchronous>, transform_indices = @transform_2, window_bounds = array<i64: 1, 16, 16>}, {pipeline_mode = #tpu.pipeline_mode<synchronous>, transform_indices = @transform_3, window_bounds = array<i64: 2, 32, 512>}, {pipeline_mode = #tpu.pipeline_mode<synchronous>, transform_indices = @transform_4, window_bounds = array<i64: 2, 1, 512>}, {pipeline_mode = #tpu.pipeline_mode<synchronous>, transform_indices = @transform_5, window_bounds = array<i64: 2, 512, 16>}, {pipeline_mode = #tpu.pipeline_mode<synchronous>, transform_indices = @transform_6, window_bounds = array<i64: 2, 1, 16>}, {pipeline_mode = #tpu.pipeline_mode<synchronous>, transform_indices = @transform_7, window_bounds = array<i64: 2, 16, 128>}, {pipeline_mode = #tpu.pipeline_mode<synchronous>, transform_indices = @transform_8, window_bounds = array<i64: 2, 1, 128>}, {pipeline_mode = #tpu.pipeline_mode<synchronous>, transform_indices = @transform_9, window_bounds = array<i64: 128, 48>}, {pipeline_mode = #tpu.pipeline_mode<synchronous>, transform_indices = @transform_10, window_bounds = array<i64: 48, 3>}, {pipeline_mode = #tpu.pipeline_mode<synchronous>, transform_indices = @transform_11, window_bounds = array<i64: 3, 48>}, {pipeline_mode = #tpu.pipeline_mode<synchronous>, transform_indices = @transform_12, window_bounds = array<i64: 1, 48>}, {pipeline_mode = #tpu.pipeline_mode<synchronous>, transform_indices = @transform_13, window_bounds = array<i64: 1, 48>}, {pipeline_mode = #tpu.pipeline_mode<synchronous>, transform_indices = @transform_14, window_bounds = array<i64: 48, 48>}, {pipeline_mode = #tpu.pipeline_mode<synchronous>, transform_indices = @transform_15, window_bounds = array<i64: 48, 3>}, {pipeline_mode = #tpu.pipeline_mode<synchronous>, transform_indices = @transform_16, window_bounds = array<i64: 3, 48>}, {pipeline_mode = #tpu.pipeline_mode<synchronous>, transform_indices = @transform_17, window_bounds = array<i64: 1, 48>}, {pipeline_mode = #tpu.pipeline_mode<synchronous>, transform_indices = @transform_18, window_bounds = array<i64: 1, 48>}, {pipeline_mode = #tpu.pipeline_mode<synchronous>, transform_indices = @transform_19, window_bounds = array<i64: 48, 384>}, {pipeline_mode = #tpu.pipeline_mode<synchronous>, transform_indices = @transform_20, window_bounds = array<i64: 384, 3>}, {pipeline_mode = #tpu.pipeline_mode<synchronous>, transform_indices = @transform_21, window_bounds = array<i64: 3, 384>}, {pipeline_mode = #tpu.pipeline_mode<synchronous>, transform_indices = @transform_22, window_bounds = array<i64: 1, 128>}, {pipeline_mode = #tpu.pipeline_mode<synchronous>, transform_indices = @transform_23, window_bounds = array<i64: 1, 128>}, {pipeline_mode = #tpu.pipeline_mode<synchronous>, transform_indices = @transform_24, window_bounds = array<i64: 16, 128>}]} {
    %c0 = arith.constant 0 : index
    %c0_0 = arith.constant 0 : index
    %c0_1 = arith.constant 0 : index
    %0 = vector.load %arg1[%c0, %c0_0, %c0_1] : memref<2x16x32xbf16, #tpu.memory_space<vmem>>, vector<1x16x32xbf16>
    %1 = vector.shape_cast %0 : vector<1x16x32xbf16> to vector<16x32xbf16>
    %c0_2 = arith.constant 0 : index
    %c0_3 = arith.constant 0 : index
    %c0_4 = arith.constant 0 : index
    %2 = vector.load %arg4[%c0_2, %c0_3, %c0_4] : memref<2x32x512xbf16, #tpu.memory_space<vmem>>, vector<1x32x512xbf16>
    %3 = vector.shape_cast %2 : vector<1x32x512xbf16> to vector<32x512xbf16>
    %cst = arith.constant dense<0.000000e+00> : vector<16x512xf32>
    %4 = tpu.matmul %1, %3, %cst {dimension_numbers = #tpu.dot_dimension_numbers<[1], [0], [0], [1], [0, 0, 1, 1], [], []>} : vector<16x32xbf16>, vector<32x512xbf16>, vector<16x512xf32> -> vector<16x512xf32>
    %c0_5 = arith.constant 0 : index
    %c0_6 = arith.constant 0 : index
    %c0_7 = arith.constant 0 : index
    %5 = vector.load %arg5[%c0_5, %c0_6, %c0_7] : memref<2x1x512xf32, #tpu.memory_space<vmem>>, vector<1x1x512xf32>
    %6 = vector.shape_cast %5 : vector<1x1x512xf32> to vector<1x512xf32>
    %7 = vector.broadcast %6 : vector<1x512xf32> to vector<16x512xf32>
    %8 = arith.addf %4, %7 : vector<16x512xf32>
    %9 = arith.truncf %8 : vector<16x512xf32> to vector<16x512xbf16>
    %c0_8 = arith.constant 0 : index
    %c0_9 = arith.constant 0 : index
    %c0_10 = arith.constant 0 : index
    %10 = vector.load %arg6[%c0_8, %c0_9, %c0_10] : memref<2x512x16xbf16, #tpu.memory_space<vmem>>, vector<1x512x16xbf16>
    %11 = vector.shape_cast %10 : vector<1x512x16xbf16> to vector<512x16xbf16>
    %cst_11 = arith.constant dense<0.000000e+00> : vector<16x16xf32>
    %12 = tpu.matmul %9, %11, %cst_11 {dimension_numbers = #tpu.dot_dimension_numbers<[1], [0], [0], [1], [0, 0, 1, 1], [], []>} : vector<16x512xbf16>, vector<512x16xbf16>, vector<16x16xf32> -> vector<16x16xf32>
    %c0_12 = arith.constant 0 : index
    %c0_13 = arith.constant 0 : index
    %c0_14 = arith.constant 0 : index
    %13 = vector.load %arg7[%c0_12, %c0_13, %c0_14] : memref<2x1x16xf32, #tpu.memory_space<vmem>>, vector<1x1x16xf32>
    %14 = vector.shape_cast %13 : vector<1x1x16xf32> to vector<1x16xf32>
    %15 = vector.broadcast %14 : vector<1x16xf32> to vector<16x16xf32>
    %16 = arith.addf %12, %15 : vector<16x16xf32>
    %17 = arith.truncf %16 : vector<16x16xf32> to vector<16x16xbf16>
    %c0_15 = arith.constant 0 : index
    %c0_16 = arith.constant 0 : index
    %c0_17 = arith.constant 0 : index
    %18 = vector.load %arg8[%c0_15, %c0_16, %c0_17] : memref<2x16x128xbf16, #tpu.memory_space<vmem>>, vector<1x16x128xbf16>
    %19 = vector.shape_cast %18 : vector<1x16x128xbf16> to vector<16x128xbf16>
    %cst_18 = arith.constant dense<0.000000e+00> : vector<16x128xf32>
    %20 = tpu.matmul %17, %19, %cst_18 {dimension_numbers = #tpu.dot_dimension_numbers<[1], [0], [0], [1], [0, 0, 1, 1], [], []>} : vector<16x16xbf16>, vector<16x128xbf16>, vector<16x128xf32> -> vector<16x128xf32>
    %c0_19 = arith.constant 0 : index
    %c0_20 = arith.constant 0 : index
    %c0_21 = arith.constant 0 : index
    %21 = vector.load %arg9[%c0_19, %c0_20, %c0_21] : memref<2x1x128xf32, #tpu.memory_space<vmem>>, vector<1x1x128xf32>
    %22 = vector.shape_cast %21 : vector<1x1x128xf32> to vector<1x128xf32>
    %23 = vector.broadcast %22 : vector<1x128xf32> to vector<16x128xf32>
    %24 = arith.addf %20, %23 : vector<16x128xf32>
    %c0_22 = arith.constant 0 : index
    %c0_23 = arith.constant 0 : index
    %c0_24 = arith.constant 0 : index
    %25 = vector.load %arg2[%c0_22, %c0_23, %c0_24] : memref<2x16x1xf32, #tpu.memory_space<vmem>>, vector<1x16x1xf32>
    %26 = vector.shape_cast %25 : vector<1x16x1xf32> to vector<16x1xf32>
    %cst_25 = arith.constant 0.000000e+00 : f32
    %27 = vector.broadcast %cst_25 : f32 to vector<16x1xf32>
    %28 = arith.cmpf ogt, %26, %27 : vector<16x1xf32>
    %cst_26 = arith.constant 0x7F800000 : f32
    %29 = vector.shape_cast %28 : vector<16x1xi1> to vector<16x1xi1>
    %30 = vector.broadcast %29 : vector<16x1xi1> to vector<16x128xi1>
    %31 = vector.broadcast %cst_26 : f32 to vector<16x128xf32>
    %32 = arith.select %30, %31, %24 : vector<16x128xi1>, vector<16x128xf32>
    %cst_27 = arith.constant 1.000000e+00 : f32
    %33 = vector.broadcast %cst_27 : f32 to vector<16x1xf32>
    %34 = arith.subf %33, %26 : vector<16x1xf32>
    %35 = vector.shape_cast %34 : vector<16x1xf32> to vector<1x16x1xf32>
    %cst_28 = arith.constant dense<0.000000e+00> : vector<1xf32>
    %36 = vector.multi_reduction <add>, %35, %cst_28 [1, 2] : vector<1x16x1xf32> to vector<1xf32>
    %37 = vector.shape_cast %36 : vector<1xf32> to vector<1x1x1xf32>
    %38 = vector.extract %37[0, 0, 0] : f32 from vector<1x1x1xf32>
    %39 = vector.broadcast %38 : f32 to vector<1x1xf32>
    %cst_29 = arith.constant 1.000000e+00 : f32
    %40 = vector.broadcast %cst_29 : f32 to vector<1x1xf32>
    %41 = arith.subf %39, %40 : vector<1x1xf32>
    %cst_30 = arith.constant 5.000000e-01 : f32
    %42 = vector.broadcast %cst_30 : f32 to vector<1x1xf32>
    %43 = arith.mulf %41, %42 : vector<1x1xf32>
    %44 = math.floor %43 : vector<1x1xf32>
    %45 = tpu.iota {dimensions = array<i32: 0>} : vector<16x128xi32>
    %cst_31 = arith.constant 0.000000e+00 : f32
    %46 = vector.broadcast %cst_31 : f32 to vector<16x128xf32>
    %47 = vector.extract_strided_slice %32 {offsets = [0, 0], sizes = [1, 128], strides = [1, 1]} : vector<16x128xf32> to vector<1x128xf32>
    %48 = vector.broadcast %47 : vector<1x128xf32> to vector<16x128xf32>
    %49 = arith.cmpf olt, %48, %32 : vector<16x128xf32>
    %50 = vector.broadcast %47 : vector<1x128xf32> to vector<16x128xf32>
    %51 = arith.cmpf oeq, %50, %32 : vector<16x128xf32>
    %c0_i32 = arith.constant 0 : i32
    %52 = vector.broadcast %c0_i32 : i32 to vector<16x128xi32>
    %53 = arith.cmpi sgt, %45, %52 : vector<16x128xi32>
    %54 = arith.andi %51, %53 : vector<16x128xi1>
    %55 = arith.ori %49, %54 : vector<16x128xi1>
    %cst_32 = arith.constant 1.000000e+00 : f32
    %cst_33 = arith.constant 0.000000e+00 : f32
    %56 = vector.broadcast %cst_32 : f32 to vector<16x128xf32>
    %57 = vector.broadcast %cst_33 : f32 to vector<16x128xf32>
    %58 = arith.select %55, %56, %57 : vector<16x128xi1>, vector<16x128xf32>
    %59 = arith.addf %46, %58 : vector<16x128xf32>
    %60 = vector.extract_strided_slice %32 {offsets = [1, 0], sizes = [1, 128], strides = [1, 1]} : vector<16x128xf32> to vector<1x128xf32>
    %61 = vector.broadcast %60 : vector<1x128xf32> to vector<16x128xf32>
    %62 = arith.cmpf olt, %61, %32 : vector<16x128xf32>
    %63 = vector.broadcast %60 : vector<1x128xf32> to vector<16x128xf32>
    %64 = arith.cmpf oeq, %63, %32 : vector<16x128xf32>
    %c1_i32 = arith.constant 1 : i32
    %65 = vector.broadcast %c1_i32 : i32 to vector<16x128xi32>
    %66 = arith.cmpi sgt, %45, %65 : vector<16x128xi32>
    %67 = arith.andi %64, %66 : vector<16x128xi1>
    %68 = arith.ori %62, %67 : vector<16x128xi1>
    %cst_34 = arith.constant 1.000000e+00 : f32
    %cst_35 = arith.constant 0.000000e+00 : f32
    %69 = vector.broadcast %cst_34 : f32 to vector<16x128xf32>
    %70 = vector.broadcast %cst_35 : f32 to vector<16x128xf32>
    %71 = arith.select %68, %69, %70 : vector<16x128xi1>, vector<16x128xf32>
    %72 = arith.addf %59, %71 : vector<16x128xf32>
    %73 = vector.extract_strided_slice %32 {offsets = [2, 0], sizes = [1, 128], strides = [1, 1]} : vector<16x128xf32> to vector<1x128xf32>
    %74 = vector.broadcast %73 : vector<1x128xf32> to vector<16x128xf32>
    %75 = arith.cmpf olt, %74, %32 : vector<16x128xf32>
    %76 = vector.broadcast %73 : vector<1x128xf32> to vector<16x128xf32>
    %77 = arith.cmpf oeq, %76, %32 : vector<16x128xf32>
    %c2_i32 = arith.constant 2 : i32
    %78 = vector.broadcast %c2_i32 : i32 to vector<16x128xi32>
    %79 = arith.cmpi sgt, %45, %78 : vector<16x128xi32>
    %80 = arith.andi %77, %79 : vector<16x128xi1>
    %81 = arith.ori %75, %80 : vector<16x128xi1>
    %cst_36 = arith.constant 1.000000e+00 : f32
    %cst_37 = arith.constant 0.000000e+00 : f32
    %82 = vector.broadcast %cst_36 : f32 to vector<16x128xf32>
    %83 = vector.broadcast %cst_37 : f32 to vector<16x128xf32>
    %84 = arith.select %81, %82, %83 : vector<16x128xi1>, vector<16x128xf32>
    %85 = arith.addf %72, %84 : vector<16x128xf32>
    %86 = vector.extract_strided_slice %32 {offsets = [3, 0], sizes = [1, 128], strides = [1, 1]} : vector<16x128xf32> to vector<1x128xf32>
    %87 = vector.broadcast %86 : vector<1x128xf32> to vector<16x128xf32>
    %88 = arith.cmpf olt, %87, %32 : vector<16x128xf32>
    %89 = vector.broadcast %86 : vector<1x128xf32> to vector<16x128xf32>
    %90 = arith.cmpf oeq, %89, %32 : vector<16x128xf32>
    %c3_i32 = arith.constant 3 : i32
    %91 = vector.broadcast %c3_i32 : i32 to vector<16x128xi32>
    %92 = arith.cmpi sgt, %45, %91 : vector<16x128xi32>
    %93 = arith.andi %90, %92 : vector<16x128xi1>
    %94 = arith.ori %88, %93 : vector<16x128xi1>
    %cst_38 = arith.constant 1.000000e+00 : f32
    %cst_39 = arith.constant 0.000000e+00 : f32
    %95 = vector.broadcast %cst_38 : f32 to vector<16x128xf32>
    %96 = vector.broadcast %cst_39 : f32 to vector<16x128xf32>
    %97 = arith.select %94, %95, %96 : vector<16x128xi1>, vector<16x128xf32>
    %98 = arith.addf %85, %97 : vector<16x128xf32>
    %99 = vector.extract_strided_slice %32 {offsets = [4, 0], sizes = [1, 128], strides = [1, 1]} : vector<16x128xf32> to vector<1x128xf32>
    %100 = vector.broadcast %99 : vector<1x128xf32> to vector<16x128xf32>
    %101 = arith.cmpf olt, %100, %32 : vector<16x128xf32>
    %102 = vector.broadcast %99 : vector<1x128xf32> to vector<16x128xf32>
    %103 = arith.cmpf oeq, %102, %32 : vector<16x128xf32>
    %c4_i32 = arith.constant 4 : i32
    %104 = vector.broadcast %c4_i32 : i32 to vector<16x128xi32>
    %105 = arith.cmpi sgt, %45, %104 : vector<16x128xi32>
    %106 = arith.andi %103, %105 : vector<16x128xi1>
    %107 = arith.ori %101, %106 : vector<16x128xi1>
    %cst_40 = arith.constant 1.000000e+00 : f32
    %cst_41 = arith.constant 0.000000e+00 : f32
    %108 = vector.broadcast %cst_40 : f32 to vector<16x128xf32>
    %109 = vector.broadcast %cst_41 : f32 to vector<16x128xf32>
    %110 = arith.select %107, %108, %109 : vector<16x128xi1>, vector<16x128xf32>
    %111 = arith.addf %98, %110 : vector<16x128xf32>
    %112 = vector.extract_strided_slice %32 {offsets = [5, 0], sizes = [1, 128], strides = [1, 1]} : vector<16x128xf32> to vector<1x128xf32>
    %113 = vector.broadcast %112 : vector<1x128xf32> to vector<16x128xf32>
    %114 = arith.cmpf olt, %113, %32 : vector<16x128xf32>
    %115 = vector.broadcast %112 : vector<1x128xf32> to vector<16x128xf32>
    %116 = arith.cmpf oeq, %115, %32 : vector<16x128xf32>
    %c5_i32 = arith.constant 5 : i32
    %117 = vector.broadcast %c5_i32 : i32 to vector<16x128xi32>
    %118 = arith.cmpi sgt, %45, %117 : vector<16x128xi32>
    %119 = arith.andi %116, %118 : vector<16x128xi1>
    %120 = arith.ori %114, %119 : vector<16x128xi1>
    %cst_42 = arith.constant 1.000000e+00 : f32
    %cst_43 = arith.constant 0.000000e+00 : f32
    %121 = vector.broadcast %cst_42 : f32 to vector<16x128xf32>
    %122 = vector.broadcast %cst_43 : f32 to vector<16x128xf32>
    %123 = arith.select %120, %121, %122 : vector<16x128xi1>, vector<16x128xf32>
    %124 = arith.addf %111, %123 : vector<16x128xf32>
    %125 = vector.extract_strided_slice %32 {offsets = [6, 0], sizes = [1, 128], strides = [1, 1]} : vector<16x128xf32> to vector<1x128xf32>
    %126 = vector.broadcast %125 : vector<1x128xf32> to vector<16x128xf32>
    %127 = arith.cmpf olt, %126, %32 : vector<16x128xf32>
    %128 = vector.broadcast %125 : vector<1x128xf32> to vector<16x128xf32>
    %129 = arith.cmpf oeq, %128, %32 : vector<16x128xf32>
    %c6_i32 = arith.constant 6 : i32
    %130 = vector.broadcast %c6_i32 : i32 to vector<16x128xi32>
    %131 = arith.cmpi sgt, %45, %130 : vector<16x128xi32>
    %132 = arith.andi %129, %131 : vector<16x128xi1>
    %133 = arith.ori %127, %132 : vector<16x128xi1>
    %cst_44 = arith.constant 1.000000e+00 : f32
    %cst_45 = arith.constant 0.000000e+00 : f32
    %134 = vector.broadcast %cst_44 : f32 to vector<16x128xf32>
    %135 = vector.broadcast %cst_45 : f32 to vector<16x128xf32>
    %136 = arith.select %133, %134, %135 : vector<16x128xi1>, vector<16x128xf32>
    %137 = arith.addf %124, %136 : vector<16x128xf32>
    %138 = vector.extract_strided_slice %32 {offsets = [7, 0], sizes = [1, 128], strides = [1, 1]} : vector<16x128xf32> to vector<1x128xf32>
    %139 = vector.broadcast %138 : vector<1x128xf32> to vector<16x128xf32>
    %140 = arith.cmpf olt, %139, %32 : vector<16x128xf32>
    %141 = vector.broadcast %138 : vector<1x128xf32> to vector<16x128xf32>
    %142 = arith.cmpf oeq, %141, %32 : vector<16x128xf32>
    %c7_i32 = arith.constant 7 : i32
    %143 = vector.broadcast %c7_i32 : i32 to vector<16x128xi32>
    %144 = arith.cmpi sgt, %45, %143 : vector<16x128xi32>
    %145 = arith.andi %142, %144 : vector<16x128xi1>
    %146 = arith.ori %140, %145 : vector<16x128xi1>
    %cst_46 = arith.constant 1.000000e+00 : f32
    %cst_47 = arith.constant 0.000000e+00 : f32
    %147 = vector.broadcast %cst_46 : f32 to vector<16x128xf32>
    %148 = vector.broadcast %cst_47 : f32 to vector<16x128xf32>
    %149 = arith.select %146, %147, %148 : vector<16x128xi1>, vector<16x128xf32>
    %150 = arith.addf %137, %149 : vector<16x128xf32>
    %151 = vector.extract_strided_slice %32 {offsets = [8, 0], sizes = [1, 128], strides = [1, 1]} : vector<16x128xf32> to vector<1x128xf32>
    %152 = vector.broadcast %151 : vector<1x128xf32> to vector<16x128xf32>
    %153 = arith.cmpf olt, %152, %32 : vector<16x128xf32>
    %154 = vector.broadcast %151 : vector<1x128xf32> to vector<16x128xf32>
    %155 = arith.cmpf oeq, %154, %32 : vector<16x128xf32>
    %c8_i32 = arith.constant 8 : i32
    %156 = vector.broadcast %c8_i32 : i32 to vector<16x128xi32>
    %157 = arith.cmpi sgt, %45, %156 : vector<16x128xi32>
    %158 = arith.andi %155, %157 : vector<16x128xi1>
    %159 = arith.ori %153, %158 : vector<16x128xi1>
    %cst_48 = arith.constant 1.000000e+00 : f32
    %cst_49 = arith.constant 0.000000e+00 : f32
    %160 = vector.broadcast %cst_48 : f32 to vector<16x128xf32>
    %161 = vector.broadcast %cst_49 : f32 to vector<16x128xf32>
    %162 = arith.select %159, %160, %161 : vector<16x128xi1>, vector<16x128xf32>
    %163 = arith.addf %150, %162 : vector<16x128xf32>
    %164 = vector.extract_strided_slice %32 {offsets = [9, 0], sizes = [1, 128], strides = [1, 1]} : vector<16x128xf32> to vector<1x128xf32>
    %165 = vector.broadcast %164 : vector<1x128xf32> to vector<16x128xf32>
    %166 = arith.cmpf olt, %165, %32 : vector<16x128xf32>
    %167 = vector.broadcast %164 : vector<1x128xf32> to vector<16x128xf32>
    %168 = arith.cmpf oeq, %167, %32 : vector<16x128xf32>
    %c9_i32 = arith.constant 9 : i32
    %169 = vector.broadcast %c9_i32 : i32 to vector<16x128xi32>
    %170 = arith.cmpi sgt, %45, %169 : vector<16x128xi32>
    %171 = arith.andi %168, %170 : vector<16x128xi1>
    %172 = arith.ori %166, %171 : vector<16x128xi1>
    %cst_50 = arith.constant 1.000000e+00 : f32
    %cst_51 = arith.constant 0.000000e+00 : f32
    %173 = vector.broadcast %cst_50 : f32 to vector<16x128xf32>
    %174 = vector.broadcast %cst_51 : f32 to vector<16x128xf32>
    %175 = arith.select %172, %173, %174 : vector<16x128xi1>, vector<16x128xf32>
    %176 = arith.addf %163, %175 : vector<16x128xf32>
    %177 = vector.extract_strided_slice %32 {offsets = [10, 0], sizes = [1, 128], strides = [1, 1]} : vector<16x128xf32> to vector<1x128xf32>
    %178 = vector.broadcast %177 : vector<1x128xf32> to vector<16x128xf32>
    %179 = arith.cmpf olt, %178, %32 : vector<16x128xf32>
    %180 = vector.broadcast %177 : vector<1x128xf32> to vector<16x128xf32>
    %181 = arith.cmpf oeq, %180, %32 : vector<16x128xf32>
    %c10_i32 = arith.constant 10 : i32
    %182 = vector.broadcast %c10_i32 : i32 to vector<16x128xi32>
    %183 = arith.cmpi sgt, %45, %182 : vector<16x128xi32>
    %184 = arith.andi %181, %183 : vector<16x128xi1>
    %185 = arith.ori %179, %184 : vector<16x128xi1>
    %cst_52 = arith.constant 1.000000e+00 : f32
    %cst_53 = arith.constant 0.000000e+00 : f32
    %186 = vector.broadcast %cst_52 : f32 to vector<16x128xf32>
    %187 = vector.broadcast %cst_53 : f32 to vector<16x128xf32>
    %188 = arith.select %185, %186, %187 : vector<16x128xi1>, vector<16x128xf32>
    %189 = arith.addf %176, %188 : vector<16x128xf32>
    %190 = vector.extract_strided_slice %32 {offsets = [11, 0], sizes = [1, 128], strides = [1, 1]} : vector<16x128xf32> to vector<1x128xf32>
    %191 = vector.broadcast %190 : vector<1x128xf32> to vector<16x128xf32>
    %192 = arith.cmpf olt, %191, %32 : vector<16x128xf32>
    %193 = vector.broadcast %190 : vector<1x128xf32> to vector<16x128xf32>
    %194 = arith.cmpf oeq, %193, %32 : vector<16x128xf32>
    %c11_i32 = arith.constant 11 : i32
    %195 = vector.broadcast %c11_i32 : i32 to vector<16x128xi32>
    %196 = arith.cmpi sgt, %45, %195 : vector<16x128xi32>
    %197 = arith.andi %194, %196 : vector<16x128xi1>
    %198 = arith.ori %192, %197 : vector<16x128xi1>
    %cst_54 = arith.constant 1.000000e+00 : f32
    %cst_55 = arith.constant 0.000000e+00 : f32
    %199 = vector.broadcast %cst_54 : f32 to vector<16x128xf32>
    %200 = vector.broadcast %cst_55 : f32 to vector<16x128xf32>
    %201 = arith.select %198, %199, %200 : vector<16x128xi1>, vector<16x128xf32>
    %202 = arith.addf %189, %201 : vector<16x128xf32>
    %203 = vector.extract_strided_slice %32 {offsets = [12, 0], sizes = [1, 128], strides = [1, 1]} : vector<16x128xf32> to vector<1x128xf32>
    %204 = vector.broadcast %203 : vector<1x128xf32> to vector<16x128xf32>
    %205 = arith.cmpf olt, %204, %32 : vector<16x128xf32>
    %206 = vector.broadcast %203 : vector<1x128xf32> to vector<16x128xf32>
    %207 = arith.cmpf oeq, %206, %32 : vector<16x128xf32>
    %c12_i32 = arith.constant 12 : i32
    %208 = vector.broadcast %c12_i32 : i32 to vector<16x128xi32>
    %209 = arith.cmpi sgt, %45, %208 : vector<16x128xi32>
    %210 = arith.andi %207, %209 : vector<16x128xi1>
    %211 = arith.ori %205, %210 : vector<16x128xi1>
    %cst_56 = arith.constant 1.000000e+00 : f32
    %cst_57 = arith.constant 0.000000e+00 : f32
    %212 = vector.broadcast %cst_56 : f32 to vector<16x128xf32>
    %213 = vector.broadcast %cst_57 : f32 to vector<16x128xf32>
    %214 = arith.select %211, %212, %213 : vector<16x128xi1>, vector<16x128xf32>
    %215 = arith.addf %202, %214 : vector<16x128xf32>
    %216 = vector.extract_strided_slice %32 {offsets = [13, 0], sizes = [1, 128], strides = [1, 1]} : vector<16x128xf32> to vector<1x128xf32>
    %217 = vector.broadcast %216 : vector<1x128xf32> to vector<16x128xf32>
    %218 = arith.cmpf olt, %217, %32 : vector<16x128xf32>
    %219 = vector.broadcast %216 : vector<1x128xf32> to vector<16x128xf32>
    %220 = arith.cmpf oeq, %219, %32 : vector<16x128xf32>
    %c13_i32 = arith.constant 13 : i32
    %221 = vector.broadcast %c13_i32 : i32 to vector<16x128xi32>
    %222 = arith.cmpi sgt, %45, %221 : vector<16x128xi32>
    %223 = arith.andi %220, %222 : vector<16x128xi1>
    %224 = arith.ori %218, %223 : vector<16x128xi1>
    %cst_58 = arith.constant 1.000000e+00 : f32
    %cst_59 = arith.constant 0.000000e+00 : f32
    %225 = vector.broadcast %cst_58 : f32 to vector<16x128xf32>
    %226 = vector.broadcast %cst_59 : f32 to vector<16x128xf32>
    %227 = arith.select %224, %225, %226 : vector<16x128xi1>, vector<16x128xf32>
    %228 = arith.addf %215, %227 : vector<16x128xf32>
    %229 = vector.extract_strided_slice %32 {offsets = [14, 0], sizes = [1, 128], strides = [1, 1]} : vector<16x128xf32> to vector<1x128xf32>
    %230 = vector.broadcast %229 : vector<1x128xf32> to vector<16x128xf32>
    %231 = arith.cmpf olt, %230, %32 : vector<16x128xf32>
    %232 = vector.broadcast %229 : vector<1x128xf32> to vector<16x128xf32>
    %233 = arith.cmpf oeq, %232, %32 : vector<16x128xf32>
    %c14_i32 = arith.constant 14 : i32
    %234 = vector.broadcast %c14_i32 : i32 to vector<16x128xi32>
    %235 = arith.cmpi sgt, %45, %234 : vector<16x128xi32>
    %236 = arith.andi %233, %235 : vector<16x128xi1>
    %237 = arith.ori %231, %236 : vector<16x128xi1>
    %cst_60 = arith.constant 1.000000e+00 : f32
    %cst_61 = arith.constant 0.000000e+00 : f32
    %238 = vector.broadcast %cst_60 : f32 to vector<16x128xf32>
    %239 = vector.broadcast %cst_61 : f32 to vector<16x128xf32>
    %240 = arith.select %237, %238, %239 : vector<16x128xi1>, vector<16x128xf32>
    %241 = arith.addf %228, %240 : vector<16x128xf32>
    %242 = vector.extract_strided_slice %32 {offsets = [15, 0], sizes = [1, 128], strides = [1, 1]} : vector<16x128xf32> to vector<1x128xf32>
    %243 = vector.broadcast %242 : vector<1x128xf32> to vector<16x128xf32>
    %244 = arith.cmpf olt, %243, %32 : vector<16x128xf32>
    %245 = vector.broadcast %242 : vector<1x128xf32> to vector<16x128xf32>
    %246 = arith.cmpf oeq, %245, %32 : vector<16x128xf32>
    %c15_i32 = arith.constant 15 : i32
    %247 = vector.broadcast %c15_i32 : i32 to vector<16x128xi32>
    %248 = arith.cmpi sgt, %45, %247 : vector<16x128xi32>
    %249 = arith.andi %246, %248 : vector<16x128xi1>
    %250 = arith.ori %244, %249 : vector<16x128xi1>
    %cst_62 = arith.constant 1.000000e+00 : f32
    %cst_63 = arith.constant 0.000000e+00 : f32
    %251 = vector.broadcast %cst_62 : f32 to vector<16x128xf32>
    %252 = vector.broadcast %cst_63 : f32 to vector<16x128xf32>
    %253 = arith.select %250, %251, %252 : vector<16x128xi1>, vector<16x128xf32>
    %254 = arith.addf %241, %253 : vector<16x128xf32>
    %255 = vector.broadcast %44 : vector<1x1xf32> to vector<16x128xf32>
    %256 = arith.cmpf oeq, %254, %255 : vector<16x128xf32>
    %cst_64 = arith.constant 0.000000e+00 : f32
    %257 = vector.shape_cast %28 : vector<16x1xi1> to vector<16x1xi1>
    %258 = vector.broadcast %257 : vector<16x1xi1> to vector<16x128xi1>
    %259 = vector.broadcast %cst_64 : f32 to vector<16x128xf32>
    %260 = arith.select %258, %259, %24 : vector<16x128xi1>, vector<16x128xf32>
    %cst_65 = arith.constant 0.000000e+00 : f32
    %261 = vector.broadcast %cst_65 : f32 to vector<16x128xf32>
    %262 = arith.select %256, %260, %261 : vector<16x128xi1>, vector<16x128xf32>
    %cst_66 = arith.constant dense<0.000000e+00> : vector<128xf32>
    %263 = vector.multi_reduction <add>, %262, %cst_66 [0] : vector<16x128xf32> to vector<128xf32>
    %264 = vector.shape_cast %263 : vector<128xf32> to vector<1x128xf32>
    %265 = vector.shape_cast %28 : vector<16x1xi1> to vector<16x1xi1>
    %266 = vector.broadcast %265 : vector<16x1xi1> to vector<16x128xi1>
    %267 = vector.shape_cast %264 : vector<1x128xf32> to vector<1x128xf32>
    %268 = vector.broadcast %267 : vector<1x128xf32> to vector<16x128xf32>
    %269 = arith.select %266, %268, %24 : vector<16x128xi1>, vector<16x128xf32>
    %c1 = arith.constant 1 : index
    %c0_67 = arith.constant 0 : index
    %c0_68 = arith.constant 0 : index
    %270 = vector.load %arg1[%c1, %c0_67, %c0_68] : memref<2x16x32xbf16, #tpu.memory_space<vmem>>, vector<1x16x32xbf16>
    %271 = vector.shape_cast %270 : vector<1x16x32xbf16> to vector<16x32xbf16>
    %c1_69 = arith.constant 1 : index
    %c0_70 = arith.constant 0 : index
    %c0_71 = arith.constant 0 : index
    %272 = vector.load %arg4[%c1_69, %c0_70, %c0_71] : memref<2x32x512xbf16, #tpu.memory_space<vmem>>, vector<1x32x512xbf16>
    %273 = vector.shape_cast %272 : vector<1x32x512xbf16> to vector<32x512xbf16>
    %cst_72 = arith.constant dense<0.000000e+00> : vector<16x512xf32>
    %274 = tpu.matmul %271, %273, %cst_72 {dimension_numbers = #tpu.dot_dimension_numbers<[1], [0], [0], [1], [0, 0, 1, 1], [], []>} : vector<16x32xbf16>, vector<32x512xbf16>, vector<16x512xf32> -> vector<16x512xf32>
    %c1_73 = arith.constant 1 : index
    %c0_74 = arith.constant 0 : index
    %c0_75 = arith.constant 0 : index
    %275 = vector.load %arg5[%c1_73, %c0_74, %c0_75] : memref<2x1x512xf32, #tpu.memory_space<vmem>>, vector<1x1x512xf32>
    %276 = vector.shape_cast %275 : vector<1x1x512xf32> to vector<1x512xf32>
    %277 = vector.broadcast %276 : vector<1x512xf32> to vector<16x512xf32>
    %278 = arith.addf %274, %277 : vector<16x512xf32>
    %279 = arith.truncf %278 : vector<16x512xf32> to vector<16x512xbf16>
    %c1_76 = arith.constant 1 : index
    %c0_77 = arith.constant 0 : index
    %c0_78 = arith.constant 0 : index
    %280 = vector.load %arg6[%c1_76, %c0_77, %c0_78] : memref<2x512x16xbf16, #tpu.memory_space<vmem>>, vector<1x512x16xbf16>
    %281 = vector.shape_cast %280 : vector<1x512x16xbf16> to vector<512x16xbf16>
    %cst_79 = arith.constant dense<0.000000e+00> : vector<16x16xf32>
    %282 = tpu.matmul %279, %281, %cst_79 {dimension_numbers = #tpu.dot_dimension_numbers<[1], [0], [0], [1], [0, 0, 1, 1], [], []>} : vector<16x512xbf16>, vector<512x16xbf16>, vector<16x16xf32> -> vector<16x16xf32>
    %c1_80 = arith.constant 1 : index
    %c0_81 = arith.constant 0 : index
    %c0_82 = arith.constant 0 : index
    %283 = vector.load %arg7[%c1_80, %c0_81, %c0_82] : memref<2x1x16xf32, #tpu.memory_space<vmem>>, vector<1x1x16xf32>
    %284 = vector.shape_cast %283 : vector<1x1x16xf32> to vector<1x16xf32>
    %285 = vector.broadcast %284 : vector<1x16xf32> to vector<16x16xf32>
    %286 = arith.addf %282, %285 : vector<16x16xf32>
    %287 = arith.truncf %286 : vector<16x16xf32> to vector<16x16xbf16>
    %c1_83 = arith.constant 1 : index
    %c0_84 = arith.constant 0 : index
    %c0_85 = arith.constant 0 : index
    %288 = vector.load %arg8[%c1_83, %c0_84, %c0_85] : memref<2x16x128xbf16, #tpu.memory_space<vmem>>, vector<1x16x128xbf16>
    %289 = vector.shape_cast %288 : vector<1x16x128xbf16> to vector<16x128xbf16>
    %cst_86 = arith.constant dense<0.000000e+00> : vector<16x128xf32>
    %290 = tpu.matmul %287, %289, %cst_86 {dimension_numbers = #tpu.dot_dimension_numbers<[1], [0], [0], [1], [0, 0, 1, 1], [], []>} : vector<16x16xbf16>, vector<16x128xbf16>, vector<16x128xf32> -> vector<16x128xf32>
    %c1_87 = arith.constant 1 : index
    %c0_88 = arith.constant 0 : index
    %c0_89 = arith.constant 0 : index
    %291 = vector.load %arg9[%c1_87, %c0_88, %c0_89] : memref<2x1x128xf32, #tpu.memory_space<vmem>>, vector<1x1x128xf32>
    %292 = vector.shape_cast %291 : vector<1x1x128xf32> to vector<1x128xf32>
    %293 = vector.broadcast %292 : vector<1x128xf32> to vector<16x128xf32>
    %294 = arith.addf %290, %293 : vector<16x128xf32>
    %c1_90 = arith.constant 1 : index
    %c0_91 = arith.constant 0 : index
    %c0_92 = arith.constant 0 : index
    %295 = vector.load %arg2[%c1_90, %c0_91, %c0_92] : memref<2x16x1xf32, #tpu.memory_space<vmem>>, vector<1x16x1xf32>
    %296 = vector.shape_cast %295 : vector<1x16x1xf32> to vector<16x1xf32>
    %cst_93 = arith.constant 0.000000e+00 : f32
    %297 = vector.broadcast %cst_93 : f32 to vector<16x1xf32>
    %298 = arith.cmpf ogt, %296, %297 : vector<16x1xf32>
    %cst_94 = arith.constant 0x7F800000 : f32
    %299 = vector.shape_cast %298 : vector<16x1xi1> to vector<16x1xi1>
    %300 = vector.broadcast %299 : vector<16x1xi1> to vector<16x128xi1>
    %301 = vector.broadcast %cst_94 : f32 to vector<16x128xf32>
    %302 = arith.select %300, %301, %294 : vector<16x128xi1>, vector<16x128xf32>
    %cst_95 = arith.constant 1.000000e+00 : f32
    %303 = vector.broadcast %cst_95 : f32 to vector<16x1xf32>
    %304 = arith.subf %303, %296 : vector<16x1xf32>
    %305 = vector.shape_cast %304 : vector<16x1xf32> to vector<1x16x1xf32>
    %cst_96 = arith.constant dense<0.000000e+00> : vector<1xf32>
    %306 = vector.multi_reduction <add>, %305, %cst_96 [1, 2] : vector<1x16x1xf32> to vector<1xf32>
    %307 = vector.shape_cast %306 : vector<1xf32> to vector<1x1x1xf32>
    %308 = vector.extract %307[0, 0, 0] : f32 from vector<1x1x1xf32>
    %309 = vector.broadcast %308 : f32 to vector<1x1xf32>
    %cst_97 = arith.constant 1.000000e+00 : f32
    %310 = vector.broadcast %cst_97 : f32 to vector<1x1xf32>
    %311 = arith.subf %309, %310 : vector<1x1xf32>
    %cst_98 = arith.constant 5.000000e-01 : f32
    %312 = vector.broadcast %cst_98 : f32 to vector<1x1xf32>
    %313 = arith.mulf %311, %312 : vector<1x1xf32>
    %314 = math.floor %313 : vector<1x1xf32>
    %315 = tpu.iota {dimensions = array<i32: 0>} : vector<16x128xi32>
    %cst_99 = arith.constant 0.000000e+00 : f32
    %316 = vector.broadcast %cst_99 : f32 to vector<16x128xf32>
    %317 = vector.extract_strided_slice %302 {offsets = [0, 0], sizes = [1, 128], strides = [1, 1]} : vector<16x128xf32> to vector<1x128xf32>
    %318 = vector.broadcast %317 : vector<1x128xf32> to vector<16x128xf32>
    %319 = arith.cmpf olt, %318, %302 : vector<16x128xf32>
    %320 = vector.broadcast %317 : vector<1x128xf32> to vector<16x128xf32>
    %321 = arith.cmpf oeq, %320, %302 : vector<16x128xf32>
    %c0_i32_100 = arith.constant 0 : i32
    %322 = vector.broadcast %c0_i32_100 : i32 to vector<16x128xi32>
    %323 = arith.cmpi sgt, %315, %322 : vector<16x128xi32>
    %324 = arith.andi %321, %323 : vector<16x128xi1>
    %325 = arith.ori %319, %324 : vector<16x128xi1>
    %cst_101 = arith.constant 1.000000e+00 : f32
    %cst_102 = arith.constant 0.000000e+00 : f32
    %326 = vector.broadcast %cst_101 : f32 to vector<16x128xf32>
    %327 = vector.broadcast %cst_102 : f32 to vector<16x128xf32>
    %328 = arith.select %325, %326, %327 : vector<16x128xi1>, vector<16x128xf32>
    %329 = arith.addf %316, %328 : vector<16x128xf32>
    %330 = vector.extract_strided_slice %302 {offsets = [1, 0], sizes = [1, 128], strides = [1, 1]} : vector<16x128xf32> to vector<1x128xf32>
    %331 = vector.broadcast %330 : vector<1x128xf32> to vector<16x128xf32>
    %332 = arith.cmpf olt, %331, %302 : vector<16x128xf32>
    %333 = vector.broadcast %330 : vector<1x128xf32> to vector<16x128xf32>
    %334 = arith.cmpf oeq, %333, %302 : vector<16x128xf32>
    %c1_i32_103 = arith.constant 1 : i32
    %335 = vector.broadcast %c1_i32_103 : i32 to vector<16x128xi32>
    %336 = arith.cmpi sgt, %315, %335 : vector<16x128xi32>
    %337 = arith.andi %334, %336 : vector<16x128xi1>
    %338 = arith.ori %332, %337 : vector<16x128xi1>
    %cst_104 = arith.constant 1.000000e+00 : f32
    %cst_105 = arith.constant 0.000000e+00 : f32
    %339 = vector.broadcast %cst_104 : f32 to vector<16x128xf32>
    %340 = vector.broadcast %cst_105 : f32 to vector<16x128xf32>
    %341 = arith.select %338, %339, %340 : vector<16x128xi1>, vector<16x128xf32>
    %342 = arith.addf %329, %341 : vector<16x128xf32>
    %343 = vector.extract_strided_slice %302 {offsets = [2, 0], sizes = [1, 128], strides = [1, 1]} : vector<16x128xf32> to vector<1x128xf32>
    %344 = vector.broadcast %343 : vector<1x128xf32> to vector<16x128xf32>
    %345 = arith.cmpf olt, %344, %302 : vector<16x128xf32>
    %346 = vector.broadcast %343 : vector<1x128xf32> to vector<16x128xf32>
    %347 = arith.cmpf oeq, %346, %302 : vector<16x128xf32>
    %c2_i32_106 = arith.constant 2 : i32
    %348 = vector.broadcast %c2_i32_106 : i32 to vector<16x128xi32>
    %349 = arith.cmpi sgt, %315, %348 : vector<16x128xi32>
    %350 = arith.andi %347, %349 : vector<16x128xi1>
    %351 = arith.ori %345, %350 : vector<16x128xi1>
    %cst_107 = arith.constant 1.000000e+00 : f32
    %cst_108 = arith.constant 0.000000e+00 : f32
    %352 = vector.broadcast %cst_107 : f32 to vector<16x128xf32>
    %353 = vector.broadcast %cst_108 : f32 to vector<16x128xf32>
    %354 = arith.select %351, %352, %353 : vector<16x128xi1>, vector<16x128xf32>
    %355 = arith.addf %342, %354 : vector<16x128xf32>
    %356 = vector.extract_strided_slice %302 {offsets = [3, 0], sizes = [1, 128], strides = [1, 1]} : vector<16x128xf32> to vector<1x128xf32>
    %357 = vector.broadcast %356 : vector<1x128xf32> to vector<16x128xf32>
    %358 = arith.cmpf olt, %357, %302 : vector<16x128xf32>
    %359 = vector.broadcast %356 : vector<1x128xf32> to vector<16x128xf32>
    %360 = arith.cmpf oeq, %359, %302 : vector<16x128xf32>
    %c3_i32_109 = arith.constant 3 : i32
    %361 = vector.broadcast %c3_i32_109 : i32 to vector<16x128xi32>
    %362 = arith.cmpi sgt, %315, %361 : vector<16x128xi32>
    %363 = arith.andi %360, %362 : vector<16x128xi1>
    %364 = arith.ori %358, %363 : vector<16x128xi1>
    %cst_110 = arith.constant 1.000000e+00 : f32
    %cst_111 = arith.constant 0.000000e+00 : f32
    %365 = vector.broadcast %cst_110 : f32 to vector<16x128xf32>
    %366 = vector.broadcast %cst_111 : f32 to vector<16x128xf32>
    %367 = arith.select %364, %365, %366 : vector<16x128xi1>, vector<16x128xf32>
    %368 = arith.addf %355, %367 : vector<16x128xf32>
    %369 = vector.extract_strided_slice %302 {offsets = [4, 0], sizes = [1, 128], strides = [1, 1]} : vector<16x128xf32> to vector<1x128xf32>
    %370 = vector.broadcast %369 : vector<1x128xf32> to vector<16x128xf32>
    %371 = arith.cmpf olt, %370, %302 : vector<16x128xf32>
    %372 = vector.broadcast %369 : vector<1x128xf32> to vector<16x128xf32>
    %373 = arith.cmpf oeq, %372, %302 : vector<16x128xf32>
    %c4_i32_112 = arith.constant 4 : i32
    %374 = vector.broadcast %c4_i32_112 : i32 to vector<16x128xi32>
    %375 = arith.cmpi sgt, %315, %374 : vector<16x128xi32>
    %376 = arith.andi %373, %375 : vector<16x128xi1>
    %377 = arith.ori %371, %376 : vector<16x128xi1>
    %cst_113 = arith.constant 1.000000e+00 : f32
    %cst_114 = arith.constant 0.000000e+00 : f32
    %378 = vector.broadcast %cst_113 : f32 to vector<16x128xf32>
    %379 = vector.broadcast %cst_114 : f32 to vector<16x128xf32>
    %380 = arith.select %377, %378, %379 : vector<16x128xi1>, vector<16x128xf32>
    %381 = arith.addf %368, %380 : vector<16x128xf32>
    %382 = vector.extract_strided_slice %302 {offsets = [5, 0], sizes = [1, 128], strides = [1, 1]} : vector<16x128xf32> to vector<1x128xf32>
    %383 = vector.broadcast %382 : vector<1x128xf32> to vector<16x128xf32>
    %384 = arith.cmpf olt, %383, %302 : vector<16x128xf32>
    %385 = vector.broadcast %382 : vector<1x128xf32> to vector<16x128xf32>
    %386 = arith.cmpf oeq, %385, %302 : vector<16x128xf32>
    %c5_i32_115 = arith.constant 5 : i32
    %387 = vector.broadcast %c5_i32_115 : i32 to vector<16x128xi32>
    %388 = arith.cmpi sgt, %315, %387 : vector<16x128xi32>
    %389 = arith.andi %386, %388 : vector<16x128xi1>
    %390 = arith.ori %384, %389 : vector<16x128xi1>
    %cst_116 = arith.constant 1.000000e+00 : f32
    %cst_117 = arith.constant 0.000000e+00 : f32
    %391 = vector.broadcast %cst_116 : f32 to vector<16x128xf32>
    %392 = vector.broadcast %cst_117 : f32 to vector<16x128xf32>
    %393 = arith.select %390, %391, %392 : vector<16x128xi1>, vector<16x128xf32>
    %394 = arith.addf %381, %393 : vector<16x128xf32>
    %395 = vector.extract_strided_slice %302 {offsets = [6, 0], sizes = [1, 128], strides = [1, 1]} : vector<16x128xf32> to vector<1x128xf32>
    %396 = vector.broadcast %395 : vector<1x128xf32> to vector<16x128xf32>
    %397 = arith.cmpf olt, %396, %302 : vector<16x128xf32>
    %398 = vector.broadcast %395 : vector<1x128xf32> to vector<16x128xf32>
    %399 = arith.cmpf oeq, %398, %302 : vector<16x128xf32>
    %c6_i32_118 = arith.constant 6 : i32
    %400 = vector.broadcast %c6_i32_118 : i32 to vector<16x128xi32>
    %401 = arith.cmpi sgt, %315, %400 : vector<16x128xi32>
    %402 = arith.andi %399, %401 : vector<16x128xi1>
    %403 = arith.ori %397, %402 : vector<16x128xi1>
    %cst_119 = arith.constant 1.000000e+00 : f32
    %cst_120 = arith.constant 0.000000e+00 : f32
    %404 = vector.broadcast %cst_119 : f32 to vector<16x128xf32>
    %405 = vector.broadcast %cst_120 : f32 to vector<16x128xf32>
    %406 = arith.select %403, %404, %405 : vector<16x128xi1>, vector<16x128xf32>
    %407 = arith.addf %394, %406 : vector<16x128xf32>
    %408 = vector.extract_strided_slice %302 {offsets = [7, 0], sizes = [1, 128], strides = [1, 1]} : vector<16x128xf32> to vector<1x128xf32>
    %409 = vector.broadcast %408 : vector<1x128xf32> to vector<16x128xf32>
    %410 = arith.cmpf olt, %409, %302 : vector<16x128xf32>
    %411 = vector.broadcast %408 : vector<1x128xf32> to vector<16x128xf32>
    %412 = arith.cmpf oeq, %411, %302 : vector<16x128xf32>
    %c7_i32_121 = arith.constant 7 : i32
    %413 = vector.broadcast %c7_i32_121 : i32 to vector<16x128xi32>
    %414 = arith.cmpi sgt, %315, %413 : vector<16x128xi32>
    %415 = arith.andi %412, %414 : vector<16x128xi1>
    %416 = arith.ori %410, %415 : vector<16x128xi1>
    %cst_122 = arith.constant 1.000000e+00 : f32
    %cst_123 = arith.constant 0.000000e+00 : f32
    %417 = vector.broadcast %cst_122 : f32 to vector<16x128xf32>
    %418 = vector.broadcast %cst_123 : f32 to vector<16x128xf32>
    %419 = arith.select %416, %417, %418 : vector<16x128xi1>, vector<16x128xf32>
    %420 = arith.addf %407, %419 : vector<16x128xf32>
    %421 = vector.extract_strided_slice %302 {offsets = [8, 0], sizes = [1, 128], strides = [1, 1]} : vector<16x128xf32> to vector<1x128xf32>
    %422 = vector.broadcast %421 : vector<1x128xf32> to vector<16x128xf32>
    %423 = arith.cmpf olt, %422, %302 : vector<16x128xf32>
    %424 = vector.broadcast %421 : vector<1x128xf32> to vector<16x128xf32>
    %425 = arith.cmpf oeq, %424, %302 : vector<16x128xf32>
    %c8_i32_124 = arith.constant 8 : i32
    %426 = vector.broadcast %c8_i32_124 : i32 to vector<16x128xi32>
    %427 = arith.cmpi sgt, %315, %426 : vector<16x128xi32>
    %428 = arith.andi %425, %427 : vector<16x128xi1>
    %429 = arith.ori %423, %428 : vector<16x128xi1>
    %cst_125 = arith.constant 1.000000e+00 : f32
    %cst_126 = arith.constant 0.000000e+00 : f32
    %430 = vector.broadcast %cst_125 : f32 to vector<16x128xf32>
    %431 = vector.broadcast %cst_126 : f32 to vector<16x128xf32>
    %432 = arith.select %429, %430, %431 : vector<16x128xi1>, vector<16x128xf32>
    %433 = arith.addf %420, %432 : vector<16x128xf32>
    %434 = vector.extract_strided_slice %302 {offsets = [9, 0], sizes = [1, 128], strides = [1, 1]} : vector<16x128xf32> to vector<1x128xf32>
    %435 = vector.broadcast %434 : vector<1x128xf32> to vector<16x128xf32>
    %436 = arith.cmpf olt, %435, %302 : vector<16x128xf32>
    %437 = vector.broadcast %434 : vector<1x128xf32> to vector<16x128xf32>
    %438 = arith.cmpf oeq, %437, %302 : vector<16x128xf32>
    %c9_i32_127 = arith.constant 9 : i32
    %439 = vector.broadcast %c9_i32_127 : i32 to vector<16x128xi32>
    %440 = arith.cmpi sgt, %315, %439 : vector<16x128xi32>
    %441 = arith.andi %438, %440 : vector<16x128xi1>
    %442 = arith.ori %436, %441 : vector<16x128xi1>
    %cst_128 = arith.constant 1.000000e+00 : f32
    %cst_129 = arith.constant 0.000000e+00 : f32
    %443 = vector.broadcast %cst_128 : f32 to vector<16x128xf32>
    %444 = vector.broadcast %cst_129 : f32 to vector<16x128xf32>
    %445 = arith.select %442, %443, %444 : vector<16x128xi1>, vector<16x128xf32>
    %446 = arith.addf %433, %445 : vector<16x128xf32>
    %447 = vector.extract_strided_slice %302 {offsets = [10, 0], sizes = [1, 128], strides = [1, 1]} : vector<16x128xf32> to vector<1x128xf32>
    %448 = vector.broadcast %447 : vector<1x128xf32> to vector<16x128xf32>
    %449 = arith.cmpf olt, %448, %302 : vector<16x128xf32>
    %450 = vector.broadcast %447 : vector<1x128xf32> to vector<16x128xf32>
    %451 = arith.cmpf oeq, %450, %302 : vector<16x128xf32>
    %c10_i32_130 = arith.constant 10 : i32
    %452 = vector.broadcast %c10_i32_130 : i32 to vector<16x128xi32>
    %453 = arith.cmpi sgt, %315, %452 : vector<16x128xi32>
    %454 = arith.andi %451, %453 : vector<16x128xi1>
    %455 = arith.ori %449, %454 : vector<16x128xi1>
    %cst_131 = arith.constant 1.000000e+00 : f32
    %cst_132 = arith.constant 0.000000e+00 : f32
    %456 = vector.broadcast %cst_131 : f32 to vector<16x128xf32>
    %457 = vector.broadcast %cst_132 : f32 to vector<16x128xf32>
    %458 = arith.select %455, %456, %457 : vector<16x128xi1>, vector<16x128xf32>
    %459 = arith.addf %446, %458 : vector<16x128xf32>
    %460 = vector.extract_strided_slice %302 {offsets = [11, 0], sizes = [1, 128], strides = [1, 1]} : vector<16x128xf32> to vector<1x128xf32>
    %461 = vector.broadcast %460 : vector<1x128xf32> to vector<16x128xf32>
    %462 = arith.cmpf olt, %461, %302 : vector<16x128xf32>
    %463 = vector.broadcast %460 : vector<1x128xf32> to vector<16x128xf32>
    %464 = arith.cmpf oeq, %463, %302 : vector<16x128xf32>
    %c11_i32_133 = arith.constant 11 : i32
    %465 = vector.broadcast %c11_i32_133 : i32 to vector<16x128xi32>
    %466 = arith.cmpi sgt, %315, %465 : vector<16x128xi32>
    %467 = arith.andi %464, %466 : vector<16x128xi1>
    %468 = arith.ori %462, %467 : vector<16x128xi1>
    %cst_134 = arith.constant 1.000000e+00 : f32
    %cst_135 = arith.constant 0.000000e+00 : f32
    %469 = vector.broadcast %cst_134 : f32 to vector<16x128xf32>
    %470 = vector.broadcast %cst_135 : f32 to vector<16x128xf32>
    %471 = arith.select %468, %469, %470 : vector<16x128xi1>, vector<16x128xf32>
    %472 = arith.addf %459, %471 : vector<16x128xf32>
    %473 = vector.extract_strided_slice %302 {offsets = [12, 0], sizes = [1, 128], strides = [1, 1]} : vector<16x128xf32> to vector<1x128xf32>
    %474 = vector.broadcast %473 : vector<1x128xf32> to vector<16x128xf32>
    %475 = arith.cmpf olt, %474, %302 : vector<16x128xf32>
    %476 = vector.broadcast %473 : vector<1x128xf32> to vector<16x128xf32>
    %477 = arith.cmpf oeq, %476, %302 : vector<16x128xf32>
    %c12_i32_136 = arith.constant 12 : i32
    %478 = vector.broadcast %c12_i32_136 : i32 to vector<16x128xi32>
    %479 = arith.cmpi sgt, %315, %478 : vector<16x128xi32>
    %480 = arith.andi %477, %479 : vector<16x128xi1>
    %481 = arith.ori %475, %480 : vector<16x128xi1>
    %cst_137 = arith.constant 1.000000e+00 : f32
    %cst_138 = arith.constant 0.000000e+00 : f32
    %482 = vector.broadcast %cst_137 : f32 to vector<16x128xf32>
    %483 = vector.broadcast %cst_138 : f32 to vector<16x128xf32>
    %484 = arith.select %481, %482, %483 : vector<16x128xi1>, vector<16x128xf32>
    %485 = arith.addf %472, %484 : vector<16x128xf32>
    %486 = vector.extract_strided_slice %302 {offsets = [13, 0], sizes = [1, 128], strides = [1, 1]} : vector<16x128xf32> to vector<1x128xf32>
    %487 = vector.broadcast %486 : vector<1x128xf32> to vector<16x128xf32>
    %488 = arith.cmpf olt, %487, %302 : vector<16x128xf32>
    %489 = vector.broadcast %486 : vector<1x128xf32> to vector<16x128xf32>
    %490 = arith.cmpf oeq, %489, %302 : vector<16x128xf32>
    %c13_i32_139 = arith.constant 13 : i32
    %491 = vector.broadcast %c13_i32_139 : i32 to vector<16x128xi32>
    %492 = arith.cmpi sgt, %315, %491 : vector<16x128xi32>
    %493 = arith.andi %490, %492 : vector<16x128xi1>
    %494 = arith.ori %488, %493 : vector<16x128xi1>
    %cst_140 = arith.constant 1.000000e+00 : f32
    %cst_141 = arith.constant 0.000000e+00 : f32
    %495 = vector.broadcast %cst_140 : f32 to vector<16x128xf32>
    %496 = vector.broadcast %cst_141 : f32 to vector<16x128xf32>
    %497 = arith.select %494, %495, %496 : vector<16x128xi1>, vector<16x128xf32>
    %498 = arith.addf %485, %497 : vector<16x128xf32>
    %499 = vector.extract_strided_slice %302 {offsets = [14, 0], sizes = [1, 128], strides = [1, 1]} : vector<16x128xf32> to vector<1x128xf32>
    %500 = vector.broadcast %499 : vector<1x128xf32> to vector<16x128xf32>
    %501 = arith.cmpf olt, %500, %302 : vector<16x128xf32>
    %502 = vector.broadcast %499 : vector<1x128xf32> to vector<16x128xf32>
    %503 = arith.cmpf oeq, %502, %302 : vector<16x128xf32>
    %c14_i32_142 = arith.constant 14 : i32
    %504 = vector.broadcast %c14_i32_142 : i32 to vector<16x128xi32>
    %505 = arith.cmpi sgt, %315, %504 : vector<16x128xi32>
    %506 = arith.andi %503, %505 : vector<16x128xi1>
    %507 = arith.ori %501, %506 : vector<16x128xi1>
    %cst_143 = arith.constant 1.000000e+00 : f32
    %cst_144 = arith.constant 0.000000e+00 : f32
    %508 = vector.broadcast %cst_143 : f32 to vector<16x128xf32>
    %509 = vector.broadcast %cst_144 : f32 to vector<16x128xf32>
    %510 = arith.select %507, %508, %509 : vector<16x128xi1>, vector<16x128xf32>
    %511 = arith.addf %498, %510 : vector<16x128xf32>
    %512 = vector.extract_strided_slice %302 {offsets = [15, 0], sizes = [1, 128], strides = [1, 1]} : vector<16x128xf32> to vector<1x128xf32>
    %513 = vector.broadcast %512 : vector<1x128xf32> to vector<16x128xf32>
    %514 = arith.cmpf olt, %513, %302 : vector<16x128xf32>
    %515 = vector.broadcast %512 : vector<1x128xf32> to vector<16x128xf32>
    %516 = arith.cmpf oeq, %515, %302 : vector<16x128xf32>
    %c15_i32_145 = arith.constant 15 : i32
    %517 = vector.broadcast %c15_i32_145 : i32 to vector<16x128xi32>
    %518 = arith.cmpi sgt, %315, %517 : vector<16x128xi32>
    %519 = arith.andi %516, %518 : vector<16x128xi1>
    %520 = arith.ori %514, %519 : vector<16x128xi1>
    %cst_146 = arith.constant 1.000000e+00 : f32
    %cst_147 = arith.constant 0.000000e+00 : f32
    %521 = vector.broadcast %cst_146 : f32 to vector<16x128xf32>
    %522 = vector.broadcast %cst_147 : f32 to vector<16x128xf32>
    %523 = arith.select %520, %521, %522 : vector<16x128xi1>, vector<16x128xf32>
    %524 = arith.addf %511, %523 : vector<16x128xf32>
    %525 = vector.broadcast %314 : vector<1x1xf32> to vector<16x128xf32>
    %526 = arith.cmpf oeq, %524, %525 : vector<16x128xf32>
    %cst_148 = arith.constant 0.000000e+00 : f32
    %527 = vector.shape_cast %298 : vector<16x1xi1> to vector<16x1xi1>
    %528 = vector.broadcast %527 : vector<16x1xi1> to vector<16x128xi1>
    %529 = vector.broadcast %cst_148 : f32 to vector<16x128xf32>
    %530 = arith.select %528, %529, %294 : vector<16x128xi1>, vector<16x128xf32>
    %cst_149 = arith.constant 0.000000e+00 : f32
    %531 = vector.broadcast %cst_149 : f32 to vector<16x128xf32>
    %532 = arith.select %526, %530, %531 : vector<16x128xi1>, vector<16x128xf32>
    %cst_150 = arith.constant dense<0.000000e+00> : vector<128xf32>
    %533 = vector.multi_reduction <add>, %532, %cst_150 [0] : vector<16x128xf32> to vector<128xf32>
    %534 = vector.shape_cast %533 : vector<128xf32> to vector<1x128xf32>
    %535 = vector.shape_cast %298 : vector<16x1xi1> to vector<16x1xi1>
    %536 = vector.broadcast %535 : vector<16x1xi1> to vector<16x128xi1>
    %537 = vector.shape_cast %534 : vector<1x128xf32> to vector<1x128xf32>
    %538 = vector.broadcast %537 : vector<1x128xf32> to vector<16x128xf32>
    %539 = arith.select %536, %538, %294 : vector<16x128xi1>, vector<16x128xf32>
    %540 = arith.addf %269, %539 : vector<16x128xf32>
    %cst_151 = arith.constant 5.000000e-01 : f32
    %541 = vector.broadcast %cst_151 : f32 to vector<16x128xf32>
    %542 = arith.mulf %540, %541 : vector<16x128xf32>
    %543 = arith.truncf %542 : vector<16x128xf32> to vector<16x128xbf16>
    %c0_152 = arith.constant 0 : index
    %c0_153 = arith.constant 0 : index
    %c0_154 = arith.constant 0 : index
    %544 = vector.load %arg3[%c0_152, %c0_153, %c0_154] : memref<1x16x16xi8, #tpu.memory_space<vmem>>, vector<1x16x16xi8>
    %545 = vector.shape_cast %544 : vector<1x16x16xi8> to vector<16x16xi8>
    %546 = arith.sitofp %545 : vector<16x16xi8> to vector<16x16xf32>
    %cst_155 = arith.constant 0.000000e+00 : f32
    %547 = vector.broadcast %cst_155 : f32 to vector<16x16xf32>
    %548 = arith.cmpf ogt, %546, %547 : vector<16x16xf32>
    %cst_156 = arith.constant 0.000000e+00 : f32
    %cst_157 = arith.constant -1.000000e+30 : f32
    %549 = vector.broadcast %cst_156 : f32 to vector<16x16xf32>
    %550 = vector.broadcast %cst_157 : f32 to vector<16x16xf32>
    %551 = arith.select %548, %549, %550 : vector<16x16xi1>, vector<16x16xf32>
    %c0_158 = arith.constant 0 : index
    %c0_159 = arith.constant 0 : index
    %552 = vector.load %arg10[%c0_158, %c0_159] : memref<128x48xbf16, #tpu.memory_space<vmem>>, vector<128x48xbf16>
    %cst_160 = arith.constant dense<0.000000e+00> : vector<16x48xf32>
    %553 = tpu.matmul %543, %552, %cst_160 {dimension_numbers = #tpu.dot_dimension_numbers<[1], [0], [0], [1], [0, 0, 1, 1], [], []>} : vector<16x128xbf16>, vector<128x48xbf16>, vector<16x48xf32> -> vector<16x48xf32>
    %554 = arith.truncf %553 : vector<16x48xf32> to vector<16x48xbf16>
    %c0_161 = arith.constant 0 : index
    %c0_162 = arith.constant 0 : index
    %555 = vector.load %arg11[%c0_161, %c0_162] : memref<48x3xbf16, #tpu.memory_space<vmem>>, vector<48x3xbf16>
    %cst_163 = arith.constant dense<0.000000e+00> : vector<16x3xf32>
    %556 = tpu.matmul %554, %555, %cst_163 {dimension_numbers = #tpu.dot_dimension_numbers<[1], [0], [0], [1], [0, 0, 1, 1], [], []>} : vector<16x48xbf16>, vector<48x3xbf16>, vector<16x3xf32> -> vector<16x3xf32>
    %c0_164 = arith.constant 0 : index
    %c0_165 = arith.constant 0 : index
    %557 = vector.load %arg12[%c0_164, %c0_165] : memref<3x48xbf16, #tpu.memory_space<vmem>>, vector<3x48xbf16>
    "tpu.trace_start"() <{level = 10 : i32, message = "hf,nf->hn"}> : () -> ()
    %cst_166 = arith.constant dense<0.000000e+00> : vector<3x16xf32>
    %558 = tpu.matmul %557, %554, %cst_166 {dimension_numbers = #tpu.dot_dimension_numbers<[1], [1], [0], [0], [0, 0, 1, 0], [], []>} : vector<3x48xbf16>, vector<16x48xbf16>, vector<3x16xf32> -> vector<3x16xf32>
    "tpu.trace_stop"() : () -> ()
    %559 = vector.extract_strided_slice %554 {offsets = [0, 0], sizes = [16, 16], strides = [1, 1]} : vector<16x48xbf16> to vector<16x16xbf16>
    %560 = vector.extract_strided_slice %556 {offsets = [0, 0], sizes = [16, 1], strides = [1, 1]} : vector<16x3xf32> to vector<16x1xf32>
    %561 = vector.extract_strided_slice %558 {offsets = [0, 0], sizes = [1, 16], strides = [1, 1]} : vector<3x16xf32> to vector<1x16xf32>
    %562 = vector.broadcast %560 : vector<16x1xf32> to vector<16x16xf32>
    %563 = vector.broadcast %561 : vector<1x16xf32> to vector<16x16xf32>
    %564 = arith.addf %562, %563 : vector<16x16xf32>
    %cst_167 = arith.constant 0.000000e+00 : f32
    %565 = vector.broadcast %cst_167 : f32 to vector<16x16xf32>
    %566 = arith.cmpf ogt, %564, %565 : vector<16x16xf32>
    %cst_168 = arith.constant 2.000000e-01 : f32
    %567 = vector.broadcast %cst_168 : f32 to vector<16x16xf32>
    %568 = arith.mulf %567, %564 : vector<16x16xf32>
    %569 = arith.select %566, %564, %568 : vector<16x16xi1>, vector<16x16xf32>
    %570 = arith.addf %569, %551 : vector<16x16xf32>
    %cst_169 = arith.constant dense<0xFF800000> : vector<16xf32>
    %571 = vector.multi_reduction <maximumf>, %570, %cst_169 [1] : vector<16x16xf32> to vector<16xf32>
    %572 = vector.shape_cast %571 : vector<16xf32> to vector<16x1xf32>
    %573 = vector.broadcast %572 : vector<16x1xf32> to vector<16x16xf32>
    %574 = arith.subf %570, %573 : vector<16x16xf32>
    %575 = math.exp %574 : vector<16x16xf32>
    %cst_170 = arith.constant dense<0.000000e+00> : vector<16xf32>
    %576 = vector.multi_reduction <add>, %575, %cst_170 [1] : vector<16x16xf32> to vector<16xf32>
    %577 = vector.shape_cast %576 : vector<16xf32> to vector<16x1xf32>
    %578 = tpu.reciprocal %577 {approx = true} : vector<16x1xf32> -> vector<16x1xf32>
    %579 = arith.truncf %575 : vector<16x16xf32> to vector<16x16xbf16>
    %cst_171 = arith.constant dense<0.000000e+00> : vector<16x16xf32>
    %580 = tpu.matmul %579, %559, %cst_171 {dimension_numbers = #tpu.dot_dimension_numbers<[1], [0], [0], [1], [0, 0, 1, 1], [], []>} : vector<16x16xbf16>, vector<16x16xbf16>, vector<16x16xf32> -> vector<16x16xf32>
    %581 = vector.broadcast %578 : vector<16x1xf32> to vector<16x16xf32>
    %582 = arith.mulf %580, %581 : vector<16x16xf32>
    %583 = vector.extract_strided_slice %554 {offsets = [0, 16], sizes = [16, 16], strides = [1, 1]} : vector<16x48xbf16> to vector<16x16xbf16>
    %584 = vector.extract_strided_slice %556 {offsets = [0, 1], sizes = [16, 1], strides = [1, 1]} : vector<16x3xf32> to vector<16x1xf32>
    %585 = vector.extract_strided_slice %558 {offsets = [1, 0], sizes = [1, 16], strides = [1, 1]} : vector<3x16xf32> to vector<1x16xf32>
    %586 = vector.broadcast %584 : vector<16x1xf32> to vector<16x16xf32>
    %587 = vector.broadcast %585 : vector<1x16xf32> to vector<16x16xf32>
    %588 = arith.addf %586, %587 : vector<16x16xf32>
    %cst_172 = arith.constant 0.000000e+00 : f32
    %589 = vector.broadcast %cst_172 : f32 to vector<16x16xf32>
    %590 = arith.cmpf ogt, %588, %589 : vector<16x16xf32>
    %cst_173 = arith.constant 2.000000e-01 : f32
    %591 = vector.broadcast %cst_173 : f32 to vector<16x16xf32>
    %592 = arith.mulf %591, %588 : vector<16x16xf32>
    %593 = arith.select %590, %588, %592 : vector<16x16xi1>, vector<16x16xf32>
    %594 = arith.addf %593, %551 : vector<16x16xf32>
    %cst_174 = arith.constant dense<0xFF800000> : vector<16xf32>
    %595 = vector.multi_reduction <maximumf>, %594, %cst_174 [1] : vector<16x16xf32> to vector<16xf32>
    %596 = vector.shape_cast %595 : vector<16xf32> to vector<16x1xf32>
    %597 = vector.broadcast %596 : vector<16x1xf32> to vector<16x16xf32>
    %598 = arith.subf %594, %597 : vector<16x16xf32>
    %599 = math.exp %598 : vector<16x16xf32>
    %cst_175 = arith.constant dense<0.000000e+00> : vector<16xf32>
    %600 = vector.multi_reduction <add>, %599, %cst_175 [1] : vector<16x16xf32> to vector<16xf32>
    %601 = vector.shape_cast %600 : vector<16xf32> to vector<16x1xf32>
    %602 = tpu.reciprocal %601 {approx = true} : vector<16x1xf32> -> vector<16x1xf32>
    %603 = arith.truncf %599 : vector<16x16xf32> to vector<16x16xbf16>
    %cst_176 = arith.constant dense<0.000000e+00> : vector<16x16xf32>
    %604 = tpu.matmul %603, %583, %cst_176 {dimension_numbers = #tpu.dot_dimension_numbers<[1], [0], [0], [1], [0, 0, 1, 1], [], []>} : vector<16x16xbf16>, vector<16x16xbf16>, vector<16x16xf32> -> vector<16x16xf32>
    %605 = vector.broadcast %602 : vector<16x1xf32> to vector<16x16xf32>
    %606 = arith.mulf %604, %605 : vector<16x16xf32>
    %607 = vector.extract_strided_slice %554 {offsets = [0, 32], sizes = [16, 16], strides = [1, 1]} : vector<16x48xbf16> to vector<16x16xbf16>
    %608 = vector.extract_strided_slice %556 {offsets = [0, 2], sizes = [16, 1], strides = [1, 1]} : vector<16x3xf32> to vector<16x1xf32>
    %609 = vector.extract_strided_slice %558 {offsets = [2, 0], sizes = [1, 16], strides = [1, 1]} : vector<3x16xf32> to vector<1x16xf32>
    %610 = vector.broadcast %608 : vector<16x1xf32> to vector<16x16xf32>
    %611 = vector.broadcast %609 : vector<1x16xf32> to vector<16x16xf32>
    %612 = arith.addf %610, %611 : vector<16x16xf32>
    %cst_177 = arith.constant 0.000000e+00 : f32
    %613 = vector.broadcast %cst_177 : f32 to vector<16x16xf32>
    %614 = arith.cmpf ogt, %612, %613 : vector<16x16xf32>
    %cst_178 = arith.constant 2.000000e-01 : f32
    %615 = vector.broadcast %cst_178 : f32 to vector<16x16xf32>
    %616 = arith.mulf %615, %612 : vector<16x16xf32>
    %617 = arith.select %614, %612, %616 : vector<16x16xi1>, vector<16x16xf32>
    %618 = arith.addf %617, %551 : vector<16x16xf32>
    %cst_179 = arith.constant dense<0xFF800000> : vector<16xf32>
    %619 = vector.multi_reduction <maximumf>, %618, %cst_179 [1] : vector<16x16xf32> to vector<16xf32>
    %620 = vector.shape_cast %619 : vector<16xf32> to vector<16x1xf32>
    %621 = vector.broadcast %620 : vector<16x1xf32> to vector<16x16xf32>
    %622 = arith.subf %618, %621 : vector<16x16xf32>
    %623 = math.exp %622 : vector<16x16xf32>
    %cst_180 = arith.constant dense<0.000000e+00> : vector<16xf32>
    %624 = vector.multi_reduction <add>, %623, %cst_180 [1] : vector<16x16xf32> to vector<16xf32>
    %625 = vector.shape_cast %624 : vector<16xf32> to vector<16x1xf32>
    %626 = tpu.reciprocal %625 {approx = true} : vector<16x1xf32> -> vector<16x1xf32>
    %627 = arith.truncf %623 : vector<16x16xf32> to vector<16x16xbf16>
    %cst_181 = arith.constant dense<0.000000e+00> : vector<16x16xf32>
    %628 = tpu.matmul %627, %607, %cst_181 {dimension_numbers = #tpu.dot_dimension_numbers<[1], [0], [0], [1], [0, 0, 1, 1], [], []>} : vector<16x16xbf16>, vector<16x16xbf16>, vector<16x16xf32> -> vector<16x16xf32>
    %629 = vector.broadcast %626 : vector<16x1xf32> to vector<16x16xf32>
    %630 = arith.mulf %628, %629 : vector<16x16xf32>
    %631 = tpu.concatenate %582, %606, %630 in 1 : vector<16x16xf32>, vector<16x16xf32>, vector<16x16xf32> -> vector<16x48xf32>
    %c0_182 = arith.constant 0 : index
    %c0_183 = arith.constant 0 : index
    %632 = vector.load %arg13[%c0_182, %c0_183] : memref<1x48xf32, #tpu.memory_space<vmem>>, vector<1x48xf32>
    %633 = vector.broadcast %632 : vector<1x48xf32> to vector<16x48xf32>
    %634 = arith.mulf %631, %633 : vector<16x48xf32>
    %c0_184 = arith.constant 0 : index
    %c0_185 = arith.constant 0 : index
    %635 = vector.load %arg14[%c0_184, %c0_185] : memref<1x48xf32, #tpu.memory_space<vmem>>, vector<1x48xf32>
    %636 = vector.broadcast %635 : vector<1x48xf32> to vector<16x48xf32>
    %637 = arith.addf %634, %636 : vector<16x48xf32>
    %638 = arith.truncf %637 : vector<16x48xf32> to vector<16x48xbf16>
    %c0_186 = arith.constant 0 : index
    %c0_187 = arith.constant 0 : index
    %639 = vector.load %arg15[%c0_186, %c0_187] : memref<48x48xbf16, #tpu.memory_space<vmem>>, vector<48x48xbf16>
    %cst_188 = arith.constant dense<0.000000e+00> : vector<16x48xf32>
    %640 = tpu.matmul %638, %639, %cst_188 {dimension_numbers = #tpu.dot_dimension_numbers<[1], [0], [0], [1], [0, 0, 1, 1], [], []>} : vector<16x48xbf16>, vector<48x48xbf16>, vector<16x48xf32> -> vector<16x48xf32>
    %641 = arith.truncf %640 : vector<16x48xf32> to vector<16x48xbf16>
    %c0_189 = arith.constant 0 : index
    %c0_190 = arith.constant 0 : index
    %642 = vector.load %arg16[%c0_189, %c0_190] : memref<48x3xbf16, #tpu.memory_space<vmem>>, vector<48x3xbf16>
    %cst_191 = arith.constant dense<0.000000e+00> : vector<16x3xf32>
    %643 = tpu.matmul %641, %642, %cst_191 {dimension_numbers = #tpu.dot_dimension_numbers<[1], [0], [0], [1], [0, 0, 1, 1], [], []>} : vector<16x48xbf16>, vector<48x3xbf16>, vector<16x3xf32> -> vector<16x3xf32>
    %c0_192 = arith.constant 0 : index
    %c0_193 = arith.constant 0 : index
    %644 = vector.load %arg17[%c0_192, %c0_193] : memref<3x48xbf16, #tpu.memory_space<vmem>>, vector<3x48xbf16>
    "tpu.trace_start"() <{level = 10 : i32, message = "hf,nf->hn"}> : () -> ()
    %cst_194 = arith.constant dense<0.000000e+00> : vector<3x16xf32>
    %645 = tpu.matmul %644, %641, %cst_194 {dimension_numbers = #tpu.dot_dimension_numbers<[1], [1], [0], [0], [0, 0, 1, 0], [], []>} : vector<3x48xbf16>, vector<16x48xbf16>, vector<3x16xf32> -> vector<3x16xf32>
    "tpu.trace_stop"() : () -> ()
    %646 = vector.extract_strided_slice %641 {offsets = [0, 0], sizes = [16, 16], strides = [1, 1]} : vector<16x48xbf16> to vector<16x16xbf16>
    %647 = vector.extract_strided_slice %643 {offsets = [0, 0], sizes = [16, 1], strides = [1, 1]} : vector<16x3xf32> to vector<16x1xf32>
    %648 = vector.extract_strided_slice %645 {offsets = [0, 0], sizes = [1, 16], strides = [1, 1]} : vector<3x16xf32> to vector<1x16xf32>
    %649 = vector.broadcast %647 : vector<16x1xf32> to vector<16x16xf32>
    %650 = vector.broadcast %648 : vector<1x16xf32> to vector<16x16xf32>
    %651 = arith.addf %649, %650 : vector<16x16xf32>
    %cst_195 = arith.constant 0.000000e+00 : f32
    %652 = vector.broadcast %cst_195 : f32 to vector<16x16xf32>
    %653 = arith.cmpf ogt, %651, %652 : vector<16x16xf32>
    %cst_196 = arith.constant 2.000000e-01 : f32
    %654 = vector.broadcast %cst_196 : f32 to vector<16x16xf32>
    %655 = arith.mulf %654, %651 : vector<16x16xf32>
    %656 = arith.select %653, %651, %655 : vector<16x16xi1>, vector<16x16xf32>
    %657 = arith.addf %656, %551 : vector<16x16xf32>
    %cst_197 = arith.constant dense<0xFF800000> : vector<16xf32>
    %658 = vector.multi_reduction <maximumf>, %657, %cst_197 [1] : vector<16x16xf32> to vector<16xf32>
    %659 = vector.shape_cast %658 : vector<16xf32> to vector<16x1xf32>
    %660 = vector.broadcast %659 : vector<16x1xf32> to vector<16x16xf32>
    %661 = arith.subf %657, %660 : vector<16x16xf32>
    %662 = math.exp %661 : vector<16x16xf32>
    %cst_198 = arith.constant dense<0.000000e+00> : vector<16xf32>
    %663 = vector.multi_reduction <add>, %662, %cst_198 [1] : vector<16x16xf32> to vector<16xf32>
    %664 = vector.shape_cast %663 : vector<16xf32> to vector<16x1xf32>
    %665 = tpu.reciprocal %664 {approx = true} : vector<16x1xf32> -> vector<16x1xf32>
    %666 = arith.truncf %662 : vector<16x16xf32> to vector<16x16xbf16>
    %cst_199 = arith.constant dense<0.000000e+00> : vector<16x16xf32>
    %667 = tpu.matmul %666, %646, %cst_199 {dimension_numbers = #tpu.dot_dimension_numbers<[1], [0], [0], [1], [0, 0, 1, 1], [], []>} : vector<16x16xbf16>, vector<16x16xbf16>, vector<16x16xf32> -> vector<16x16xf32>
    %668 = vector.broadcast %665 : vector<16x1xf32> to vector<16x16xf32>
    %669 = arith.mulf %667, %668 : vector<16x16xf32>
    %670 = vector.extract_strided_slice %641 {offsets = [0, 16], sizes = [16, 16], strides = [1, 1]} : vector<16x48xbf16> to vector<16x16xbf16>
    %671 = vector.extract_strided_slice %643 {offsets = [0, 1], sizes = [16, 1], strides = [1, 1]} : vector<16x3xf32> to vector<16x1xf32>
    %672 = vector.extract_strided_slice %645 {offsets = [1, 0], sizes = [1, 16], strides = [1, 1]} : vector<3x16xf32> to vector<1x16xf32>
    %673 = vector.broadcast %671 : vector<16x1xf32> to vector<16x16xf32>
    %674 = vector.broadcast %672 : vector<1x16xf32> to vector<16x16xf32>
    %675 = arith.addf %673, %674 : vector<16x16xf32>
    %cst_200 = arith.constant 0.000000e+00 : f32
    %676 = vector.broadcast %cst_200 : f32 to vector<16x16xf32>
    %677 = arith.cmpf ogt, %675, %676 : vector<16x16xf32>
    %cst_201 = arith.constant 2.000000e-01 : f32
    %678 = vector.broadcast %cst_201 : f32 to vector<16x16xf32>
    %679 = arith.mulf %678, %675 : vector<16x16xf32>
    %680 = arith.select %677, %675, %679 : vector<16x16xi1>, vector<16x16xf32>
    %681 = arith.addf %680, %551 : vector<16x16xf32>
    %cst_202 = arith.constant dense<0xFF800000> : vector<16xf32>
    %682 = vector.multi_reduction <maximumf>, %681, %cst_202 [1] : vector<16x16xf32> to vector<16xf32>
    %683 = vector.shape_cast %682 : vector<16xf32> to vector<16x1xf32>
    %684 = vector.broadcast %683 : vector<16x1xf32> to vector<16x16xf32>
    %685 = arith.subf %681, %684 : vector<16x16xf32>
    %686 = math.exp %685 : vector<16x16xf32>
    %cst_203 = arith.constant dense<0.000000e+00> : vector<16xf32>
    %687 = vector.multi_reduction <add>, %686, %cst_203 [1] : vector<16x16xf32> to vector<16xf32>
    %688 = vector.shape_cast %687 : vector<16xf32> to vector<16x1xf32>
    %689 = tpu.reciprocal %688 {approx = true} : vector<16x1xf32> -> vector<16x1xf32>
    %690 = arith.truncf %686 : vector<16x16xf32> to vector<16x16xbf16>
    %cst_204 = arith.constant dense<0.000000e+00> : vector<16x16xf32>
    %691 = tpu.matmul %690, %670, %cst_204 {dimension_numbers = #tpu.dot_dimension_numbers<[1], [0], [0], [1], [0, 0, 1, 1], [], []>} : vector<16x16xbf16>, vector<16x16xbf16>, vector<16x16xf32> -> vector<16x16xf32>
    %692 = vector.broadcast %689 : vector<16x1xf32> to vector<16x16xf32>
    %693 = arith.mulf %691, %692 : vector<16x16xf32>
    %694 = vector.extract_strided_slice %641 {offsets = [0, 32], sizes = [16, 16], strides = [1, 1]} : vector<16x48xbf16> to vector<16x16xbf16>
    %695 = vector.extract_strided_slice %643 {offsets = [0, 2], sizes = [16, 1], strides = [1, 1]} : vector<16x3xf32> to vector<16x1xf32>
    %696 = vector.extract_strided_slice %645 {offsets = [2, 0], sizes = [1, 16], strides = [1, 1]} : vector<3x16xf32> to vector<1x16xf32>
    %697 = vector.broadcast %695 : vector<16x1xf32> to vector<16x16xf32>
    %698 = vector.broadcast %696 : vector<1x16xf32> to vector<16x16xf32>
    %699 = arith.addf %697, %698 : vector<16x16xf32>
    %cst_205 = arith.constant 0.000000e+00 : f32
    %700 = vector.broadcast %cst_205 : f32 to vector<16x16xf32>
    %701 = arith.cmpf ogt, %699, %700 : vector<16x16xf32>
    %cst_206 = arith.constant 2.000000e-01 : f32
    %702 = vector.broadcast %cst_206 : f32 to vector<16x16xf32>
    %703 = arith.mulf %702, %699 : vector<16x16xf32>
    %704 = arith.select %701, %699, %703 : vector<16x16xi1>, vector<16x16xf32>
    %705 = arith.addf %704, %551 : vector<16x16xf32>
    %cst_207 = arith.constant dense<0xFF800000> : vector<16xf32>
    %706 = vector.multi_reduction <maximumf>, %705, %cst_207 [1] : vector<16x16xf32> to vector<16xf32>
    %707 = vector.shape_cast %706 : vector<16xf32> to vector<16x1xf32>
    %708 = vector.broadcast %707 : vector<16x1xf32> to vector<16x16xf32>
    %709 = arith.subf %705, %708 : vector<16x16xf32>
    %710 = math.exp %709 : vector<16x16xf32>
    %cst_208 = arith.constant dense<0.000000e+00> : vector<16xf32>
    %711 = vector.multi_reduction <add>, %710, %cst_208 [1] : vector<16x16xf32> to vector<16xf32>
    %712 = vector.shape_cast %711 : vector<16xf32> to vector<16x1xf32>
    %713 = tpu.reciprocal %712 {approx = true} : vector<16x1xf32> -> vector<16x1xf32>
    %714 = arith.truncf %710 : vector<16x16xf32> to vector<16x16xbf16>
    %cst_209 = arith.constant dense<0.000000e+00> : vector<16x16xf32>
    %715 = tpu.matmul %714, %694, %cst_209 {dimension_numbers = #tpu.dot_dimension_numbers<[1], [0], [0], [1], [0, 0, 1, 1], [], []>} : vector<16x16xbf16>, vector<16x16xbf16>, vector<16x16xf32> -> vector<16x16xf32>
    %716 = vector.broadcast %713 : vector<16x1xf32> to vector<16x16xf32>
    %717 = arith.mulf %715, %716 : vector<16x16xf32>
    %718 = tpu.concatenate %669, %693, %717 in 1 : vector<16x16xf32>, vector<16x16xf32>, vector<16x16xf32> -> vector<16x48xf32>
    %c0_210 = arith.constant 0 : index
    %c0_211 = arith.constant 0 : index
    %719 = vector.load %arg18[%c0_210, %c0_211] : memref<1x48xf32, #tpu.memory_space<vmem>>, vector<1x48xf32>
    %720 = vector.broadcast %719 : vector<1x48xf32> to vector<16x48xf32>
    %721 = arith.mulf %718, %720 : vector<16x48xf32>
    %c0_212 = arith.constant 0 : index
    %c0_213 = arith.constant 0 : index
    %722 = vector.load %arg19[%c0_212, %c0_213] : memref<1x48xf32, #tpu.memory_space<vmem>>, vector<1x48xf32>
    %723 = vector.broadcast %722 : vector<1x48xf32> to vector<16x48xf32>
    %724 = arith.addf %721, %723 : vector<16x48xf32>
    %725 = arith.truncf %724 : vector<16x48xf32> to vector<16x48xbf16>
    %c0_214 = arith.constant 0 : index
    %c0_215 = arith.constant 0 : index
    %726 = vector.load %arg20[%c0_214, %c0_215] : memref<48x384xbf16, #tpu.memory_space<vmem>>, vector<48x384xbf16>
    %cst_216 = arith.constant dense<0.000000e+00> : vector<16x384xf32>
    %727 = tpu.matmul %725, %726, %cst_216 {dimension_numbers = #tpu.dot_dimension_numbers<[1], [0], [0], [1], [0, 0, 1, 1], [], []>} : vector<16x48xbf16>, vector<48x384xbf16>, vector<16x384xf32> -> vector<16x384xf32>
    %728 = arith.truncf %727 : vector<16x384xf32> to vector<16x384xbf16>
    %c0_217 = arith.constant 0 : index
    %c0_218 = arith.constant 0 : index
    %729 = vector.load %arg21[%c0_217, %c0_218] : memref<384x3xbf16, #tpu.memory_space<vmem>>, vector<384x3xbf16>
    %cst_219 = arith.constant dense<0.000000e+00> : vector<16x3xf32>
    %730 = tpu.matmul %728, %729, %cst_219 {dimension_numbers = #tpu.dot_dimension_numbers<[1], [0], [0], [1], [0, 0, 1, 1], [], []>} : vector<16x384xbf16>, vector<384x3xbf16>, vector<16x3xf32> -> vector<16x3xf32>
    %c0_220 = arith.constant 0 : index
    %c0_221 = arith.constant 0 : index
    %731 = vector.load %arg22[%c0_220, %c0_221] : memref<3x384xbf16, #tpu.memory_space<vmem>>, vector<3x384xbf16>
    "tpu.trace_start"() <{level = 10 : i32, message = "hf,nf->hn"}> : () -> ()
    %cst_222 = arith.constant dense<0.000000e+00> : vector<3x16xf32>
    %732 = tpu.matmul %731, %728, %cst_222 {dimension_numbers = #tpu.dot_dimension_numbers<[1], [1], [0], [0], [0, 0, 1, 0], [], []>} : vector<3x384xbf16>, vector<16x384xbf16>, vector<3x16xf32> -> vector<3x16xf32>
    "tpu.trace_stop"() : () -> ()
    %733 = vector.extract_strided_slice %728 {offsets = [0, 0], sizes = [16, 128], strides = [1, 1]} : vector<16x384xbf16> to vector<16x128xbf16>
    %734 = vector.extract_strided_slice %730 {offsets = [0, 0], sizes = [16, 1], strides = [1, 1]} : vector<16x3xf32> to vector<16x1xf32>
    %735 = vector.extract_strided_slice %732 {offsets = [0, 0], sizes = [1, 16], strides = [1, 1]} : vector<3x16xf32> to vector<1x16xf32>
    %736 = vector.broadcast %734 : vector<16x1xf32> to vector<16x16xf32>
    %737 = vector.broadcast %735 : vector<1x16xf32> to vector<16x16xf32>
    %738 = arith.addf %736, %737 : vector<16x16xf32>
    %cst_223 = arith.constant 0.000000e+00 : f32
    %739 = vector.broadcast %cst_223 : f32 to vector<16x16xf32>
    %740 = arith.cmpf ogt, %738, %739 : vector<16x16xf32>
    %cst_224 = arith.constant 2.000000e-01 : f32
    %741 = vector.broadcast %cst_224 : f32 to vector<16x16xf32>
    %742 = arith.mulf %741, %738 : vector<16x16xf32>
    %743 = arith.select %740, %738, %742 : vector<16x16xi1>, vector<16x16xf32>
    %744 = arith.addf %743, %551 : vector<16x16xf32>
    %cst_225 = arith.constant dense<0xFF800000> : vector<16xf32>
    %745 = vector.multi_reduction <maximumf>, %744, %cst_225 [1] : vector<16x16xf32> to vector<16xf32>
    %746 = vector.shape_cast %745 : vector<16xf32> to vector<16x1xf32>
    %747 = vector.broadcast %746 : vector<16x1xf32> to vector<16x16xf32>
    %748 = arith.subf %744, %747 : vector<16x16xf32>
    %749 = math.exp %748 : vector<16x16xf32>
    %cst_226 = arith.constant dense<0.000000e+00> : vector<16xf32>
    %750 = vector.multi_reduction <add>, %749, %cst_226 [1] : vector<16x16xf32> to vector<16xf32>
    %751 = vector.shape_cast %750 : vector<16xf32> to vector<16x1xf32>
    %752 = tpu.reciprocal %751 {approx = true} : vector<16x1xf32> -> vector<16x1xf32>
    %753 = arith.truncf %749 : vector<16x16xf32> to vector<16x16xbf16>
    %cst_227 = arith.constant dense<0.000000e+00> : vector<16x128xf32>
    %754 = tpu.matmul %753, %733, %cst_227 {dimension_numbers = #tpu.dot_dimension_numbers<[1], [0], [0], [1], [0, 0, 1, 1], [], []>} : vector<16x16xbf16>, vector<16x128xbf16>, vector<16x128xf32> -> vector<16x128xf32>
    %755 = vector.broadcast %752 : vector<16x1xf32> to vector<16x128xf32>
    %756 = arith.mulf %754, %755 : vector<16x128xf32>
    %757 = vector.extract_strided_slice %728 {offsets = [0, 128], sizes = [16, 128], strides = [1, 1]} : vector<16x384xbf16> to vector<16x128xbf16>
    %758 = vector.extract_strided_slice %730 {offsets = [0, 1], sizes = [16, 1], strides = [1, 1]} : vector<16x3xf32> to vector<16x1xf32>
    %759 = vector.extract_strided_slice %732 {offsets = [1, 0], sizes = [1, 16], strides = [1, 1]} : vector<3x16xf32> to vector<1x16xf32>
    %760 = vector.broadcast %758 : vector<16x1xf32> to vector<16x16xf32>
    %761 = vector.broadcast %759 : vector<1x16xf32> to vector<16x16xf32>
    %762 = arith.addf %760, %761 : vector<16x16xf32>
    %cst_228 = arith.constant 0.000000e+00 : f32
    %763 = vector.broadcast %cst_228 : f32 to vector<16x16xf32>
    %764 = arith.cmpf ogt, %762, %763 : vector<16x16xf32>
    %cst_229 = arith.constant 2.000000e-01 : f32
    %765 = vector.broadcast %cst_229 : f32 to vector<16x16xf32>
    %766 = arith.mulf %765, %762 : vector<16x16xf32>
    %767 = arith.select %764, %762, %766 : vector<16x16xi1>, vector<16x16xf32>
    %768 = arith.addf %767, %551 : vector<16x16xf32>
    %cst_230 = arith.constant dense<0xFF800000> : vector<16xf32>
    %769 = vector.multi_reduction <maximumf>, %768, %cst_230 [1] : vector<16x16xf32> to vector<16xf32>
    %770 = vector.shape_cast %769 : vector<16xf32> to vector<16x1xf32>
    %771 = vector.broadcast %770 : vector<16x1xf32> to vector<16x16xf32>
    %772 = arith.subf %768, %771 : vector<16x16xf32>
    %773 = math.exp %772 : vector<16x16xf32>
    %cst_231 = arith.constant dense<0.000000e+00> : vector<16xf32>
    %774 = vector.multi_reduction <add>, %773, %cst_231 [1] : vector<16x16xf32> to vector<16xf32>
    %775 = vector.shape_cast %774 : vector<16xf32> to vector<16x1xf32>
    %776 = tpu.reciprocal %775 {approx = true} : vector<16x1xf32> -> vector<16x1xf32>
    %777 = arith.truncf %773 : vector<16x16xf32> to vector<16x16xbf16>
    %cst_232 = arith.constant dense<0.000000e+00> : vector<16x128xf32>
    %778 = tpu.matmul %777, %757, %cst_232 {dimension_numbers = #tpu.dot_dimension_numbers<[1], [0], [0], [1], [0, 0, 1, 1], [], []>} : vector<16x16xbf16>, vector<16x128xbf16>, vector<16x128xf32> -> vector<16x128xf32>
    %779 = vector.broadcast %776 : vector<16x1xf32> to vector<16x128xf32>
    %780 = arith.mulf %778, %779 : vector<16x128xf32>
    %781 = vector.extract_strided_slice %728 {offsets = [0, 256], sizes = [16, 128], strides = [1, 1]} : vector<16x384xbf16> to vector<16x128xbf16>
    %782 = vector.extract_strided_slice %730 {offsets = [0, 2], sizes = [16, 1], strides = [1, 1]} : vector<16x3xf32> to vector<16x1xf32>
    %783 = vector.extract_strided_slice %732 {offsets = [2, 0], sizes = [1, 16], strides = [1, 1]} : vector<3x16xf32> to vector<1x16xf32>
    %784 = vector.broadcast %782 : vector<16x1xf32> to vector<16x16xf32>
    %785 = vector.broadcast %783 : vector<1x16xf32> to vector<16x16xf32>
    %786 = arith.addf %784, %785 : vector<16x16xf32>
    %cst_233 = arith.constant 0.000000e+00 : f32
    %787 = vector.broadcast %cst_233 : f32 to vector<16x16xf32>
    %788 = arith.cmpf ogt, %786, %787 : vector<16x16xf32>
    %cst_234 = arith.constant 2.000000e-01 : f32
    %789 = vector.broadcast %cst_234 : f32 to vector<16x16xf32>
    %790 = arith.mulf %789, %786 : vector<16x16xf32>
    %791 = arith.select %788, %786, %790 : vector<16x16xi1>, vector<16x16xf32>
    %792 = arith.addf %791, %551 : vector<16x16xf32>
    %cst_235 = arith.constant dense<0xFF800000> : vector<16xf32>
    %793 = vector.multi_reduction <maximumf>, %792, %cst_235 [1] : vector<16x16xf32> to vector<16xf32>
    %794 = vector.shape_cast %793 : vector<16xf32> to vector<16x1xf32>
    %795 = vector.broadcast %794 : vector<16x1xf32> to vector<16x16xf32>
    %796 = arith.subf %792, %795 : vector<16x16xf32>
    %797 = math.exp %796 : vector<16x16xf32>
    %cst_236 = arith.constant dense<0.000000e+00> : vector<16xf32>
    %798 = vector.multi_reduction <add>, %797, %cst_236 [1] : vector<16x16xf32> to vector<16xf32>
    %799 = vector.shape_cast %798 : vector<16xf32> to vector<16x1xf32>
    %800 = tpu.reciprocal %799 {approx = true} : vector<16x1xf32> -> vector<16x1xf32>
    %801 = arith.truncf %797 : vector<16x16xf32> to vector<16x16xbf16>
    %cst_237 = arith.constant dense<0.000000e+00> : vector<16x128xf32>
    %802 = tpu.matmul %801, %781, %cst_237 {dimension_numbers = #tpu.dot_dimension_numbers<[1], [0], [0], [1], [0, 0, 1, 1], [], []>} : vector<16x16xbf16>, vector<16x128xbf16>, vector<16x128xf32> -> vector<16x128xf32>
    %803 = vector.broadcast %800 : vector<16x1xf32> to vector<16x128xf32>
    %804 = arith.mulf %802, %803 : vector<16x128xf32>
    %805 = arith.addf %756, %780 : vector<16x128xf32>
    %806 = arith.addf %805, %804 : vector<16x128xf32>
    %c0_238 = arith.constant 0 : index
    %c0_239 = arith.constant 0 : index
    %807 = vector.load %arg23[%c0_238, %c0_239] : memref<1x128xf32, #tpu.memory_space<vmem>>, vector<1x128xf32>
    %808 = vector.broadcast %807 : vector<1x128xf32> to vector<16x128xf32>
    %809 = arith.mulf %806, %808 : vector<16x128xf32>
    %c0_240 = arith.constant 0 : index
    %c0_241 = arith.constant 0 : index
    %810 = vector.load %arg24[%c0_240, %c0_241] : memref<1x128xf32, #tpu.memory_space<vmem>>, vector<1x128xf32>
    %811 = vector.broadcast %810 : vector<1x128xf32> to vector<16x128xf32>
    %812 = arith.addf %809, %811 : vector<16x128xf32>
    %c0_242 = arith.constant 0 : index
    %c0_243 = arith.constant 0 : index
    %813 = vector.load %arg25[%c0_242, %c0_243] : memref<16x128xf32, #tpu.memory_space<vmem>>, vector<16x128xf32>
    tpu.vector_store %arg25[%c0_242, %c0_243], %812 {strides = array<i32>} : memref<16x128xf32, #tpu.memory_space<vmem>>, vector<16x128xf32>,
    return
  }
  func.func @transform_0(%arg0: i32) -> (i32, i32, i32) {
    %c0_i32 = arith.constant 0 : i32
    %c0_i32_0 = arith.constant 0 : i32
    %c0_i32_1 = arith.constant 0 : i32
    %c0_i32_2 = arith.constant 0 : i32
    return %c0_i32, %c0_i32_0, %c0_i32_1 : i32, i32, i32
  }
  func.func @transform_1(%arg0: i32) -> (i32, i32, i32) {
    %c0_i32 = arith.constant 0 : i32
    %c0_i32_0 = arith.constant 0 : i32
    %c0_i32_1 = arith.constant 0 : i32
    %c0_i32_2 = arith.constant 0 : i32
    return %c0_i32, %c0_i32_0, %c0_i32_1 : i32, i32, i32
  }
  func.func @transform_2(%arg0: i32) -> (i32, i32, i32) {
    %c0_i32 = arith.constant 0 : i32
    %c0_i32_0 = arith.constant 0 : i32
    %c0_i32_1 = arith.constant 0 : i32
    %c0_i32_2 = arith.constant 0 : i32
    return %c0_i32, %c0_i32_0, %c0_i32_1 : i32, i32, i32
  }
  func.func @transform_3(%arg0: i32) -> (i32, i32, i32) {
    %c0_i32 = arith.constant 0 : i32
    %c0_i32_0 = arith.constant 0 : i32
    %c0_i32_1 = arith.constant 0 : i32
    %c0_i32_2 = arith.constant 0 : i32
    return %c0_i32, %c0_i32_0, %c0_i32_1 : i32, i32, i32
  }
  func.func @transform_4(%arg0: i32) -> (i32, i32, i32) {
    %c0_i32 = arith.constant 0 : i32
    %c0_i32_0 = arith.constant 0 : i32
    %c0_i32_1 = arith.constant 0 : i32
    %c0_i32_2 = arith.constant 0 : i32
    return %c0_i32, %c0_i32_0, %c0_i32_1 : i32, i32, i32
  }
  func.func @transform_5(%arg0: i32) -> (i32, i32, i32) {
    %c0_i32 = arith.constant 0 : i32
    %c0_i32_0 = arith.constant 0 : i32
    %c0_i32_1 = arith.constant 0 : i32
    %c0_i32_2 = arith.constant 0 : i32
    return %c0_i32, %c0_i32_0, %c0_i32_1 : i32, i32, i32
  }
  func.func @transform_6(%arg0: i32) -> (i32, i32, i32) {
    %c0_i32 = arith.constant 0 : i32
    %c0_i32_0 = arith.constant 0 : i32
    %c0_i32_1 = arith.constant 0 : i32
    %c0_i32_2 = arith.constant 0 : i32
    return %c0_i32, %c0_i32_0, %c0_i32_1 : i32, i32, i32
  }
  func.func @transform_7(%arg0: i32) -> (i32, i32, i32) {
    %c0_i32 = arith.constant 0 : i32
    %c0_i32_0 = arith.constant 0 : i32
    %c0_i32_1 = arith.constant 0 : i32
    %c0_i32_2 = arith.constant 0 : i32
    return %c0_i32, %c0_i32_0, %c0_i32_1 : i32, i32, i32
  }
  func.func @transform_8(%arg0: i32) -> (i32, i32, i32) {
    %c0_i32 = arith.constant 0 : i32
    %c0_i32_0 = arith.constant 0 : i32
    %c0_i32_1 = arith.constant 0 : i32
    %c0_i32_2 = arith.constant 0 : i32
    return %c0_i32, %c0_i32_0, %c0_i32_1 : i32, i32, i32
  }
  func.func @transform_9(%arg0: i32) -> (i32, i32) {
    %c0_i32 = arith.constant 0 : i32
    %c0_i32_0 = arith.constant 0 : i32
    %c0_i32_1 = arith.constant 0 : i32
    return %c0_i32, %c0_i32_0 : i32, i32
  }
  func.func @transform_10(%arg0: i32) -> (i32, i32) {
    %c0_i32 = arith.constant 0 : i32
    %c0_i32_0 = arith.constant 0 : i32
    %c0_i32_1 = arith.constant 0 : i32
    return %c0_i32, %c0_i32_0 : i32, i32
  }
  func.func @transform_11(%arg0: i32) -> (i32, i32) {
    %c0_i32 = arith.constant 0 : i32
    %c0_i32_0 = arith.constant 0 : i32
    %c0_i32_1 = arith.constant 0 : i32
    return %c0_i32, %c0_i32_0 : i32, i32
  }
  func.func @transform_12(%arg0: i32) -> (i32, i32) {
    %c0_i32 = arith.constant 0 : i32
    %c0_i32_0 = arith.constant 0 : i32
    %c0_i32_1 = arith.constant 0 : i32
    return %c0_i32, %c0_i32_0 : i32, i32
  }
  func.func @transform_13(%arg0: i32) -> (i32, i32) {
    %c0_i32 = arith.constant 0 : i32
    %c0_i32_0 = arith.constant 0 : i32
    %c0_i32_1 = arith.constant 0 : i32
    return %c0_i32, %c0_i32_0 : i32, i32
  }
  func.func @transform_14(%arg0: i32) -> (i32, i32) {
    %c0_i32 = arith.constant 0 : i32
    %c0_i32_0 = arith.constant 0 : i32
    %c0_i32_1 = arith.constant 0 : i32
    return %c0_i32, %c0_i32_0 : i32, i32
  }
  func.func @transform_15(%arg0: i32) -> (i32, i32) {
    %c0_i32 = arith.constant 0 : i32
    %c0_i32_0 = arith.constant 0 : i32
    %c0_i32_1 = arith.constant 0 : i32
    return %c0_i32, %c0_i32_0 : i32, i32
  }
  func.func @transform_16(%arg0: i32) -> (i32, i32) {
    %c0_i32 = arith.constant 0 : i32
    %c0_i32_0 = arith.constant 0 : i32
    %c0_i32_1 = arith.constant 0 : i32
    return %c0_i32, %c0_i32_0 : i32, i32
  }
  func.func @transform_17(%arg0: i32) -> (i32, i32) {
    %c0_i32 = arith.constant 0 : i32
    %c0_i32_0 = arith.constant 0 : i32
    %c0_i32_1 = arith.constant 0 : i32
    return %c0_i32, %c0_i32_0 : i32, i32
  }
  func.func @transform_18(%arg0: i32) -> (i32, i32) {
    %c0_i32 = arith.constant 0 : i32
    %c0_i32_0 = arith.constant 0 : i32
    %c0_i32_1 = arith.constant 0 : i32
    return %c0_i32, %c0_i32_0 : i32, i32
  }
  func.func @transform_19(%arg0: i32) -> (i32, i32) {
    %c0_i32 = arith.constant 0 : i32
    %c0_i32_0 = arith.constant 0 : i32
    %c0_i32_1 = arith.constant 0 : i32
    return %c0_i32, %c0_i32_0 : i32, i32
  }
  func.func @transform_20(%arg0: i32) -> (i32, i32) {
    %c0_i32 = arith.constant 0 : i32
    %c0_i32_0 = arith.constant 0 : i32
    %c0_i32_1 = arith.constant 0 : i32
    return %c0_i32, %c0_i32_0 : i32, i32
  }
  func.func @transform_21(%arg0: i32) -> (i32, i32) {
    %c0_i32 = arith.constant 0 : i32
    %c0_i32_0 = arith.constant 0 : i32
    %c0_i32_1 = arith.constant 0 : i32
    return %c0_i32, %c0_i32_0 : i32, i32
  }
  func.func @transform_22(%arg0: i32) -> (i32, i32) {
    %c0_i32 = arith.constant 0 : i32
    %c0_i32_0 = arith.constant 0 : i32
    %c0_i32_1 = arith.constant 0 : i32
    return %c0_i32, %c0_i32_0 : i32, i32
  }
  func.func @transform_23(%arg0: i32) -> (i32, i32) {
    %c0_i32 = arith.constant 0 : i32
    %c0_i32_0 = arith.constant 0 : i32
    %c0_i32_1 = arith.constant 0 : i32
    return %c0_i32, %c0_i32_0 : i32, i32
  }
  func.func @transform_24(%arg0: i32) -> (i32, i32) {
    %c0_i32 = arith.constant 0 : i32
    %c0_i32_0 = arith.constant 0 : i32
    %c0_i32_1 = arith.constant 0 : i32
    return %c0_i32, %c0_i32_0 : i32, i32
  }
}

</mosaic_0001>

<bundles_post_ra>
// kernel: _lambda_.1
= control target key start
LH: loop header
LB: loop body
LE: loop exit
PB: predicated region body
PF: predicated region fallthrough
CT: control target
= control target key end

     0   :  { %s6760_s0 = inlined_call_operand.vmem [shape: bf16[2,16,32], index: 0, kind: input, shape index: {}]   ;;  %s6761_s1 = inlined_call_operand.vmem [shape: f32[2,16,1], index: 1, kind: input, shape index: {}]   ;;  %s6762_s2 = inlined_call_operand.vmem [shape: s8[1,16,16], index: 2, kind: input, shape index: {}]   ;;  %s6763_s3 = inlined_call_operand.vmem [shape: bf16[2,32,512], index: 3, kind: input, shape index: {}]   ;;  %s6764_s4 = inlined_call_operand.hbm [shape: f32[2,1,512], index: 4, kind: input, shape index: {}]   ;;  %s6765_s5 = inlined_call_operand.vmem [shape: bf16[2,512,16], index: 5, kind: input, shape index: {}]   ;;  %s6766_s6 = inlined_call_operand.hbm [shape: f32[2,1,16], index: 6, kind: input, shape index: {}]   ;;  %s6767_s7 = inlined_call_operand.hbm [shape: bf16[2,16,128], index: 7, kind: input, shape index: {}]   ;;  %s6768_s8 = inlined_call_operand.hbm [shape: f32[2,1,128], index: 8, kind: input, shape index: {}]   ;;  %s6769_s9 = inlined_call_operand.hbm [shape: bf16[128,48], index: 9, kind: input, shape index: {}]   ;;  %s6770_s10 = inlined_call_operand.hbm [shape: bf16[48,3], index: 10, kind: input, shape index: {}]   ;;  %s6771_s11 = inlined_call_operand.hbm [shape: bf16[3,48], index: 11, kind: input, shape index: {}]   ;;  %s6772_s12 = inlined_call_operand.hbm [shape: f32[1,48], index: 12, kind: input, shape index: {}]   ;;  %s6773_s13 = inlined_call_operand.hbm [shape: f32[1,48], index: 13, kind: input, shape index: {}]   ;;  %s6774_s14 = inlined_call_operand.vmem [shape: bf16[48,48], index: 14, kind: input, shape index: {}]   ;;  %s6775_s15 = inlined_call_operand.vmem [shape: bf16[48,3], index: 15, kind: input, shape index: {}]   ;;  %s6776_s16 = inlined_call_operand.hbm [shape: bf16[3,48], index: 16, kind: input, shape index: {}]   ;;  %s6777_s17 = inlined_call_operand.hbm [shape: f32[1,48], index: 17, kind: input, shape index: {}]   ;;  %s6778_s18 = inlined_call_operand.hbm [shape: f32[1,48], index: 18, kind: input, shape index: {}]   ;;  %s6779_s19 = inlined_call_operand.vmem [shape: bf16[48,384], index: 19, kind: input, shape index: {}]   ;;  %s6780_s20 = inlined_call_operand.vmem [shape: bf16[384,3], index: 20, kind: input, shape index: {}]   ;;  %s6781_s21 = inlined_call_operand.hbm [shape: bf16[3,384], index: 21, kind: input, shape index: {}]   ;;  %s6782_s22 = inlined_call_operand.vmem [shape: f32[1,128], index: 22, kind: input, shape index: {}]   ;;  %s6783_s23 = inlined_call_operand.vmem [shape: f32[1,128], index: 23, kind: input, shape index: {}]   ;;  %s6784_s24 = inlined_call_operand.vmem [shape: f32[16,128], index: 24, kind: output, shape index: {}]  }
   0x1   :  { %6814 = sst [smem:[#allocation29_spill]] %s6760_s0 }
   0x2   :  { %6815 = sst [smem:[#allocation30_spill]] %s6761_s1 }
   0x3   :  { %6816 = sst [smem:[#allocation31_spill]] %s6762_s2 }
   0x4   :  { %6817 = sst [smem:[#allocation32_spill]] %s6763_s3 }
   0x5   :  { %6818 = sst [smem:[#allocation33_spill]] %s6764_s4 }
   0x6   :  { %6819 = sst [smem:[#allocation34_spill]] %s6765_s5 }
   0x7   :  { %6820 = sst [smem:[#allocation35_spill]] %s6766_s6 }
   0x8   :  { %6821 = sst [smem:[#allocation36_spill]] %s6767_s7 }
   0x9   :  { %6822 = sst [smem:[#allocation37_spill]] %s6768_s8 }
   0xa   :  { %6823 = sst [smem:[#allocation38_spill]] %s6783_s23 }
   0xb   :  { %6824 = sst [smem:[#allocation39_spill]] %s6784_s24 }
   0xc   :  { %29 = vsyncpa [#allocation3], 0 }
   0xd   :  { %30 = vsyncpa [#allocation5], 0 }
   0xe   :  { %31 = vsyncpa [#allocation8], 0 }
   0xf   :  { %32 = vsyncpa [#allocation11], 0 }
  0x10   :  { %33 = vsyncpa [#allocation14], 0 }
  0x11   :  { %34 = vsyncpa [#allocation17], 0 }
  0x12   :  { %35 = vsyncpa [#allocation20], 0  ;;  %s5075_s5 = smov [#allocation4]   ;;  %s6825_s6 = sld [smem:[#allocation35_spill]] }
  0x13   :  { %s63_s26 = sshll.u32 %s5075_s5, 4  ;;  %s64_s26 = int_to_ptr.vmem [resolvable:$true] %s63_s26 }
  0x18   :  { %s4775_s2 = scalar_lea.hbm %s6825_s6, 32 }
  0x19   :  { %p4776_p0 = scmp.ne.s32.totalorder %s6825_s6, %s4775_s2  ;;  %p4779_p1 = scmp.lt.u32.totalorder %s4775_s2, %s6825_s6 }
  0x1b   :  { %p4781_p2 = pnand %p4779_p1, %p4776_p0 }
  0x1d   :  { %4784 = shalt.err (!%p4781_p2)
}
  0x1e   :  { %s4785_s3 = scalar_lea.vmem %s64_s26, 32  ;;  %p4790_p4 = scmp.lt.s32.totalorder %s64_s26, %s64_s26 }
  0x1f   :  { %p4786_p3 = scmp.ne.s32.totalorder %s64_s26, %s4785_s3  ;;  %p4791_p5 = scmp.lt.s32.totalorder %s4785_s3, %s4785_s3 }
  0x21   :  { %p4792_p6 = por %p4791_p5, %p4790_p4 }
  0x23   :  { %p4793_p7 = pnand %p4792_p6, %p4786_p3 }
  0x25   :  { %4796 = shalt.err (!%p4793_p7)
}
  0x26   :  { %s5076_s25 = smov 16   ;;  %s5077_s8 = smov 1  }
  0x27   :  { %69 = dma.hbm_to_vmem [thread:$0]  %s6825_s6, 32, %s64_s26, [#allocation5], %s5076_s25, %s5076_s25, %s5077_s8  }
  0x28   :  { %s5078_s5 = smov [#allocation7]   ;;  %s6826_s29 = sld [smem:[#allocation37_spill]] }
  0x29   :  { %s87_s27 = sshll.u32 %s5078_s5, 4  ;;  %s88_s27 = int_to_ptr.vmem [resolvable:$true] %s87_s27 }
  0x2e   :  { %s4797_s0 = scalar_lea.hbm %s6826_s29, 32 }
  0x2f   :  { %p4798_p8 = scmp.ne.s32.totalorder %s6826_s29, %s4797_s0  ;;  %p4801_p9 = scmp.lt.u32.totalorder %s4797_s0, %s6826_s29 }
  0x31   :  { %p4803_p10 = pnand %p4801_p9, %p4798_p8 }
  0x33   :  { %4806 = shalt.err (!%p4803_p10)
}
  0x34   :  { %s4807_s23 = scalar_lea.vmem %s88_s27, 32  ;;  %p4812_p12 = scmp.lt.s32.totalorder %s88_s27, %s88_s27 }
  0x35   :  { %p4808_p11 = scmp.ne.s32.totalorder %s88_s27, %s4807_s23  ;;  %p4813_p13 = scmp.lt.s32.totalorder %s4807_s23, %s4807_s23 }
  0x37   :  { %p4814_p0 = por %p4813_p13, %p4812_p12 }
  0x39   :  { %p4815_p1 = pnand %p4814_p0, %p4808_p11 }
  0x3b   :  { %4818 = shalt.err (!%p4815_p1)
}
  0x3c   :  { %93 = dma.hbm_to_vmem [thread:$0]  %s6826_s29, 32, %s88_s27, [#allocation8], %s5076_s25, %s5076_s25, %s5077_s8  }
  0x3d   :  { %s5079_s4 = smov [#allocation10]   ;;  %s5080_s5 = smov [#allocation13]  }
  0x3e   :  { %s111_s1 = sshll.u32 %s5079_s4, 4  ;;  %s134_s24 = sshll.u32 %s5080_s5, 4  ;;  %s112_s1 = int_to_ptr.vmem [resolvable:$true] %s111_s1  ;;  %s5255_s24 = int_to_ptr.vmem [resolvable:$true] %s134_s24 }
  0x3f   :  { %s4819_s23 = scalar_lea.hbm %s6770_s10, 384 }
  0x40   :  { %p4820_p2 = scmp.ne.s32.totalorder %s6770_s10, %s4819_s23  ;;  %p4823_p3 = scmp.lt.u32.totalorder %s4819_s23, %s6770_s10 }
  0x42   :  { %p4825_p4 = pnand %p4823_p3, %p4820_p2 }
  0x44   :  { %4828 = shalt.err (!%p4825_p4)
}
  0x45   :  { %s4829_s8 = scalar_lea.vmem %s112_s1, 384  ;;  %p4834_p6 = scmp.lt.s32.totalorder %s112_s1, %s112_s1 }
  0x46   :  { %p4830_p5 = scmp.ne.s32.totalorder %s112_s1, %s4829_s8  ;;  %p4835_p7 = scmp.lt.s32.totalorder %s4829_s8, %s4829_s8 }
  0x48   :  { %p4836_p8 = por %p4835_p7, %p4834_p6 }
  0x4a   :  { %p4837_p9 = pnand %p4836_p8, %p4830_p5 }
  0x4c   :  { %4840 = shalt.err (!%p4837_p9)
}
  0x4d   :  { %s5081_s27 = smov 64   ;;  %s5082_s29 = smov 4  }
  0x4e   :  { %117 = dma.hbm_to_vmem [thread:$0]  %s6770_s10, 384, %s112_s1, [#allocation11], %s5081_s27, %s5081_s27, %s5082_s29  }
  0x4f   :  { %s4841_s28 = scalar_lea.hbm %s6772_s12, 16 }
  0x50   :  { %p4842_p10 = scmp.ne.s32.totalorder %s6772_s12, %s4841_s28  ;;  %p4845_p11 = scmp.lt.u32.totalorder %s4841_s28, %s6772_s12 }
  0x52   :  { %p4847_p12 = pnand %p4845_p11, %p4842_p10 }
  0x54   :  { %4850 = shalt.err (!%p4847_p12)
}
  0x55   :  { %s4851_s30 = scalar_lea.vmem %s5255_s24, 16  ;;  %s4855_s10 = scalar_lea.vmem %s5255_s24, 32 }
  0x56   :  { %p4852_p13 = scmp.ne.s32.totalorder %s5255_s24, %s4851_s30  ;;  %p4856_p0 = scmp.lt.s32.totalorder %s5255_s24, %s5255_s24 }
  0x57   :  { %p4857_p1 = scmp.lt.s32.totalorder %s4855_s10, %s4851_s30 }
  0x59   :  { %p4858_p2 = por %p4857_p1, %p4856_p0 }
  0x5b   :  { %p4859_p3 = pnand %p4858_p2, %p4852_p13 }
  0x5d   :  { %4862 = shalt.err (!%p4859_p3)
}
  0x5e   :  { %137 = dma.hbm_to_vmem [thread:$0]  %s6772_s12, 16, %s5255_s24, [#allocation14]  }
  0x5f   :  { %s5083_s8 = smov [#allocation16]   ;;  %s5084_s6 = smov [#allocation19]  }
  0x60   :  { %s158_s26 = sshll.u32 %s5083_s8, 4  ;;  %s178_s4 = sshll.u32 %s5084_s6, 4  ;;  %s159_s26 = int_to_ptr.vmem [resolvable:$true] %s158_s26  ;;  %s179_s4 = int_to_ptr.vmem [resolvable:$true] %s178_s4 }
  0x61   :  { %s4863_s2 = scalar_lea.hbm %s6776_s16, 32 }
  0x62   :  { %p4864_p4 = scmp.ne.s32.totalorder %s6776_s16, %s4863_s2  ;;  %p4867_p5 = scmp.lt.u32.totalorder %s4863_s2, %s6776_s16 }
  0x64   :  { %p4869_p6 = pnand %p4867_p5, %p4864_p4 }
  0x66   :  { %4872 = shalt.err (!%p4869_p6)
}
  0x67   :  { %s4873_s12 = scalar_lea.vmem %s159_s26, 32  ;;  %p4878_p8 = scmp.lt.s32.totalorder %s159_s26, %s159_s26 }
  0x68   :  { %p4874_p7 = scmp.ne.s32.totalorder %s159_s26, %s4873_s12  ;;  %p4879_p9 = scmp.lt.s32.totalorder %s4873_s12, %s4873_s12 }
  0x6a   :  { %p4880_p10 = por %p4879_p9, %p4878_p8 }
  0x6c   :  { %p4881_p11 = pnand %p4880_p10, %p4874_p7 }
  0x6e   :  { %4884 = shalt.err (!%p4881_p11)
}
  0x6f   :  { %161 = dma.hbm_to_vmem [thread:$0]  %s6776_s16, 32, %s159_s26, [#allocation17]  }
  0x70   :  { %s4885_s8 = scalar_lea.hbm %s6778_s18, 16 }
  0x71   :  { %p4886_p12 = scmp.ne.s32.totalorder %s6778_s18, %s4885_s8  ;;  %p4889_p13 = scmp.lt.u32.totalorder %s4885_s8, %s6778_s18 }
  0x73   :  { %p4891_p0 = pnand %p4889_p13, %p4886_p12 }
  0x75   :  { %4894 = shalt.err (!%p4891_p0)
}
  0x76   :  { %s4895_s23 = scalar_lea.vmem %s179_s4, 16  ;;  %s4899_s0 = scalar_lea.vmem %s179_s4, 32 }
  0x77   :  { %p4896_p1 = scmp.ne.s32.totalorder %s179_s4, %s4895_s23  ;;  %p4900_p2 = scmp.lt.s32.totalorder %s179_s4, %s179_s4 }
  0x78   :  { %p4901_p3 = scmp.lt.s32.totalorder %s4899_s0, %s4895_s23 }
  0x7a   :  { %p4902_p4 = por %p4901_p3, %p4900_p2 }
  0x7c   :  { %p4903_p5 = pnand %p4902_p4, %p4896_p1 }
  0x7e   :  { %4906 = shalt.err (!%p4903_p5)
}
  0x7f   :  { %181 = dma.hbm_to_vmem [thread:$0]  %s6778_s18, 16, %s179_s4, [#allocation20]  }
  0x80   :  { %s5085_s7 = smov [#allocation2]   ;;  %s5086_s12 = smov [#allocation6]  }
  0x81   :  { %s49_s30 = sshll.u32 %s5085_s7, 4  ;;  %s75_s24 = sshll.u32 %s5086_s12, 4  ;;  %s50_s30 = int_to_ptr.vmem [resolvable:$true] %s49_s30  ;;  %s5314_s24 = int_to_ptr.vmem [resolvable:$true] %s75_s24 }
  0x82   :  { %s6827_s3 = sld [smem:[#allocation33_spill]] }
  0x88   :  { %s4907_s8 = scalar_lea.hbm %s6827_s3, 128 }
  0x89   :  { %p4908_p6 = scmp.ne.s32.totalorder %s6827_s3, %s4907_s8  ;;  %p4911_p7 = scmp.lt.u32.totalorder %s4907_s8, %s6827_s3 }
  0x8b   :  { %p4913_p8 = pnand %p4911_p7, %p4908_p6 }
  0x8d   :  { %4916 = shalt.err (!%p4913_p8)
}
  0x8e   :  { %s4917_s18 = scalar_lea.vmem %s50_s30, 128  ;;  %p4922_p10 = scmp.lt.s32.totalorder %s50_s30, %s50_s30 }
  0x8f   :  { %p4918_p9 = scmp.ne.s32.totalorder %s50_s30, %s4917_s18  ;;  %p4923_p11 = scmp.lt.s32.totalorder %s4917_s18, %s4917_s18 }
  0x91   :  { %p4924_p12 = por %p4923_p11, %p4922_p10 }
  0x93   :  { %p4925_p13 = pnand %p4924_p12, %p4918_p9 }
  0x95   :  { %4928 = shalt.err (!%p4925_p13)
}
  0x96   :  { %55 = dma.hbm_to_vmem [thread:$0]  %s6827_s3, 128, %s50_s30, [#allocation3], %s5081_s27, %s5081_s27, %s5082_s29  }
  0x97   :  { %s6828_s26 = sld [smem:[#allocation36_spill]] }
  0x9d   :  { %s4929_s7 = scalar_lea.hbm %s6828_s26, 256 }
  0x9e   :  { %p4930_p0 = scmp.ne.s32.totalorder %s6828_s26, %s4929_s7  ;;  %p4933_p1 = scmp.lt.u32.totalorder %s4929_s7, %s6828_s26 }
  0xa0   :  { %p4935_p2 = pnand %p4933_p1, %p4930_p0 }
  0xa2   :  { %4938 = shalt.err (!%p4935_p2)
}
  0xa3   :  { %s4939_s6 = scalar_lea.vmem %s5314_s24, 256  ;;  %p4944_p4 = scmp.lt.s32.totalorder %s5314_s24, %s5314_s24 }
  0xa4   :  { %p4940_p3 = scmp.ne.s32.totalorder %s5314_s24, %s4939_s6  ;;  %p4945_p5 = scmp.lt.s32.totalorder %s4939_s6, %s4939_s6 }
  0xa6   :  { %p4946_p6 = por %p4945_p5, %p4944_p4 }
  0xa8   :  { %p4947_p7 = pnand %p4946_p6, %p4940_p3 }
  0xaa   :  { %4950 = shalt.err (!%p4947_p7)
}
  0xab   :  { %81 = dma.hbm_to_vmem [thread:$0]  %s6828_s26, 256, %s5314_s24, [#allocation5], %s5081_s27, %s5081_s27, %s5082_s29  }
  0xac   :  { %s5087_s5 = smov [#allocation9]   ;;  %s5088_s2 = smov [#allocation12]  }
  0xad   :  { %s99_s28 = sshll.u32 %s5087_s5, 4  ;;  %s124_s18 = sshll.u32 %s5088_s2, 4  ;;  %s100_s28 = int_to_ptr.vmem [resolvable:$true] %s99_s28  ;;  %s125_s18 = int_to_ptr.vmem [resolvable:$true] %s124_s18 }
  0xae   :  { %s4951_s0 = scalar_lea.hbm %s6769_s9, 1024 }
  0xaf   :  { %p4952_p8 = scmp.ne.s32.totalorder %s6769_s9, %s4951_s0  ;;  %p4955_p9 = scmp.lt.u32.totalorder %s4951_s0, %s6769_s9 }
  0xb1   :  { %p4957_p10 = pnand %p4955_p9, %p4952_p8 }
  0xb3   :  { %4960 = shalt.err (!%p4957_p10)
}
  0xb4   :  { %s4961_s24 = scalar_lea.vmem %s100_s28, 1024  ;;  %p4966_p12 = scmp.lt.s32.totalorder %s100_s28, %s100_s28 }
  0xb5   :  { %p4962_p11 = scmp.ne.s32.totalorder %s100_s28, %s4961_s24  ;;  %p4967_p13 = scmp.lt.s32.totalorder %s4961_s24, %s4961_s24 }
  0xb7   :  { %p4968_p0 = por %p4967_p13, %p4966_p12 }
  0xb9   :  { %p4969_p1 = pnand %p4968_p0, %p4962_p11 }
  0xbb   :  { %4972 = shalt.err (!%p4969_p1)
}
  0xbc   :  { %105 = dma.hbm_to_vmem [thread:$0]  %s6769_s9, 1024, %s100_s28, [#allocation8], %s5081_s27, %s5081_s27, %s5082_s29  }
  0xbd   :  { %s4973_s30 = scalar_lea.hbm %s6771_s11, 32 }
  0xbe   :  { %p4974_p2 = scmp.ne.s32.totalorder %s6771_s11, %s4973_s30  ;;  %p4977_p3 = scmp.lt.u32.totalorder %s4973_s30, %s6771_s11 }
  0xc0   :  { %p4979_p4 = pnand %p4977_p3, %p4974_p2 }
  0xc2   :  { %4982 = shalt.err (!%p4979_p4)
}
  0xc3   :  { %s4983_s23 = scalar_lea.vmem %s125_s18, 32  ;;  %p4988_p6 = scmp.lt.s32.totalorder %s125_s18, %s125_s18 }
  0xc4   :  { %p4984_p5 = scmp.ne.s32.totalorder %s125_s18, %s4983_s23  ;;  %p4989_p7 = scmp.lt.s32.totalorder %s4983_s23, %s4983_s23 }
  0xc6   :  { %p4990_p8 = por %p4989_p7, %p4988_p6 }
  0xc8   :  { %p4991_p9 = pnand %p4990_p8, %p4984_p5 }
  0xca   :  { %4994 = shalt.err (!%p4991_p9)
}
  0xcb   :  { %127 = dma.hbm_to_vmem [thread:$0]  %s6771_s11, 32, %s125_s18, [#allocation11]  }
  0xcc   :  { %s5089_s29 = smov [#allocation15]   ;;  %s5090_s0 = smov [#allocation18]  }
  0xcd   :  { %s144_s28 = sshll.u32 %s5089_s29, 4  ;;  %s168_s16 = sshll.u32 %s5090_s0, 4  ;;  %s145_s28 = int_to_ptr.vmem [resolvable:$true] %s144_s28  ;;  %s169_s16 = int_to_ptr.vmem [resolvable:$true] %s168_s16 }
  0xce   :  { %s4995_s10 = scalar_lea.hbm %s6773_s13, 16 }
  0xcf   :  { %p4996_p10 = scmp.ne.s32.totalorder %s6773_s13, %s4995_s10  ;;  %p4999_p11 = scmp.lt.u32.totalorder %s4995_s10, %s6773_s13 }
  0xd1   :  { %p5001_p12 = pnand %p4999_p11, %p4996_p10 }
  0xd3   :  { %5004 = shalt.err (!%p5001_p12)
}
  0xd4   :  { %s5005_s11 = scalar_lea.vmem %s145_s28, 16  ;;  %s5009_s18 = scalar_lea.vmem %s145_s28, 32 }
  0xd5   :  { %p5006_p13 = scmp.ne.s32.totalorder %s145_s28, %s5005_s11  ;;  %p5010_p0 = scmp.lt.s32.totalorder %s145_s28, %s145_s28 }
  0xd6   :  { %p5011_p1 = scmp.lt.s32.totalorder %s5009_s18, %s5005_s11 }
  0xd8   :  { %p5012_p2 = por %p5011_p1, %p5010_p0 }
  0xda   :  { %p5013_p3 = pnand %p5012_p2, %p5006_p13 }
  0xdc   :  { %5016 = shalt.err (!%p5013_p3)
}
  0xdd   :  { %147 = dma.hbm_to_vmem [thread:$0]  %s6773_s13, 16, %s145_s28, [#allocation14]  }
  0xde   :  { %s5017_s2 = scalar_lea.hbm %s6777_s17, 16 }
  0xdf   :  { %p5018_p4 = scmp.ne.s32.totalorder %s6777_s17, %s5017_s2  ;;  %p5021_p5 = scmp.lt.u32.totalorder %s5017_s2, %s6777_s17 }
  0xe1   :  { %p5023_p6 = pnand %p5021_p5, %p5018_p4 }
  0xe3   :  { %5026 = shalt.err (!%p5023_p6)
}
  0xe4   :  { %s5027_s29 = scalar_lea.vmem %s169_s16, 16  ;;  %s5031_s0 = scalar_lea.vmem %s169_s16, 32 }
  0xe5   :  { %p5028_p7 = scmp.ne.s32.totalorder %s169_s16, %s5027_s29  ;;  %p5032_p8 = scmp.lt.s32.totalorder %s169_s16, %s169_s16 }
  0xe6   :  { %p5033_p9 = scmp.lt.s32.totalorder %s5031_s0, %s5027_s29 }
  0xe8   :  { %p5034_p10 = por %p5033_p9, %p5032_p8 }
  0xea   :  { %p5035_p11 = pnand %p5034_p10, %p5028_p7 }
  0xec   :  { %5038 = shalt.err (!%p5035_p11)
}
  0xed   :  { %171 = dma.hbm_to_vmem [thread:$0]  %s6777_s17, 16, %s169_s16, [#allocation17]  }
  0xee   :  { %s5091_s7 = smov [#allocation21]   ;;  %s5039_s26 = scalar_lea.hbm %s6781_s21, 96 }
  0xef   :  { %s192_s12 = sshll.u32 %s5091_s7, 4  ;;  %p5040_p12 = scmp.ne.s32.totalorder %s6781_s21, %s5039_s26  ;;  %s193_s12 = int_to_ptr.vmem [resolvable:$true] %s192_s12 }
  0xf0   :  { %p5043_p13 = scmp.lt.u32.totalorder %s5039_s26, %s6781_s21 }
  0xf2   :  { %p5045_p0 = pnand %p5043_p13, %p5040_p12 }
  0xf4   :  { %5048 = shalt.err (!%p5045_p0)
}
  0xf5   :  { %s5049_s6 = scalar_lea.vmem %s193_s12, 96  ;;  %p5054_p2 = scmp.lt.s32.totalorder %s193_s12, %s193_s12 }
  0xf6   :  { %p5050_p1 = scmp.ne.s32.totalorder %s193_s12, %s5049_s6  ;;  %p5055_p3 = scmp.lt.s32.totalorder %s5049_s6, %s5049_s6 }
  0xf8   :  { %p5056_p4 = por %p5055_p3, %p5054_p2 }
  0xfa   :  { %p5057_p5 = pnand %p5056_p4, %p5050_p1 }
  0xfc   :  { %5060 = shalt.err (!%p5057_p5)
}
  0xfd   :  { %195 = dma.hbm_to_vmem [thread:$0]  %s6781_s21, 96, %s193_s12, [#allocation20]  }
  0xfe   :  { %5061 = dma.done.wait [#allocation3], 128  }
  0xff   :  { %5062 = vsyncadd [#allocation3], 4294967168 }
 0x100   :  { %5063 = dma.done.wait [#allocation5], 288  }
 0x101   :  { %5064 = vsyncadd [#allocation5], 4294967008 }
 0x102   :  { %5065 = dma.done.wait [#allocation8], 1056  }
 0x103   :  { %5066 = vsyncadd [#allocation8], 4294966240 }
 0x104   :  { %5067 = dma.done.wait [#allocation11], 416  }
 0x105   :  { %5068 = vsyncadd [#allocation11], 4294966880 }
 0x106   :  { %5069 = dma.done.wait [#allocation14], 32  }
 0x107   :  { %5070 = vsyncadd [#allocation14], 4294967264 }
 0x108   :  { %5071 = dma.done.wait [#allocation17], 48  }
 0x109   :  { %5072 = vsyncadd [#allocation17], 4294967248 }
 0x10a   :  { %5073 = dma.done.wait [#allocation20], 112  }
 0x10b   :  { %5074 = vsyncadd [#allocation20], 4294967184  ;;  %v5092_v0 = vmov 0   ;;  %s6829_s3 = sld [smem:[#allocation32_spill]]  ;;  %s6830_s8 = sld [smem:[#allocation29_spill]]  ;;  %vm6794_vm0 = vcmask 261120   ;;  %v252_v42 = vlaneseq }
 0x10c   :  { %353 = vmatprep.mubr.bf16.mxu0 %v5092_v0  ;;  %396 = vmatprep.mubr.bf16.mxu1 %v5092_v0  ;;  %s6831_s6 = sld [smem:[#allocation34_spill]]  ;;  %v250_v47 = vld [vmem:[#allocation2] sm:$0xf]  ;;  %vm6798_vm1 = vmmov 0   ;;  %s6832_s29 = sld [smem:[#allocation30_spill]]  ;;  %vm835_vm2 = vcmask 7168  }
 0x10d   :  { %4539 = vset.pattern.permute.xlu1 %v5092_v0  ;;  %4540 = vset.pattern.permute.xlu0 %v5092_v0  ;;  %v5543_v43 = vshrl.u32 %v252_v42, 7  ;;  %vm6795_vm5 = vcmask 130048   ;;  %s6875_s26 = sld [smem:[#allocation31_spill]]  ;;  %s5098_s1 = smov 112  }
 0x10e   :  { %s5099_s11 = smov 96   ;;  %s6927_s18 = sld [smem:[#allocation39_spill]] }
 0x10f   :  { %v5546_v44 = vsub.s32 2, %v5543_v43  ;;  %v5549_v45 = vsub.s32 3, %v5543_v43  ;;  %v5552_v46 = vsub.s32 0, %v5543_v43  ;;  %v5555_v48 = vsub.s32 1, %v5543_v43 }
 0x110   :  { %vm6800_vm8 = vcmp.gt.s32.totalorder %v5543_v43, 0  ;;  %vm6801_vm9 = vcmp.gt.s32.totalorder %v5543_v43, 1  ;;  %vm6802_vm10 = vcmp.gt.s32.totalorder %v5543_v43, 2 }
 0x111   :  { %v4557_v1 = vld [vmem:[%s6829_s3 + $0x4] ss:$16 sps:$4 sm:$0xff]   ;;  %v4559_v2 = vld [vmem:[%s6829_s3 + $0xc] ss:$16 sps:$4 sm:$0xff]   ;;  %v4561_v3 = vld [vmem:[%s6829_s3] ss:$16 sps:$4 sm:$0xff]   ;;  %v263_v49 = vrot.slane %v250_v47, %v5546_v44  ;;  %v267_v50 = vrot.slane %v250_v47, %v5549_v45  ;;  %v255_v51 = vrot.slane %v250_v47, %v5552_v46  ;;  %v259_v54 = vrot.slane %v250_v47, %v5555_v48 }
 0x112   :  { %321 = vmatprep.subr.bf16.mxu0 %v4557_v1  ;;  %v4562_v4 = vld [vmem:[%s6829_s3 + $0x8] ss:$16 sps:$4 sm:$0xff]   ;;  %364 = vmatprep.subr.bf16.mxu1 %v4559_v2  ;;  %v4563_v5 = vld [vmem:[%s6829_s3 + $0x24] ss:$16 sps:$4 sm:$0xff]   ;;  %v4565_v6 = vld [vmem:[%s6829_s3 + $0x2c] ss:$16 sps:$4 sm:$0xff]  }
 0x113   :  { %322 = vmatpush1.bf16.msra.mxu0 %v4561_v3  ;;  %365 = vmatpush1.bf16.msra.mxu1 %v4562_v4  ;;  %v4567_v7 = vld [vmem:[%s6829_s3 + $0x20] ss:$16 sps:$4 sm:$0xff]   ;;  %v4568_v8 = vld [vmem:[%s6829_s3 + $0x28] ss:$16 sps:$4 sm:$0xff]  }
 0x114   :  { %323 = vmatprep.subr.bf16.mxu0 %v4563_v5  ;;  %366 = vmatprep.subr.bf16.mxu1 %v4565_v6  ;;  %v4569_v9 = vld [vmem:[%s6830_s8] sm:$0xff]   ;;  %v4574_v14 = vld [vmem:[%s6831_s6 + $0x48] sm:$0xff]   ;;  %v4578_v18 = vld [vmem:[%s6831_s6 + $0x50] sm:$0xff]  }
 0x115   :  { %v4570_v10 = vld [vmem:[%s6831_s6 + $0x40] sm:$0xff]   ;;  %v4575_v15 = vld [vmem:[%s6831_s6 + $0xc8] sm:$0xff]   ;;  %v4579_v19 = vld [vmem:[%s6831_s6 + $0xd0] sm:$0xff]  }
 0x116   :  { %v4571_v11 = vld [vmem:[%s6831_s6 + $0xc0] sm:$0xff]   ;;  %v4576_v16 = vld [vmem:[%s6831_s6 + $0x8] sm:$0xff]   ;;  %v4580_v20 = vld [vmem:[%s6831_s6 + $0x10] sm:$0xff]  }
 0x117   :  { %324 = vmatpush1.bf16.msra.mxu0 %v4567_v7  ;;  %367 = vmatpush1.bf16.msra.mxu1 %v4568_v8  ;;  %v4572_v12 = vld [vmem:[%s6831_s6] sm:$0xff]   ;;  %v4577_v17 = vld [vmem:[%s6831_s6 + $0x88] sm:$0xff]   ;;  %v4581_v21 = vld [vmem:[%s6831_s6 + $0x90] sm:$0xff]  }
 0x118   :  { %4168 = vmatprep.subr.bf16.mxu0 %v4570_v10  ;;  %4190 = vmatprep.subr.bf16.mxu1 %v4571_v11  ;;  %v4573_v13 = vld [vmem:[%s6831_s6 + $0x80] sm:$0xff]   ;;  %v4582_v22 = vld [vmem:[%s6831_s6 + $0x58] sm:$0xff]   ;;  %v4590_v30 = vld [vmem:[%s6831_s6 + $0x68] sm:$0xff]  }
 0x119   :  { %v4583_v23 = vld [vmem:[%s6831_s6 + $0xd8] sm:$0xff]   ;;  %v4586_v26 = vld [vmem:[%s6831_s6 + $0x60] sm:$0xff]   ;;  %v4591_v31 = vld [vmem:[%s6831_s6 + $0xe8] sm:$0xff]  }
 0x11a   :  { %3929 = vmatmul.mubr.msk.bf16.vlgmr.msra.gmra.mrb[0].mxu0 %vm6794_vm0, %v4569_v9  ;;  %3930 = vmatmul.mubr.msk.bf16.vlgmr.msra.gmra.mrb[0].mxu1 %vm6794_vm0, %v4569_v9  ;;  %v4584_v24 = vld [vmem:[%s6831_s6 + $0x18] sm:$0xff]   ;;  %v4587_v27 = vld [vmem:[%s6831_s6 + $0xe0] sm:$0xff]   ;;  %v4592_v32 = vld [vmem:[%s6831_s6 + $0x28] sm:$0xff]  }
 0x11b   :  { %4169 = vmatpush3.bf16.msra.mxu0 %v4572_v12  ;;  %4191 = vmatpush3.bf16.msra.mxu1 %v4573_v13  ;;  %v4585_v25 = vld [vmem:[%s6831_s6 + $0x98] sm:$0xff]   ;;  %v4588_v28 = vld [vmem:[%s6831_s6 + $0x20] sm:$0xff]   ;;  %v4593_v33 = vld [vmem:[%s6831_s6 + $0xa8] sm:$0xff]  }
 0x11c   :  { %4170 = vmatprep.subr.bf16.mxu0 %v4574_v14  ;;  %4192 = vmatprep.subr.bf16.mxu1 %v4575_v15  ;;  %v4589_v29 = vld [vmem:[%s6831_s6 + $0xa0] sm:$0xff]   ;;  %v4594_v34 = vld [vmem:[%s6831_s6 + $0x70] sm:$0xff]   ;;  %v4598_v38 = vld [vmem:[%s6831_s6 + $0x78] sm:$0xff]   ;;  %v5093_v15 = vmov 0.0  }
 0x11d   :  { %v4595_v35 = vld [vmem:[%s6831_s6 + $0xf0] sm:$0xff]   ;;  %v4599_v39 = vld [vmem:[%s6831_s6 + $0xf8] sm:$0xff]   ;;  %v4628_v42 = vld [vmem:[%s6831_s6 + $0x160] sm:$0xff]  }
 0x11e   :  { %v4596_v36 = vld [vmem:[%s6831_s6 + $0x30] sm:$0xff]   ;;  %v4600_v40 = vld [vmem:[%s6831_s6 + $0x38] sm:$0xff]   ;;  %v4629_v47 = vld [vmem:[%s6831_s6 + $0x120] sm:$0xff]  }
 0x11f   :  { %4171 = vmatpush3.bf16.msra.mxu0 %v4576_v16  ;;  %4193 = vmatpush3.bf16.msra.mxu1 %v4577_v17  ;;  %v4597_v37 = vld [vmem:[%s6831_s6 + $0xb0] sm:$0xff]   ;;  %v4601_v41 = vld [vmem:[%s6831_s6 + $0xb8] sm:$0xff]   ;;  %v5578_v16 = vld [vmem:[%s6830_s8 + $0x8] sm:$0xff]  }
 0x120   :  { %4172 = vmatprep.subr.bf16.mxu0 %v4578_v18  ;;  %4194 = vmatprep.subr.bf16.mxu1 %v4579_v19  ;;  %v4604_v10 = vld [vmem:[%s6829_s3 + $0x44] ss:$16 sps:$4 sm:$0xff]   ;;  %v4602_v11 = vld [vmem:[%s6829_s3 + $0x40] ss:$16 sps:$4 sm:$0xff]   ;;  %v4612_v17 = vld [vmem:[%s6829_s3 + $0x4c] ss:$16 sps:$4 sm:$0xff]  }
 0x121   :  { %v4608_v12 = vld [vmem:[%s6829_s3 + $0x64] ss:$16 sps:$4 sm:$0xff]   ;;  %v4606_v13 = vld [vmem:[%s6829_s3 + $0x60] ss:$16 sps:$4 sm:$0xff]   ;;  %v818_v19 = vld [vmem:[%s6832_s29 + $0x8] sm:$0xff] }
 0x122   :  { %v4605_v14 = vld [vmem:[#allocation6] sm:$0xff]   ;;  %v817_v18 = vld [vmem:[%s6832_s29] sm:$0xff]  ;;  %vm820_vm4 = vcmp.gt.f32.partialorder %v818_v19, 0.0 }
 0x123   :  { %4173 = vmatpush3.bf16.msra.mxu0 %v4580_v20  ;;  %4195 = vmatpush3.bf16.msra.mxu1 %v4581_v21  ;;  %v5596_v20 = vld [vmem:[%s6832_s29 + $0x10] sm:$0xff]  ;;  %v833_v21 = vsub.f32 1.0, %v817_v18  ;;  %vm819_vm3 = vcmp.gt.f32.partialorder %v817_v18, 0.0 }
 0x124   :  { %4174 = vmatprep.subr.bf16.mxu0 %v4582_v22  ;;  %4196 = vmatprep.subr.bf16.mxu1 %v4583_v23  ;;  %v834_v22 = vsub.f32 1.0, %v818_v19  ;;  %v5601_v23 = vld [vmem:[%s6832_s29 + $0x18] sm:$0xff] }
 0x127   :  { %4175 = vmatpush3.bf16.msra.mxu0 %v4584_v24  ;;  %4197 = vmatpush3.bf16.msra.mxu1 %v4585_v25  ;;  %v1757_v24 = vsub.f32 1.0, %v5596_v20  ;;  %v1758_v25 = vsub.f32 1.0, %v5601_v23 }
 0x128   :  { %4176 = vmatprep.subr.bf16.mxu0 %v4586_v26  ;;  %4198 = vmatprep.subr.bf16.mxu1 %v4587_v27  ;;  %v821_v26 = vsel %vm819_vm3, 1, %v5092_v0  ;;  %v836_v27 = vsel %vm835_vm2, %v833_v21, 0.0 }
 0x129   :  { %824 = vperm.xlu1 %4539, %v821_v26  }
 0x12b   :  { %4177 = vmatpush3.bf16.msra.mxu0 %v4588_v28  ;;  %4199 = vmatpush3.bf16.msra.mxu1 %v4589_v29  ;;  %v837_v28 = vsel %vm835_vm2, %v834_v22, 0.0  ;;  %v1759_v29 = vsel %vm835_vm2, %v1757_v24, 0.0 }
 0x12c   :  { %4178 = vmatprep.subr.bf16.mxu0 %v4590_v30  ;;  %4200 = vmatprep.subr.bf16.mxu1 %v4591_v31  ;;  %v838_v30 = vadd.f32 %v837_v28, %v836_v27  ;;  %v1760_v31 = vsel %vm835_vm2, %v1758_v25, 0.0  ;;  %v1171_v27 = vld [vmem:[#allocation2 + $0x4] sm:$0xf] }
 0x12d   :  { %v1176_v28 = vrot.slane %v1171_v27, %v5552_v46 }
 0x12e   :  { %839 = vadd.xlane.f32.xlu0 %v838_v30 }
 0x12f   :  { %4179 = vmatpush3.bf16.msra.mxu0 %v4592_v32  ;;  %4201 = vmatpush3.bf16.msra.mxu1 %v4593_v33  ;;  %v1761_v32 = vadd.f32 %v1760_v31, %v1759_v29  ;;  %v4616_v33 = vld [vmem:[%s6831_s6 + $0x140] sm:$0xff]   ;;  %v4636_v29 = vld [vmem:[%s6831_s6 + $0x170] sm:$0xff]  }
 0x130   :  { %4180 = vmatprep.subr.bf16.mxu0 %v4594_v34  ;;  %4202 = vmatprep.subr.bf16.mxu1 %v4595_v35  ;;  %v4617_v34 = vld [vmem:[%s6831_s6 + $0x100] sm:$0xff]   ;;  %v4618_v35 = vld [vmem:[%s6831_s6 + $0x148] sm:$0xff]   ;;  %v4637_v31 = vld [vmem:[%s6831_s6 + $0x130] sm:$0xff]  }
 0x132   :  { %1762 = vadd.xlane.f32.xlu0 %v1761_v32  ;;  %v4638_v32 = vld [vmem:[%s6831_s6 + $0x1e0] sm:$0xff]  }
 0x133   :  { %4181 = vmatpush3.bf16.msra.mxu0 %v4596_v36  ;;  %4203 = vmatpush3.bf16.msra.mxu1 %v4597_v37  ;;  %v4619_v36 = vld [vmem:[%s6831_s6 + $0x108] sm:$0xff]   ;;  %v822_v37 = vsel %vm820_vm4, 1, %v5092_v0 }
 0x134   :  { %4182 = vmatprep.subr.bf16.mxu0 %v4598_v38  ;;  %4204 = vmatprep.subr.bf16.mxu1 %v4599_v39  ;;  %v4620_v38 = vld [vmem:[%s6831_s6 + $0x150] sm:$0xff]  }
 0x135   :  { %v4621_v39 = vld [vmem:[%s6831_s6 + $0x110] sm:$0xff]  }
 0x137   :  { %4183 = vmatpush3.bf16.msra.mxu0 %v4600_v40  ;;  %4205 = vmatpush3.bf16.msra.mxu1 %v4601_v41  ;;  %v4624_v40 = vld [vmem:[%s6831_s6 + $0x158] sm:$0xff]  }
 0x138   :  { %1241 = vmatprep.subr.bf16.mxu1 %v4604_v10  ;;  %4340 = vmatprep.subr.bf16.mxu0 %v5093_v15  ;;  %v4625_v41 = vld [vmem:[%s6831_s6 + $0x118] sm:$0xff]   ;;  %v4623_v10 = vld [vmem:[%s6831_s6 + $0x180] sm:$0xff]  }
 0x148   :  { %827 = vperm.xlu0 %4540, %v822_v37  }
 0x1bb   :  { %v840_v18 = vpop.xlane.xlu0 %839 }
 0x1bc   :  { %v841_v19 = vrot.slane %v840_v18, 4 }
 0x1be   :  { %v842_v21 = vadd.f32 %v841_v19, %v840_v18 }
 0x1c0   :  { %v843_v22 = vrot.slane %v842_v21, 2 }
 0x1c2   :  { %v844_v24 = vadd.f32 %v843_v22, %v842_v21  ;;  %v5796_v21 = vsub.s32 7, %v5543_v43 }
 0x1c4   :  { %v845_v25 = vrot.slane %v844_v24, 1 }
 0x1c6   :  { %v846_v26 = vadd.f32 %v845_v25, %v844_v24 }
 0x1c8   :  { %4508 = vpush %v846_v26 }
 0x1ed   :  { %v355_v52 = vpop.f32.mrb[0].mxu0  ;;  %v398_v53 = vpop.f32.mrb[0].mxu1 }
 0x1ee   :  { %v399_v55 = vadd.f32 %v398_v53, %v263_v49  ;;  %v357_v56 = vpop.f32.mrb[1].mxu0  ;;  %v400_v57 = vpop.f32.mrb[1].mxu1  ;;  %v356_v61 = vadd.f32 %v355_v52, %v255_v51  ;;  %v3931_v53 = vld [vmem:[#allocation4] ss:$0 sm:$0xff] }
 0x1ef   :  { %v401_v58 = vadd.f32 %v400_v57, %v267_v50  ;;  %v359_v59 = vpop.f32.mrb[2].mxu0  ;;  %v402_v60 = vpop.f32.mrb[2].mxu1  ;;  %v358_v3 = vadd.f32 %v357_v56, %v259_v54 }
 0x1f0   :  { %v360_v62 = vadd.f32 %v359_v59, %v255_v51  ;;  %v403_v63 = vadd.f32 %v402_v60, %v263_v49  ;;  %v361_v1 = vpop.f32.mrb[3].mxu0  ;;  %v404_v2 = vpop.f32.mrb[3].mxu1  ;;  %v4632_v49 = vld [vmem:[%s6831_s6 + $0x168] sm:$0xff]  }
 0x1f1   :  { %v362_v4 = vadd.f32 %v361_v1, %v259_v54  ;;  %v405_v5 = vadd.f32 %v404_v2, %v267_v50  ;;  %v4633_v50 = vld [vmem:[%s6831_s6 + $0x128] sm:$0xff]  }
 0x1f2   :  { %v407_v6 = vpack.c.bf16 %v360_v62, %v356_v61  ;;  %v409_v7 = vpack.c.bf16 %v403_v63, %v399_v55 }
 0x1f3   :  { %v408_v8 = vpack.c.bf16 %v362_v4, %v358_v3  ;;  %v410_v9 = vpack.c.bf16 %v405_v5, %v401_v58  ;;  %v4610_v5 = vld [vmem:[%s6829_s3 + $0x48] ss:$16 sps:$4 sm:$0xff]  }
 0x1f5   :  { %706 = vmatprep.mubr.bf16.mxu0 %v408_v8  ;;  %747 = vmatprep.mubr.bf16.mxu1 %v410_v9  ;;  %v4613_v8 = vld [vmem:[%s6829_s3 + $0x68] ss:$16 sps:$4 sm:$0xff]   ;;  %v4622_v9 = vld [vmem:[%s6831_s6 + $0x1c0] sm:$0xff]  }
 0x1f6   :  { %707 = vmatmul.mubr.bf16.vlgmr.msra.gmra.mrb[4].mxu0 %v407_v6  ;;  %748 = vmatmul.mubr.bf16.vlgmr.msra.gmra.mrb[4].mxu1 %v409_v7  ;;  %v4615_v7 = vld [vmem:[%s6829_s3 + $0x6c] ss:$16 sps:$4 sm:$0xff]   ;;  %s5100_s3 = smov 32  }
 0x1f7   :  { %1273 = vmatprep.mubr.bf16.mxu1 %v5092_v0  ;;  %1242 = vmatpush1.bf16.msra.mxu1 %v4602_v11  ;;  %v4626_v11 = vld [vmem:[%s6831_s6 + $0x1c8] sm:$0xff]  }
 0x1f8   :  { %1243 = vmatprep.subr.bf16.mxu1 %v4608_v12  ;;  %4341 = vmatpush3.bf16.msra.mxu0 %v4605_v14  ;;  %v4627_v12 = vld [vmem:[%s6831_s6 + $0x188] sm:$0xff]   ;;  %v4631_v14 = vld [vmem:[%s6831_s6 + $0x190] sm:$0xff]  }
 0x1f9   :  { %4342 = vmatprep.mubr.msk.bf16.mxu0 %vm6798_vm1, %v5093_v15  ;;  %1284 = vmatprep.subr.bf16.mxu0 %v4612_v17  ;;  %v4635_v17 = vld [vmem:[%s6831_s6 + $0x198] sm:$0xff]  }
 0x1fb   :  { %1244 = vmatpush1.bf16.msra.mxu1 %v4606_v13  ;;  %v4630_v13 = vld [vmem:[%s6831_s6 + $0x1d0] sm:$0xff]  }
 0x1fc   :  { %4214 = vmatprep.subr.bf16.mxu1 %v4616_v33 }
 0x1fe   :  { %3987 = vmatmul.mubr.msk.bf16.vlgmr.msra.gmra.mrb[8].mxu1 %vm6794_vm0, %v5578_v16 }
 0x1ff   :  { %4215 = vmatpush3.bf16.msra.mxu1 %v4617_v34  ;;  %v4639_v34 = vld [vmem:[%s6831_s6 + $0x1a0] sm:$0xff]  }
 0x200   :  { %4216 = vmatprep.subr.bf16.mxu1 %v4618_v35 }
 0x203   :  { %4217 = vmatpush3.bf16.msra.mxu1 %v4619_v36  ;;  %v1180_v36 = vrot.slane %v1171_v27, %v5555_v48 }
 0x204   :  { %4218 = vmatprep.subr.bf16.mxu1 %v4620_v38 }
 0x207   :  { %4219 = vmatpush3.bf16.msra.mxu1 %v4621_v39  ;;  %v4640_v39 = vld [vmem:[%s6831_s6 + $0x178] sm:$0xff]  }
 0x208   :  { %4220 = vmatprep.subr.bf16.mxu1 %v4624_v40 }
 0x20b   :  { %4221 = vmatpush3.bf16.msra.mxu1 %v4625_v41 }
 0x20c   :  { %4222 = vmatprep.subr.bf16.mxu1 %v4628_v42 }
 0x20f   :  { %4223 = vmatpush3.bf16.msra.mxu1 %v4629_v47  ;;  %v4641_v47 = vld [vmem:[%s6831_s6 + $0x138] sm:$0xff]  }
 0x210   :  { %4224 = vmatprep.subr.bf16.mxu1 %v4632_v49  ;;  %v4642_v49 = vld [vmem:[%s6831_s6 + $0x1e8] sm:$0xff]  }
 0x213   :  { %4225 = vmatpush3.bf16.msra.mxu1 %v4633_v50  ;;  %v4643_v50 = vld [vmem:[%s6831_s6 + $0x1a8] sm:$0xff]  }
 0x214   :  { %4226 = vmatprep.subr.bf16.mxu1 %v4636_v29 }
 0x217   :  { %4227 = vmatpush3.bf16.msra.mxu1 %v4637_v31 }
 0x218   :  { %4228 = vmatprep.subr.bf16.mxu1 %v4640_v39 }
 0x21b   :  { %4229 = vmatpush3.bf16.msra.mxu1 %v4641_v47 }
 0x21c   :  { %4346 = vmatprep.subr.bf16.mxu1 %v5093_v15 }
 0x2c9   :  { %v4184_v51 = vpop.f32.mrb[4].mxu0  ;;  %v4206_v52 = vpop.f32.mrb[4].mxu1 }
 0x2ca   :  { %v4185_v54 = vpop.f32.mrb[5].mxu0  ;;  %v4207_v55 = vpop.f32.mrb[5].mxu1 }
 0x2cb   :  { %v4186_v56 = vadd.f32 %v4185_v54, %v4184_v51  ;;  %v4208_v57 = vadd.f32 %v4207_v55, %v4206_v52  ;;  %v4187_v58 = vpop.f32.mrb[6].mxu0  ;;  %v4209_v59 = vpop.f32.mrb[6].mxu1  ;;  %v4645_v54 = vld [vmem:[%s6831_s6 + $0x1b0] sm:$0xff]   ;;  %v4646_v55 = vld [vmem:[%s6831_s6 + $0x1f8] sm:$0xff]  }
 0x2cc   :  { %v4188_v60 = vpop.f32.mrb[7].mxu0  ;;  %v4210_v61 = vpop.f32.mrb[7].mxu1 }
 0x2cd   :  { %v709_v62 = vadd.f32 %v4186_v56, %v3931_v53  ;;  %v4189_v63 = vadd.f32 %v4188_v60, %v4187_v58  ;;  %v4211_v1 = vadd.f32 %v4210_v61, %v4209_v59  ;;  %v4647_v56 = vld [vmem:[%s6831_s6 + $0x1b8] sm:$0xff]   ;;  %v5724_v58 = vpop.permute.xlu1 %824 }
 0x2ce   :  { %v3964_v59 = vld [vmem:[#allocation7] ss:$0 sm:$0xff]  ;;  %vm6797_vm6 = vcmp.eq.s32.totalorder %v5724_v58, 1 }
 0x2cf   :  { %v750_v2 = vadd.f32 %v4208_v57, %v709_v62  ;;  %v712_v3 = vadd.f32 %v4189_v63, %v3931_v53  ;;  %v4644_v53 = vld [vmem:[%s6831_s6 + $0x1f0] sm:$0xff]   ;;  %v5722_v57 = vpop.xlane.xlu0 %1762 }
 0x2d1   :  { %v753_v4 = vadd.f32 %v4211_v1, %v712_v3  ;;  %v1275_v30 = vpop.f32.mrb[8].mxu1  ;;  %v1188_v3 = vrot.slane %v1171_v27, %v5549_v45 }
 0x2d2   :  { %v1277_v33 = vpop.f32.mrb[9].mxu1  ;;  %v1276_v35 = vadd.f32 %v1275_v30, %v1176_v28 }
 0x2d3   :  { %v756_v6 = vpack.c.bf16 %v753_v4, %v750_v2  ;;  %v1279_v37 = vpop.f32.mrb[10].mxu1  ;;  %v1278_v40 = vadd.f32 %v1277_v33, %v1180_v36  ;;  %v5726_v60 = vpop.permute.xlu0 %827  ;;  %v1184_v2 = vrot.slane %v1171_v27, %v5546_v44 }
 0x2d4   :  { %v1281_v38 = vpop.f32.mrb[11].mxu1  ;;  %v1280_v41 = vadd.f32 %v1279_v37, %v1176_v28  ;;  %vm6796_vm7 = vcmp.eq.s32.totalorder %v5726_v60, 1 }
 0x2d5   :  { %4343 = vmatmul.mubr.msk.bf16.vlgmr.msra.gmra.mrb[8].mxu0 %vm6795_vm5, %v756_v6  ;;  %v1282_v42 = vadd.f32 %v1281_v38, %v1180_v36 }
 0x2d6   :  { %1285 = vmatpush1.bf16.msra.mxu0 %v4610_v5  ;;  %1316 = vmatprep.mubr.bf16.mxu0 %v5092_v0  ;;  %v1327_v51 = vpack.c.bf16 %v1280_v41, %v1276_v35 }
 0x2d7   :  { %1286 = vmatprep.subr.bf16.mxu0 %v4615_v7  ;;  %v1328_v52 = vpack.c.bf16 %v1282_v42, %v1278_v40  ;;  %v5744_v7 = vsub.s32 4, %v5543_v43 }
 0x2d9   :  { %1628 = vmatprep.mubr.bf16.mxu1 %v1328_v52 }
 0x2da   :  { %1287 = vmatpush1.bf16.msra.mxu0 %v4613_v8  ;;  %1629 = vmatmul.mubr.bf16.vlgmr.msra.gmra.mrb[12].mxu1 %v1327_v51 }
 0x2db   :  { %4236 = vmatprep.subr.bf16.mxu0 %v4622_v9  ;;  %4348 = vmatprep.mubr.msk.bf16.mxu1 %vm6798_vm1, %v5093_v15 }
 0x2dd   :  { %3988 = vmatmul.mubr.msk.bf16.vlgmr.msra.gmra.mrb[12].mxu0 %vm6794_vm0, %v5578_v16  ;;  %v4634_v16 = vld [vmem:[%s6831_s6 + $0x1d8] sm:$0xff]   ;;  %s5893_s6 = spop %4508 }
 0x2de   :  { %4237 = vmatpush3.bf16.msra.mxu0 %v4623_v10 }
 0x2df   :  { %4238 = vmatprep.subr.bf16.mxu0 %v4626_v11 }
 0x2e2   :  { %4239 = vmatpush3.bf16.msra.mxu0 %v4627_v12 }
 0x2e3   :  { %4240 = vmatprep.subr.bf16.mxu0 %v4630_v13  ;;  %v5764_v13 = vsub.s32 5, %v5543_v43 }
 0x2e6   :  { %4241 = vmatpush3.bf16.msra.mxu0 %v4631_v14 }
 0x2e7   :  { %4242 = vmatprep.subr.bf16.mxu0 %v4634_v16 }
 0x2ea   :  { %4243 = vmatpush3.bf16.msra.mxu0 %v4635_v17  ;;  %v5784_v17 = vsub.s32 6, %v5543_v43 }
 0x2eb   :  { %4244 = vmatprep.subr.bf16.mxu0 %v4638_v32 }
 0x2ee   :  { %4245 = vmatpush3.bf16.msra.mxu0 %v4639_v34 }
 0x2ef   :  { %4246 = vmatprep.subr.bf16.mxu0 %v4642_v49 }
 0x2f2   :  { %4247 = vmatpush3.bf16.msra.mxu0 %v4643_v50 }
 0x2f3   :  { %4248 = vmatprep.subr.bf16.mxu0 %v4644_v53 }
 0x2f6   :  { %4249 = vmatpush3.bf16.msra.mxu0 %v4645_v54  ;;  %v5896_v54 = vadd.s32 8, %v5543_v43 }
 0x2f7   :  { %4250 = vmatprep.subr.bf16.mxu0 %v4646_v55 }
 0x2fa   :  { %4251 = vmatpush3.bf16.msra.mxu0 %v4647_v56 }
 0x2fb   :  { %4352 = vmatprep.subr.bf16.mxu0 %v5093_v15 }
 0x3a8   :  { %v810_v61 = vpop.f32.mrb[8].mxu0 }
 0x3a9   :  { %v5729_v62 = vadd.f32 %v3964_v59, %v810_v61  ;;  %v4344_v63 = vpop.f32.mrb[9].mxu0 }
 0x3aa   :  { %v813_v1 = vpop.f32.mrb[10].mxu0  ;;  %v848_v63 = vstv %s5893_s6 }
 0x3ab   :  { %v5738_v4 = vsel %vm6797_vm6, inf, %v5729_v62  ;;  %v5740_v5 = vadd.f32 %v3964_v59, %v813_v1  ;;  %v4345_v6 = vpop.f32.mrb[11].mxu0 }
 0x3ac   :  { %v858_v8 = vrot.slane %v5738_v4, %v5552_v46  ;;  %v876_v9 = vrot.slane %v5738_v4, %v5555_v48  ;;  %v894_v10 = vrot.slane %v5738_v4, %v5546_v44  ;;  %v5760_v12 = vrot.slane %v5738_v4, %v5549_v45 }
 0x3ad   :  { %v5756_v11 = vsel %vm6796_vm7, inf, %v5740_v5  ;;  %v5777_v14 = vrot.slane %v5738_v4, %v5744_v7  ;;  %v5793_v19 = vrot.slane %v5738_v4, %v5764_v13  ;;  %v966_v38 = vrot.slane %v5738_v4, %v5784_v17 }
 0x3ae   :  { %vm859_vm12 = vcmp.lt.f32.partialorder %v858_v8, %v5738_v4  ;;  %vm860_vm13 = vcmp.lt.f32.partialorder %v858_v8, %v5756_v11  ;;  %vm861_vm14 = vcmp.eq.f32.partialorder %v858_v8, %v5738_v4  ;;  %vm862_vm15 = vcmp.eq.f32.partialorder %v858_v8, %v5756_v11 }
 0x3af   :  { %vm865_vm2 = vmand %vm861_vm14, %vm6800_vm8  ;;  %vm878_vm3 = vcmp.lt.f32.partialorder %v876_v9, %v5756_v11  ;;  %vm879_vm4 = vcmp.eq.f32.partialorder %v876_v9, %v5738_v4  ;;  %vm880_vm0 = vcmp.eq.f32.partialorder %v876_v9, %v5756_v11  ;;  %vm877_vm7 = vcmp.lt.f32.partialorder %v876_v9, %v5738_v4 }
 0x3b0   :  { %v1318_v16 = vpop.f32.mrb[12].mxu0  ;;  %vm867_vm5 = vmor %vm859_vm12, %vm865_vm2  ;;  %vm896_vm6 = vcmp.lt.f32.partialorder %v894_v10, %v5756_v11  ;;  %vm898_vm1 = vcmp.eq.f32.partialorder %v894_v10, %v5756_v11  ;;  %vm895_vm11 = vcmp.lt.f32.partialorder %v894_v10, %v5738_v4  ;;  %vm914_vm12 = vcmp.lt.f32.partialorder %v5760_v12, %v5756_v11 }
 0x3b1   :  { %v1320_v18 = vpop.f32.mrb[13].mxu0  ;;  %vm868_vm8 = vmor %vm860_vm13, %vm862_vm15  ;;  %v1319_v22 = vadd.f32 %v1318_v16, %v1184_v2  ;;  %v869_v25 = vsel %vm867_vm5, 1.0, %v5093_v15  ;;  %vm897_vm15 = vcmp.eq.f32.partialorder %v894_v10, %v5738_v4  ;;  %vm916_vm2 = vcmp.eq.f32.partialorder %v5760_v12, %v5756_v11 }
 0x3b2   :  { %v1322_v24 = vpop.f32.mrb[14].mxu0  ;;  %vm883_vm13 = vmand %vm879_vm4, %vm6801_vm9  ;;  %v1321_v26 = vadd.f32 %v1320_v18, %v1188_v3  ;;  %v870_v29 = vsel %vm868_vm8, 1.0, %v5093_v15  ;;  %vm932_vm5 = vcmp.lt.f32.partialorder %v5777_v14, %v5756_v11  ;;  %vm915_vm9 = vcmp.eq.f32.partialorder %v5760_v12, %v5738_v4 }
 0x3b3   :  { %v1323_v27 = vadd.f32 %v1322_v24, %v1184_v2  ;;  %v1324_v28 = vpop.f32.mrb[15].mxu0  ;;  %vm885_vm14 = vmor %vm877_vm7, %vm883_vm13  ;;  %vm934_vm8 = vcmp.eq.f32.partialorder %v5777_v14, %v5756_v11  ;;  %vm952_vm13 = vcmp.eq.f32.partialorder %v5793_v19, %v5756_v11  ;;  %v5843_v39 = vrot.slane %v5738_v4, %v5796_v21 }
 0x3b4   :  { %v1325_v30 = vadd.f32 %v1324_v28, %v1188_v3  ;;  %vm886_vm4 = vmor %vm878_vm3, %vm880_vm0  ;;  %v887_v31 = vsel %vm885_vm14, 1.0, %v5093_v15  ;;  %vm950_vm0 = vcmp.lt.f32.partialorder %v5793_v19, %v5756_v11  ;;  %vm913_vm14 = vcmp.lt.f32.partialorder %v5760_v12, %v5738_v4 }
 0x3b5   :  { %v1329_v32 = vpack.c.bf16 %v1323_v27, %v1319_v22  ;;  %v888_v33 = vsel %vm886_vm4, 1.0, %v5093_v15  ;;  %v889_v34 = vadd.f32 %v887_v31, %v869_v25  ;;  %vm901_vm7 = vmand %vm897_vm15, %vm6802_vm10  ;;  %vm6804_vm15 = vcmp.gt.s32.totalorder %v5543_v43, 5 }
 0x3b6   :  { %v1330_v35 = vpack.c.bf16 %v1325_v30, %v1321_v26  ;;  %v890_v36 = vadd.f32 %v888_v33, %v870_v29  ;;  %vm903_vm3 = vmor %vm895_vm11, %vm901_vm7  ;;  %vm6833_vm11 = vcmp.gt.s32.totalorder %v5543_v43, 3  ;;  %v5855_v42 = vrot.slane %v5756_v11, %v5552_v46 }
 0x3b7   :  { %vm904_vm4 = vmor %vm896_vm6, %vm898_vm1  ;;  %v905_v37 = vsel %vm903_vm3, 1.0, %v5093_v15  ;;  %vm933_vm6 = vcmp.eq.f32.partialorder %v5777_v14, %v5738_v4  ;;  %vm931_vm3 = vcmp.lt.f32.partialorder %v5777_v14, %v5738_v4  ;;  %v5865_v49 = vrot.slane %v5756_v11, %v5555_v48 }
 0x3b8   :  { %1669 = vmatprep.mubr.bf16.mxu0 %v1330_v35  ;;  %v906_v40 = vsel %vm904_vm4, 1.0, %v5093_v15  ;;  %v907_v41 = vadd.f32 %v905_v37, %v889_v34  ;;  %vm919_vm1 = vmand %vm915_vm9, %vm6833_vm11  ;;  %vm970_vm11 = vcmp.eq.f32.partialorder %v966_v38, %v5756_v11  ;;  %vm6834_vm10 = vmmov 0  }
 0x3b9   :  { %1670 = vmatmul.mubr.bf16.vlgmr.msra.gmra.mrb[16].mxu0 %v1329_v32  ;;  %v908_v47 = vadd.f32 %v906_v40, %v890_v36  ;;  %vm921_vm7 = vmor %vm913_vm14, %vm919_vm1  ;;  %vm951_vm14 = vcmp.eq.f32.partialorder %v5793_v19, %v5738_v4  ;;  %vm6835_vm4 = vcmp.gt.s32.totalorder %v5543_v43, 4  ;;  %v5891_v53 = vrot.slane %v5756_v11, %v5546_v44 }
 0x3ba   :  { %vm922_vm9 = vmor %vm914_vm12, %vm916_vm2  ;;  %v923_v50 = vsel %vm921_vm7, 1.0, %v5093_v15  ;;  %4368 = vmatprep.mubr.msk.bf16.mxu0 %vm6834_vm10, %v5093_v15  ;;  %vm988_vm2 = vcmp.eq.f32.partialorder %v5843_v39, %v5756_v11  ;;  %vm1021_vm1 = vcmp.lt.f32.partialorder %v5865_v49, %v5738_v4  ;;  %v5936_v3 = vrot.slane %v5756_v11, %v5549_v45 }
 0x3bb   :  { %v924_v51 = vsel %vm922_vm9, 1.0, %v5093_v15  ;;  %v925_v52 = vadd.f32 %v923_v50, %v907_v41  ;;  %vm937_vm12 = vmand %vm933_vm6, %vm6835_vm4  ;;  %vm949_vm6 = vcmp.lt.f32.partialorder %v5793_v19, %v5738_v4  ;;  %vm6803_vm4 = vcmp.gt.s32.totalorder %v5543_v43, 6 }
 0x3bc   :  { %v926_v55 = vadd.f32 %v924_v51, %v908_v47  ;;  %vm939_vm7 = vmor %vm931_vm3, %vm937_vm12  ;;  %vm969_vm12 = vcmp.eq.f32.partialorder %v966_v38, %v5738_v4  ;;  %v5940_v6 = vrot.slane %v5756_v11, %v5744_v7  ;;  %v5949_v10 = vrot.slane %v5756_v11, %v5764_v13 }
 0x3bd   :  { %vm940_vm9 = vmor %vm932_vm5, %vm934_vm8  ;;  %v941_v56 = vsel %vm939_vm7, 1.0, %v5093_v15  ;;  %vm967_vm8 = vcmp.lt.f32.partialorder %v966_v38, %v5738_v4  ;;  %vm1039_vm7 = vcmp.lt.f32.partialorder %v5891_v53, %v5738_v4  ;;  %v5957_v14 = vrot.slane %v5756_v11, %v5784_v17 }
 0x3be   :  { %v942_v59 = vsel %vm940_vm9, 1.0, %v5093_v15  ;;  %v943_v61 = vadd.f32 %v941_v56, %v925_v52  ;;  %vm955_vm3 = vmand %vm951_vm14, %vm6804_vm15  ;;  %vm6805_vm14 = vcmp.gt.s32.totalorder %v5896_v54, 8  ;;  %vm6837_vm15 = vcmp.lt.f32.partialorder %v5843_v39, %v5756_v11 }
 0x3bf   :  { %v944_v1 = vadd.f32 %v942_v59, %v926_v55  ;;  %vm957_vm5 = vmor %vm949_vm6, %vm955_vm3  ;;  %vm1006_vm3 = vcmp.eq.f32.partialorder %v5855_v42, %v5756_v11  ;;  %v1128_v31 = vrot.slane %v5756_v11, %v5796_v21  ;;  %v1031_v33 = vsel %vm1021_vm1, 1.0, %v5093_v15 }
 0x3c0   :  { %vm958_vm9 = vmor %vm950_vm0, %vm952_vm13  ;;  %v959_v2 = vsel %vm957_vm5, 1.0, %v5093_v15  ;;  %vm985_vm0 = vcmp.lt.f32.partialorder %v5843_v39, %v5738_v4  ;;  %vm1060_vm5 = vcmp.eq.f32.partialorder %v5936_v3, %v5756_v11  ;;  %v3967_v36 = vadd.f32 -1.0, %v848_v63 }
 0x3c1   :  { %v960_v8 = vsel %vm958_vm9, 1.0, %v5093_v15  ;;  %v961_v9 = vadd.f32 %v959_v2, %v943_v61  ;;  %vm973_vm6 = vmand %vm969_vm12, %vm6803_vm4  ;;  %vm6836_vm12 = vcmp.lt.f32.partialorder %v966_v38, %v5756_v11  ;;  %v995_v24 = vsel %vm985_vm0, 1.0, %v5093_v15 }
 0x3c2   :  { %v962_v12 = vadd.f32 %v960_v8, %v944_v1  ;;  %vm975_vm13 = vmor %vm967_vm8, %vm973_vm6  ;;  %vm1004_vm8 = vcmp.lt.f32.partialorder %v5855_v42, %v5756_v11  ;;  %vm6806_vm6 = vcmp.gt.s32.totalorder %v5896_v54, 9  ;;  %vm1042_vm0 = vcmp.eq.f32.partialorder %v5891_v53, %v5756_v11 }
 0x3c3   :  { %vm976_vm9 = vmor %vm6836_vm12, %vm970_vm11  ;;  %v977_v16 = vsel %vm975_vm13, 1.0, %v5093_v15  ;;  %vm1024_vm13 = vcmp.eq.f32.partialorder %v5865_v49, %v5756_v11  ;;  %vm6813_vm12 = vcmp.gt.s32.totalorder %v5896_v54, 10  ;;  %v1049_v38 = vsel %vm1039_vm7, 1.0, %v5093_v15 }
 0x3c4   :  { %v978_v18 = vsel %vm976_vm9, 1.0, %v5093_v15  ;;  %v979_v19 = vadd.f32 %v977_v16, %v961_v9  ;;  %vm994_vm11 = vmor %vm6837_vm15, %vm988_vm2  ;;  %vm1022_vm15 = vcmp.lt.f32.partialorder %v5865_v49, %v5756_v11  ;;  %vm1093_vm2 = vcmp.lt.f32.partialorder %v5949_v10, %v5738_v4 }
 0x3c5   :  { %v980_v22 = vadd.f32 %v978_v18, %v962_v12  ;;  %vm1010_vm9 = vmand %vm1006_vm3, %vm6805_vm14  ;;  %v996_v25 = vsel %vm994_vm11, 1.0, %v5093_v15  ;;  %vm6838_vm3 = vcmp.lt.f32.partialorder %v5855_v42, %v5738_v4  ;;  %vm1040_vm14 = vcmp.lt.f32.partialorder %v5891_v53, %v5756_v11 }
 0x3c6   :  { %v997_v26 = vadd.f32 %v995_v24, %v979_v19  ;;  %vm1012_vm4 = vmor %vm1004_vm8, %vm1010_vm9  ;;  %v1013_v28 = vsel %vm6838_vm3, 1.0, %v5093_v15  ;;  %vm6807_vm8 = vcmp.gt.s32.totalorder %v5896_v54, 11  ;;  %vm6839_vm7 = vcmp.lt.f32.partialorder %v5936_v3, %v5738_v4 }
 0x3c7   :  { %v998_v27 = vadd.f32 %v996_v25, %v980_v22  ;;  %vm1028_vm11 = vmand %vm1024_vm13, %vm6806_vm6  ;;  %v1014_v29 = vsel %vm1012_vm4, 1.0, %v5093_v15  ;;  %vm1058_vm4 = vcmp.lt.f32.partialorder %v5936_v3, %v5756_v11  ;;  %vm1129_vm6 = vcmp.lt.f32.partialorder %v1128_v31, %v5738_v4 }
 0x3c8   :  { %v1015_v30 = vadd.f32 %v1013_v28, %v997_v26  ;;  %vm1030_vm9 = vmor %vm1022_vm15, %vm1028_vm11  ;;  %vm6808_vm15 = vcmp.gt.s32.totalorder %v5896_v54, 12  ;;  %vm1078_vm11 = vcmp.eq.f32.partialorder %v5940_v6, %v5756_v11  ;;  %v1067_v42 = vsel %vm6839_vm7, 1.0, %v5093_v15 }
 0x3c9   :  { %v1016_v32 = vadd.f32 %v1014_v29, %v998_v27  ;;  %vm1046_vm13 = vmand %vm1042_vm0, %vm6813_vm12  ;;  %v1032_v34 = vsel %vm1030_vm9, 1.0, %v5093_v15  ;;  %vm1096_vm9 = vcmp.eq.f32.partialorder %v5949_v10, %v5756_v11  ;;  %vm6840_vm7 = vcmp.lt.f32.partialorder %v5940_v6, %v5738_v4 }
 0x3ca   :  { %v1033_v35 = vadd.f32 %v1031_v33, %v1015_v30  ;;  %vm1048_vm3 = vmor %vm1040_vm14, %vm1046_vm13  ;;  %vm1076_vm14 = vcmp.lt.f32.partialorder %v5940_v6, %v5756_v11  ;;  %vm6812_vm13 = vcmp.gt.s32.totalorder %v5896_v54, 13  ;;  %v1085_v51 = vsel %vm6840_vm7, 1.0, %v5093_v15 }
 0x3cb   :  { %v1034_v37 = vadd.f32 %v1032_v34, %v1016_v32  ;;  %vm1064_vm1 = vmand %vm1060_vm5, %vm6807_vm8  ;;  %v1050_v39 = vsel %vm1048_vm3, 1.0, %v5093_v15  ;;  %vm1094_vm8 = vcmp.lt.f32.partialorder %v5949_v10, %v5756_v11  ;;  %vm1114_vm3 = vcmp.eq.f32.partialorder %v5957_v14, %v5756_v11  ;;  %v4230_v32 = vpop.f32.mrb[12].mxu1 }
 0x3cc   :  { %v1051_v40 = vadd.f32 %v1049_v38, %v1033_v35  ;;  %vm1066_vm0 = vmor %vm1058_vm4, %vm1064_vm1  ;;  %vm6811_vm1 = vcmp.gt.s32.totalorder %v5896_v54, 14  ;;  %v850_v52 = vmul.f32 0.5, %v3967_v36  ;;  %v1103_v59 = vsel %vm1093_vm2, 1.0, %v5093_v15  ;;  %v4231_v33 = vpop.f32.mrb[13].mxu1 }
 0x3cd   :  { %v1052_v41 = vadd.f32 %v1050_v39, %v1034_v37  ;;  %vm1082_vm5 = vmand %vm1078_vm11, %vm6808_vm15  ;;  %v1068_v47 = vsel %vm1066_vm0, 1.0, %v5093_v15  ;;  %vm1112_vm15 = vcmp.lt.f32.partialorder %v5957_v14, %v5756_v11  ;;  %v1139_v10 = vsel %vm1129_vm6, 1.0, %v5093_v15  ;;  %v4233_v35 = vpop.f32.mrb[14].mxu1 }
 0x3ce   :  { %v1069_v49 = vadd.f32 %v1067_v42, %v1051_v40  ;;  %vm1084_vm4 = vmor %vm1076_vm14, %vm1082_vm5  ;;  %vm6841_vm5 = vcmp.lt.f32.partialorder %v5957_v14, %v5738_v4  ;;  %v851_v3 = vfloor.f32 %v850_v52  ;;  %vm6842_vm2 = vcmp.eq.s32.totalorder %v5724_v58, 1  ;;  %v4234_v36 = vpop.f32.mrb[15].mxu1  ;;  %v4648_v40 = vld [vmem:[#allocation6 + $0x8] sm:$0xff]  }
 0x3cf   :  { %v1070_v50 = vadd.f32 %v1068_v47, %v1052_v41  ;;  %vm1100_vm11 = vmand %vm1096_vm9, %vm6812_vm13  ;;  %v1086_v53 = vsel %vm1084_vm4, 1.0, %v5093_v15  ;;  %v1121_v2 = vsel %vm6841_vm5, 1.0, %v5093_v15  ;;  %v1145_v14 = vsel %vm6842_vm2, 0.0, %v5729_v62  ;;  %4347 = vmatpush3.bf16.msra.mxu1 %v4648_v40 }
 0x3d0   :  { %v1087_v55 = vadd.f32 %v1085_v51, %v1069_v49  ;;  %vm1102_vm14 = vmor %vm1094_vm8, %vm1100_vm11  ;;  %vm1130_vm8 = vcmp.lt.f32.partialorder %v1128_v31, %v5756_v11  ;;  %vm6843_vm4 = vcmp.eq.s32.totalorder %v5726_v60, 1  ;;  %v4232_v34 = vadd.f32 %v4231_v33, %v4230_v32  ;;  %4372 = vmatprep.subr.bf16.mxu1 %v5093_v15 }
 0x3d1   :  { %v1088_v56 = vadd.f32 %v1086_v53, %v1070_v50  ;;  %vm1118_vm0 = vmand %vm1114_vm3, %vm6811_vm1  ;;  %v1104_v61 = vsel %vm1102_vm14, 1.0, %v5093_v15  ;;  %v1140_v12 = vsel %vm1130_vm8, 1.0, %v5093_v15  ;;  %v1146_v11 = vsel %vm6843_vm4, 0.0, %v5740_v5 }
 0x3d2   :  { %v1105_v63 = vadd.f32 %v1103_v59, %v1087_v55  ;;  %vm1120_vm9 = vmor %vm1112_vm15, %vm1118_vm0  ;;  %v4235_v37 = vadd.f32 %v4234_v36, %v4233_v35  ;;  %v1764_v38 = vrot.slane %v5722_v57, 4  ;;  %vm1743_vm11 = vcmp.gt.f32.partialorder %v5596_v20, 0.0 }
 0x3d3   :  { %v1106_v1 = vadd.f32 %v1104_v61, %v1088_v56  ;;  %v1122_v6 = vsel %vm1120_vm9, 1.0, %v5093_v15  ;;  %vm6844_vm6 = vmmov %vm6842_vm2  ;;  %vm1744_vm14 = vcmp.gt.f32.partialorder %v5601_v23, 0.0  ;;  %v1745_v60 = vsel %vm1743_vm11, 1, %v5092_v0  ;;  %v4649_v61 = vld [vmem:[#allocation9] sm:$0xff]  }
 0x3d4   :  { %v1123_v8 = vadd.f32 %v1121_v2, %v1105_v63  ;;  %vm6845_vm7 = vmmov %vm6843_vm4  ;;  %v1765_v39 = vadd.f32 %v1764_v38, %v5722_v57  ;;  %1748 = vperm.xlu1 %4539, %v1745_v60   ;;  %v4053_v57 = vld [vmem:[#allocation4 + $0x1] ss:$0 sm:$0xff]  ;;  %vm6846_vm0 = vcmask 130048   ;;  %4353 = vmatpush3.bf16.msra.mxu0 %v4649_v61  ;;  %v4652_v2 = vld [vmem:[#allocation9 + $0x18] sm:$0xff]  }
 0x3d5   :  { %v1124_v9 = vadd.f32 %v1122_v6, %v1106_v1  ;;  %v1631_v50 = vadd.f32 %v4232_v34, %v4053_v57  ;;  %v1634_v20 = vadd.f32 %v4235_v37, %v4053_v57  ;;  %v4650_v63 = vld [vmem:[#allocation9 + $0x8] sm:$0xff]   ;;  %4354 = vmatprep.subr.bf16.mxu0 %v5093_v15  ;;  %v4651_v1 = vld [vmem:[#allocation9 + $0x10] sm:$0xff]  }
 0x3d6   :  { %v1141_v16 = vadd.f32 %v1139_v10, %v1123_v8  ;;  %v1766_v41 = vrot.slane %v1765_v39, 2  ;;  %v4658_v6 = vld [vmem:[#allocation10 + $0x8] sm:$0xff]   ;;  %v4653_v8 = vld [vmem:[#allocation9 + $0x20] sm:$0xff]  }
 0x3d7   :  { %v1142_v18 = vadd.f32 %v1140_v12, %v1124_v9  ;;  %v4659_v9 = vld [vmem:[#allocation10 + $0x10] sm:$0xff]   ;;  %v4654_v10 = vld [vmem:[#allocation9 + $0x28] sm:$0xff]  }
 0x3d8   :  { %vm1143_vm15 = vcmp.eq.f32.partialorder %v1141_v16, %v851_v3  ;;  %v1767_v58 = vadd.f32 %v1766_v41, %v1765_v39  ;;  %4355 = vmatpush3.bf16.msra.mxu0 %v4650_v63  ;;  %v4655_v12 = vld [vmem:[#allocation9 + $0x30] sm:$0xff]   ;;  %v4656_v16 = vld [vmem:[#allocation9 + $0x38] sm:$0xff]  }
 0x3d9   :  { %vm1144_vm3 = vcmp.eq.f32.partialorder %v1142_v18, %v851_v3  ;;  %v1147_v19 = vsel %vm1143_vm15, %v1145_v14, 0.0  ;;  %4356 = vmatprep.subr.bf16.mxu0 %v5093_v15  ;;  %v4657_v3 = vld [vmem:[#allocation10] sm:$0xff]   ;;  %v4086_v14 = vld [vmem:[#allocation7 + $0x1] ss:$0 sm:$0xff] }
 0x3da   :  { %v1148_v22 = vsel %vm1144_vm3, %v1146_v11, 0.0  ;;  %vm6847_vm3 = vcmp.gt.s32.totalorder %v5543_v43, 0 }
 0x3db   :  { %v1149_v24 = vadd.f32 %v1148_v22, %v1147_v19 }
 0x3dc   :  { %4357 = vmatpush3.bf16.msra.mxu0 %v4651_v1 }
 0x3dd   :  { %v1150_v25 = vrot.slane %v1149_v24, 4  ;;  %4358 = vmatprep.subr.bf16.mxu0 %v5093_v15 }
 0x3df   :  { %v1151_v4 = vadd.f32 %v1150_v25, %v1149_v24 }
 0x3e0   :  { %4359 = vmatpush3.bf16.msra.mxu0 %v4652_v2 }
 0x3e1   :  { %v1152_v26 = vrot.slane %v1151_v4, 2  ;;  %4360 = vmatprep.subr.bf16.mxu0 %v5093_v15 }
 0x3e3   :  { %v1153_v27 = vadd.f32 %v1152_v26, %v1151_v4 }
 0x3e4   :  { %4361 = vmatpush3.bf16.msra.mxu0 %v4653_v8 }
 0x3e5   :  { %v1154_v28 = vrot.slane %v1153_v27, 1  ;;  %4362 = vmatprep.subr.bf16.mxu0 %v5093_v15 }
 0x3e7   :  { %v1155_v29 = vadd.f32 %v1154_v28, %v1153_v27 }
 0x3e8   :  { %4363 = vmatpush3.bf16.msra.mxu0 %v4654_v10 }
 0x3e9   :  { %v6089_v30 = vsel %vm6844_vm6, %v1155_v29, %v5729_v62  ;;  %v6094_v31 = vsel %vm6845_vm7, %v1155_v29, %v5740_v5  ;;  %v1768_v62 = vrot.slane %v1767_v58, 1  ;;  %v1746_v5 = vsel %vm1744_vm14, 1, %v5092_v0  ;;  %4364 = vmatprep.subr.bf16.mxu0 %v5093_v15 }
 0x3ea   :  { %1751 = vperm.xlu1 %4539, %v1746_v5  }
 0x3eb   :  { %v1769_v42 = vadd.f32 %v1768_v62, %v1767_v58 }
 0x3ec   :  { %4365 = vmatpush3.bf16.msra.mxu0 %v4655_v12 }
 0x3ed   :  { %4510 = vpush %v1769_v42  ;;  %4366 = vmatprep.subr.bf16.mxu0 %v5093_v15 }
 0x3f0   :  { %4367 = vmatpush3.bf16.msra.mxu0 %v4656_v16 }
 0x3f1   :  { %4400 = vmatprep.subr.bf16.mxu0 %v5093_v15 }
 0x41e   :  { %s4511_s12 = spop %4510 }
 0x453   :  { %v6117_v18 = vpop.permute.xlu1 %1748 }
 0x454   :  { %vm6810_vm9 = vcmp.eq.s32.totalorder %v6117_v18, 1 }
 0x469   :  { %v6119_v19 = vpop.permute.xlu1 %1751 }
 0x46a   :  { %vm6809_vm5 = vcmp.eq.s32.totalorder %v6119_v19, 1 }
 0x48c   :  { %v4252_v47 = vpop.f32.mrb[16].mxu0 }
 0x48d   :  { %v4253_v49 = vpop.f32.mrb[17].mxu0 }
 0x48e   :  { %v4254_v51 = vadd.f32 %v4253_v49, %v4252_v47  ;;  %v4255_v52 = vpop.f32.mrb[18].mxu0 }
 0x48f   :  { %v4256_v53 = vpop.f32.mrb[19].mxu0 }
 0x490   :  { %v1672_v55 = vadd.f32 %v4254_v51, %v1631_v50  ;;  %v4257_v23 = vadd.f32 %v4256_v53, %v4255_v52 }
 0x492   :  { %v1675_v56 = vadd.f32 %v4257_v23, %v1634_v20 }
 0x494   :  { %v1678_v59 = vpack.c.bf16 %v1675_v56, %v1672_v55 }
 0x496   :  { %4349 = vmatmul.mubr.msk.bf16.vlgmr.msra.gmra.mrb[16].mxu1 %vm6846_vm0, %v1678_v59 }
 0x497   :  { %4378 = vmatprep.mubr.msk.bf16.mxu1 %vm6834_vm10, %v5093_v15  ;;  %4373 = vmatpush3.bf16.msra.mxu1 %v4657_v3 }
 0x498   :  { %4374 = vmatprep.subr.bf16.mxu1 %v5093_v15 }
 0x49b   :  { %4375 = vmatpush3.bf16.msra.mxu1 %v4658_v6 }
 0x49c   :  { %4376 = vmatprep.subr.bf16.mxu1 %v5093_v15 }
 0x49f   :  { %4377 = vmatpush3.bf16.msra.mxu1 %v4659_v9 }
 0x4a0   :  { %4382 = vmatprep.subr.bf16.mxu1 %v5093_v15 }
 0x569   :  { %v1733_v11 = vpop.f32.mrb[16].mxu1 }
 0x56a   :  { %v6121_v22 = vadd.f32 %v4086_v14, %v1733_v11  ;;  %v4350_v24 = vpop.f32.mrb[17].mxu1 }
 0x56b   :  { %v1736_v25 = vpop.f32.mrb[18].mxu1 }
 0x56c   :  { %v6127_v4 = vsel %vm6810_vm9, inf, %v6121_v22  ;;  %v6129_v26 = vadd.f32 %v4086_v14, %v1736_v25  ;;  %v4351_v27 = vpop.f32.mrb[19].mxu1 }
 0x56d   :  { %v1778_v28 = vrot.slane %v6127_v4, %v5552_v46  ;;  %v1794_v29 = vrot.slane %v6127_v4, %v5555_v48  ;;  %v1810_v32 = vrot.slane %v6127_v4, %v5546_v44  ;;  %v1826_v34 = vrot.slane %v6127_v4, %v5549_v45 }
 0x56e   :  { %v6141_v33 = vsel %vm6809_vm5, inf, %v6129_v26  ;;  %v6147_v35 = vrot.slane %v6127_v4, %v5744_v7  ;;  %v6160_v36 = vrot.slane %v6127_v4, %v5764_v13  ;;  %v6168_v37 = vrot.slane %v6127_v4, %v5784_v17 }
 0x56f   :  { %vm1779_vm8 = vcmp.lt.f32.partialorder %v1778_v28, %v6127_v4  ;;  %vm1780_vm2 = vcmp.lt.f32.partialorder %v1778_v28, %v6141_v33  ;;  %vm1781_vm15 = vcmp.eq.f32.partialorder %v1778_v28, %v6127_v4  ;;  %vm1782_vm4 = vcmp.eq.f32.partialorder %v1778_v28, %v6141_v33 }
 0x570   :  { %vm1783_vm6 = vmand %vm1781_vm15, %vm6847_vm3  ;;  %vm1796_vm7 = vcmp.lt.f32.partialorder %v1794_v29, %v6141_v33  ;;  %vm1797_vm11 = vcmp.eq.f32.partialorder %v1794_v29, %v6127_v4  ;;  %vm1798_vm14 = vcmp.eq.f32.partialorder %v1794_v29, %v6141_v33  ;;  %vm1795_vm5 = vcmp.lt.f32.partialorder %v1794_v29, %v6127_v4 }
 0x571   :  { %vm1785_vm0 = vmor %vm1779_vm8, %vm1783_vm6  ;;  %vm1814_vm1 = vcmp.eq.f32.partialorder %v1810_v32, %v6141_v33  ;;  %vm6848_vm3 = vcmp.gt.s32.totalorder %v5543_v43, 1  ;;  %vm1813_vm8 = vcmp.eq.f32.partialorder %v1810_v32, %v6127_v4  ;;  %vm1830_vm6 = vcmp.eq.f32.partialorder %v1826_v34, %v6141_v33 }
 0x572   :  { %vm1786_vm13 = vmor %vm1780_vm2, %vm1782_vm4  ;;  %v1787_v38 = vsel %vm1785_vm0, 1.0, %v5093_v15  ;;  %vm1811_vm4 = vcmp.lt.f32.partialorder %v1810_v32, %v6127_v4  ;;  %vm1846_vm15 = vcmp.eq.f32.partialorder %v6147_v35, %v6141_v33  ;;  %vm1829_vm0 = vcmp.eq.f32.partialorder %v1826_v34, %v6127_v4 }
 0x573   :  { %vm1799_vm12 = vmand %vm1797_vm11, %vm6848_vm3  ;;  %v1788_v39 = vsel %vm1786_vm13, 1.0, %v5093_v15  ;;  %vm1827_vm3 = vcmp.lt.f32.partialorder %v1826_v34, %v6127_v4  ;;  %vm6849_vm13 = vcmp.gt.s32.totalorder %v5543_v43, 2  ;;  %vm1876_vm9 = vcmp.lt.f32.partialorder %v6168_v37, %v6141_v33 }
 0x574   :  { %vm1801_vm2 = vmor %vm1795_vm5, %vm1799_vm12  ;;  %vm1862_vm12 = vcmp.eq.f32.partialorder %v6160_v36, %v6141_v33  ;;  %v6201_v62 = vrot.slane %v6127_v4, %v5796_v21  ;;  %v6205_v5 = vrot.slane %v6141_v33, %v5552_v46  ;;  %v6216_v57 = vrot.slane %v6141_v33, %v5555_v48 }
 0x575   :  { %vm1802_vm11 = vmor %vm1796_vm7, %vm1798_vm14  ;;  %v1803_v40 = vsel %vm1801_vm2, 1.0, %v5093_v15  ;;  %vm1878_vm14 = vcmp.eq.f32.partialorder %v6168_v37, %v6141_v33  ;;  %v6225_v50 = vrot.slane %v6141_v33, %v5546_v44  ;;  %v6242_v53 = vrot.slane %v6141_v33, %v5549_v45 }
 0x576   :  { %v1804_v41 = vsel %vm1802_vm11, 1.0, %v5093_v15  ;;  %v1805_v58 = vadd.f32 %v1803_v40, %v1787_v38  ;;  %vm1815_vm5 = vmand %vm1813_vm8, %vm6849_vm13  ;;  %vm6850_vm8 = vcmp.lt.f32.partialorder %v1810_v32, %v6141_v33  ;;  %vm6851_vm11 = vcmp.gt.s32.totalorder %v5543_v43, 3 }
 0x577   :  { %v1806_v60 = vadd.f32 %v1804_v41, %v1788_v39  ;;  %vm1817_vm7 = vmor %vm1811_vm4, %vm1815_vm5  ;;  %vm1845_vm4 = vcmp.eq.f32.partialorder %v6147_v35, %v6127_v4  ;;  %v6276_v63 = vrot.slane %v6141_v33, %v5744_v7  ;;  %v6287_v2 = vrot.slane %v6141_v33, %v5764_v13 }
 0x578   :  { %vm1818_vm2 = vmor %vm6850_vm8, %vm1814_vm1  ;;  %v1819_v42 = vsel %vm1817_vm7, 1.0, %v5093_v15  ;;  %vm1843_vm7 = vcmp.lt.f32.partialorder %v6147_v35, %v6127_v4  ;;  %vm1875_vm8 = vcmp.lt.f32.partialorder %v6168_v37, %v6127_v4  ;;  %v6291_v3 = vrot.slane %v6141_v33, %v5784_v17 }
 0x579   :  { %v1820_v47 = vsel %vm1818_vm2, 1.0, %v5093_v15  ;;  %v1821_v49 = vadd.f32 %v1819_v42, %v1805_v58  ;;  %vm1831_vm13 = vmand %vm1829_vm0, %vm6851_vm11  ;;  %vm6852_vm2 = vcmp.lt.f32.partialorder %v1826_v34, %v6141_v33  ;;  %vm1861_vm0 = vcmp.eq.f32.partialorder %v6160_v36, %v6127_v4 }
 0x57a   :  { %v1822_v51 = vadd.f32 %v1820_v47, %v1806_v60  ;;  %vm1833_vm1 = vmor %vm1827_vm3, %vm1831_vm13  ;;  %vm6853_vm3 = vcmp.gt.s32.totalorder %v5543_v43, 4  ;;  %v6306_v13 = vrot.slane %v6141_v33, %v5796_v21 }
 0x57b   :  { %vm1834_vm11 = vmor %vm6852_vm2, %vm1830_vm6  ;;  %v1835_v52 = vsel %vm1833_vm1, 1.0, %v5093_v15  ;;  %vm1859_vm2 = vcmp.lt.f32.partialorder %v6160_v36, %v6127_v4  ;;  %vm1877_vm6 = vcmp.eq.f32.partialorder %v6168_v37, %v6127_v4 }
 0x57c   :  { %v1836_v20 = vsel %vm1834_vm11, 1.0, %v5093_v15  ;;  %v1837_v55 = vadd.f32 %v1835_v52, %v1821_v49  ;;  %vm1847_vm13 = vmand %vm1845_vm4, %vm6853_vm3  ;;  %vm6854_vm4 = vcmp.lt.f32.partialorder %v6147_v35, %v6141_v33  ;;  %vm1955_vm11 = vcmp.lt.f32.partialorder %v6242_v53, %v6127_v4 }
 0x57d   :  { %v1838_v23 = vadd.f32 %v1836_v20, %v1822_v51  ;;  %vm1849_vm1 = vmor %vm1843_vm7, %vm1847_vm13  ;;  %vm6855_vm7 = vcmp.gt.s32.totalorder %v5543_v43, 5  ;;  %v1771_v35 = vstv %s4511_s12  ;;  %v1963_v41 = vsel %vm1955_vm11, 1.0, %v5093_v15 }
 0x57e   :  { %vm1850_vm3 = vmor %vm6854_vm4, %vm1846_vm15  ;;  %v1851_v45 = vsel %vm1849_vm1, 1.0, %v5093_v15  ;;  %vm6856_vm15 = vcmp.lt.f32.partialorder %v6160_v36, %v6141_v33  ;;  %vm6857_vm1 = vcmp.gt.s32.totalorder %v5543_v43, 6  ;;  %vm1891_vm4 = vcmp.lt.f32.partialorder %v6201_v62, %v6127_v4 }
 0x57f   :  { %v1852_v56 = vsel %vm1850_vm3, 1.0, %v5093_v15  ;;  %v1853_v59 = vadd.f32 %v1851_v45, %v1837_v55  ;;  %vm1863_vm13 = vmand %vm1861_vm0, %vm6855_vm7  ;;  %vm1910_vm3 = vcmp.eq.f32.partialorder %v6205_v5, %v6141_v33  ;;  %vm1987_vm7 = vcmp.lt.f32.partialorder %v6287_v2, %v6127_v4 }
 0x580   :  { %v1854_v61 = vadd.f32 %v1852_v56, %v1838_v23  ;;  %vm1865_vm5 = vmor %vm1859_vm2, %vm1863_vm13  ;;  %vm6858_vm13 = vcmp.eq.f32.partialorder %v6201_v62, %v6141_v33  ;;  %v1899_v12 = vsel %vm1891_vm4, 1.0, %v5093_v15  ;;  %vm6861_vm4 = vcmp.lt.f32.partialorder %v6205_v5, %v6127_v4 }
 0x581   :  { %vm1866_vm0 = vmor %vm6856_vm15, %vm1862_vm12  ;;  %v1867_v1 = vsel %vm1865_vm5, 1.0, %v5093_v15  ;;  %vm1971_vm12 = vcmp.lt.f32.partialorder %v6276_v63, %v6127_v4  ;;  %vm6859_vm15 = vcmp.lt.f32.partialorder %v6201_v62, %v6141_v33  ;;  %v1915_v24 = vsel %vm6861_vm4, 1.0, %v5093_v15 }
 0x582   :  { %v1868_v7 = vsel %vm1866_vm0, 1.0, %v5093_v15  ;;  %v1869_v6 = vadd.f32 %v1867_v1, %v1853_v59  ;;  %vm1879_vm2 = vmand %vm1877_vm6, %vm6857_vm1  ;;  %vm1926_vm1 = vcmp.eq.f32.partialorder %v6216_v57, %v6141_v33  ;;  %vm6864_vm4 = vcmp.gt.s32.totalorder %v5896_v54, 10 }
 0x583   :  { %v1870_v8 = vadd.f32 %v1868_v7, %v1854_v61  ;;  %vm1881_vm5 = vmor %vm1875_vm8, %vm1879_vm2  ;;  %vm1908_vm8 = vcmp.lt.f32.partialorder %v6205_v5, %v6141_v33  ;;  %v4091_v58 = vadd.f32 -1.0, %v1771_v35  ;;  %v1979_v42 = vsel %vm1971_vm12, 1.0, %v5093_v15 }
 0x584   :  { %vm1882_vm6 = vmor %vm1876_vm9, %vm1878_vm14  ;;  %v1883_v17 = vsel %vm1881_vm5, 1.0, %v5093_v15  ;;  %vm2003_vm9 = vcmp.lt.f32.partialorder %v6291_v3, %v6127_v4  ;;  %vm6860_vm14 = vcmp.gt.s32.totalorder %v5896_v54, 8  ;;  %vm1924_vm5 = vcmp.lt.f32.partialorder %v6216_v57, %v6141_v33 }
 0x585   :  { %v1884_v9 = vsel %vm1882_vm6, 1.0, %v5093_v15  ;;  %v1885_v10 = vadd.f32 %v1883_v17, %v1869_v6  ;;  %vm1898_vm0 = vmor %vm6859_vm15, %vm6858_vm13  ;;  %vm1942_vm13 = vcmp.eq.f32.partialorder %v6225_v50, %v6141_v33  ;;  %vm6863_vm15 = vcmp.lt.f32.partialorder %v6216_v57, %v6127_v4 }
 0x586   :  { %v1886_v21 = vadd.f32 %v1884_v9, %v1870_v8  ;;  %vm1912_vm2 = vmand %vm1910_vm3, %vm6860_vm14  ;;  %v1900_v16 = vsel %vm1898_vm0, 1.0, %v5093_v15  ;;  %vm6862_vm3 = vcmp.gt.s32.totalorder %v5896_v54, 9  ;;  %vm1940_vm0 = vcmp.lt.f32.partialorder %v6225_v50, %v6141_v33 }
 0x587   :  { %v1901_v14 = vadd.f32 %v1899_v12, %v1885_v10  ;;  %vm1914_vm6 = vmor %vm1908_vm8, %vm1912_vm2  ;;  %vm1958_vm2 = vcmp.eq.f32.partialorder %v6242_v53, %v6141_v33  ;;  %v1931_v29 = vsel %vm6863_vm15, 1.0, %v5093_v15  ;;  %vm6866_vm15 = vcmp.gt.s32.totalorder %v5896_v54, 11 }
 0x588   :  { %v1902_v11 = vadd.f32 %v1900_v16, %v1886_v21  ;;  %vm1928_vm14 = vmand %vm1926_vm1, %vm6862_vm3  ;;  %v1916_v25 = vsel %vm1914_vm6, 1.0, %v5093_v15  ;;  %vm1956_vm3 = vcmp.lt.f32.partialorder %v6242_v53, %v6141_v33  ;;  %vm6868_vm11 = vcmp.gt.s32.totalorder %v5896_v54, 13 }
 0x589   :  { %v1917_v27 = vadd.f32 %v1915_v24, %v1901_v14  ;;  %vm1930_vm8 = vmor %vm1924_vm5, %vm1928_vm14  ;;  %vm1974_vm5 = vcmp.eq.f32.partialorder %v6276_v63, %v6141_v33  ;;  %vm6865_vm14 = vcmp.lt.f32.partialorder %v6225_v50, %v6127_v4  ;;  %v1995_v50 = vsel %vm1987_vm7, 1.0, %v5093_v15 }
 0x58a   :  { %v1918_v28 = vadd.f32 %v1916_v25, %v1902_v11  ;;  %vm1944_vm1 = vmand %vm1942_vm13, %vm6864_vm4  ;;  %v1932_v32 = vsel %vm1930_vm8, 1.0, %v5093_v15  ;;  %v1947_v37 = vsel %vm6865_vm14, 1.0, %v5093_v15  ;;  %vm1972_vm4 = vcmp.lt.f32.partialorder %v6276_v63, %v6141_v33 }
 0x58b   :  { %v1933_v34 = vadd.f32 %v1931_v29, %v1917_v27  ;;  %vm1946_vm6 = vmor %vm1940_vm0, %vm1944_vm1  ;;  %vm1990_vm8 = vcmp.eq.f32.partialorder %v6287_v2, %v6141_v33  ;;  %vm6867_vm1 = vcmp.gt.s32.totalorder %v5896_v54, 12  ;;  %v1773_v51 = vmul.f32 0.5, %v4091_v58 }
 0x58c   :  { %v1934_v36 = vadd.f32 %v1932_v32, %v1918_v28  ;;  %vm1960_vm13 = vmand %vm1958_vm2, %vm6866_vm15  ;;  %v1948_v38 = vsel %vm1946_vm6, 1.0, %v5093_v15  ;;  %vm1988_vm2 = vcmp.lt.f32.partialorder %v6287_v2, %v6141_v33  ;;  %vm2006_vm6 = vcmp.eq.f32.partialorder %v6291_v3, %v6141_v33 }
 0x58d   :  { %v1949_v39 = vadd.f32 %v1947_v37, %v1933_v34  ;;  %vm1962_vm0 = vmor %vm1956_vm3, %vm1960_vm13  ;;  %vm2004_vm15 = vcmp.lt.f32.partialorder %v6291_v3, %v6141_v33  ;;  %v2011_v55 = vsel %vm2003_vm9, 1.0, %v5093_v15  ;;  %vm6870_vm7 = vcmp.lt.f32.partialorder %v6306_v13, %v6127_v4 }
 0x58e   :  { %v1950_v40 = vadd.f32 %v1948_v38, %v1934_v36  ;;  %vm1976_vm14 = vmand %vm1974_vm5, %vm6867_vm1  ;;  %v1964_v60 = vsel %vm1962_vm0, 1.0, %v5093_v15  ;;  %v1774_v59 = vfloor.f32 %v1773_v51  ;;  %vm6871_vm9 = vcmp.eq.s32.totalorder %v6117_v18, 1 }
 0x58f   :  { %v1965_v62 = vadd.f32 %v1963_v41, %v1949_v39  ;;  %vm1978_vm3 = vmor %vm1972_vm4, %vm1976_vm14  ;;  %vm6869_vm4 = vcmp.gt.s32.totalorder %v5896_v54, 14  ;;  %v2027_v54 = vsel %vm6870_vm7, 1.0, %v5093_v15  ;;  %v2033_v2 = vsel %vm6871_vm9, 0.0, %v6121_v22  ;;  %v4165_v41 = vld [vmem:[%s6875_s26] sm:$0xf]   ;;  %s6926_s26 = sld [smem:[#allocation38_spill]] }
 0x590   :  { %v1966_v5 = vadd.f32 %v1964_v60, %v1950_v40  ;;  %vm1992_vm5 = vmand %vm1990_vm8, %vm6868_vm11  ;;  %v1980_v57 = vsel %vm1978_vm3, 1.0, %v5093_v15  ;;  %vm2020_vm8 = vcmp.lt.f32.partialorder %v6306_v13, %v6141_v33  ;;  %vm2191_vm11 = vcmask 392192  }
 0x591   :  { %v1981_v47 = vadd.f32 %v1979_v42, %v1965_v62  ;;  %vm1994_vm13 = vmor %vm1988_vm2, %vm1992_vm5  ;;  %v2028_v61 = vsel %vm2020_vm8, 1.0, %v5093_v15  ;;  %vm6872_vm2 = vcmp.eq.s32.totalorder %v6119_v19, 1  ;;  %v5095_v35 = vmov 1  }
 0x592   :  { %v1982_v49 = vadd.f32 %v1980_v57, %v1966_v5  ;;  %vm2008_vm0 = vmand %vm2006_vm6, %vm6869_vm4  ;;  %v1996_v52 = vsel %vm1994_vm13, 1.0, %v5093_v15  ;;  %v2034_v33 = vsel %vm6872_vm2, 0.0, %v6129_v26  ;;  %v5096_v40 = vmov 2  }
 0x593   :  { %v1997_v53 = vadd.f32 %v1995_v50, %v1981_v47  ;;  %vm2010_vm12 = vmor %vm2004_vm15, %vm2008_vm0  ;;  %v4166_v58 = vunpack.c.0.s8 %v4165_v41  ;;  %v4167_v47 = vunpack.c.1.s8 %v4165_v41  ;;  %v5097_v50 = vmov -1e+30  }
 0x594   :  { %v1998_v20 = vadd.f32 %v1996_v52, %v1982_v49  ;;  %v2012_v23 = vsel %vm2010_vm12, 1.0, %v5093_v15  ;;  %vm6873_vm3 = vmmov %vm6871_vm9  ;;  %vm6876_vm4 = vcmask 130048  }
 0x595   :  { %v2013_v45 = vadd.f32 %v2011_v55, %v1997_v53  ;;  %vm6874_vm6 = vmmov %vm6872_vm2  ;;  %v2055_v60 = vcvt.s32.f32 %v4166_v58 }
 0x596   :  { %v2014_v56 = vadd.f32 %v2012_v23, %v1998_v20  ;;  %v2056_v23 = vcvt.s32.f32 %v4167_v47  ;;  %vm6877_vm8 = vmmov %vm6876_vm4 }
 0x597   :  { %v2029_v63 = vadd.f32 %v2027_v54, %v2013_v45  ;;  %vm2057_vm5 = vcmp.gt.f32.partialorder %v2055_v60, 0.0 }
 0x598   :  { %v2030_v1 = vadd.f32 %v2028_v61, %v2014_v56  ;;  %v6454_v51 = vsel %vm2057_vm5, 0.0, %v5097_v50  ;;  %vm2058_vm0 = vcmp.gt.f32.partialorder %v2056_v23, 0.0 }
 0x599   :  { %vm2031_vm1 = vcmp.eq.f32.partialorder %v2029_v63, %v1774_v59 }
 0x59a   :  { %vm2032_vm14 = vcmp.eq.f32.partialorder %v2030_v1, %v1774_v59  ;;  %v2035_v3 = vsel %vm2031_vm1, %v2033_v2, 0.0  ;;  %vm6878_vm1 = vmmov %vm6876_vm4 }
 0x59b   :  { %v2036_v7 = vsel %vm2032_vm14, %v2034_v33, 0.0  ;;  %v6460_v33 = vsel %vm2058_vm0, 0.0, %v5097_v50  ;;  %vm6879_vm14 = vmmov %vm6878_vm1 }
 0x59c   :  { %v2037_v6 = vadd.f32 %v2036_v7, %v2035_v3  ;;  %vm6882_vm5 = vmmov %vm6878_vm1 }
 0x59d   :  { %vm6886_vm0 = vmmov %vm6878_vm1 }
 0x59e   :  { %v2038_v4 = vrot.slane %v2037_v6, 4 }
 0x5a0   :  { %v2039_v8 = vadd.f32 %v2038_v4, %v2037_v6 }
 0x5a2   :  { %v2040_v13 = vrot.slane %v2039_v8, 2 }
 0x5a4   :  { %v2041_v17 = vadd.f32 %v2040_v13, %v2039_v8 }
 0x5a6   :  { %v2042_v9 = vrot.slane %v2041_v17, 1 }
 0x5a8   :  { %v2043_v10 = vadd.f32 %v2042_v9, %v2041_v17 }
 0x5aa   :  { %v2044_v21 = vsel %vm6873_vm3, %v2043_v10, %v6121_v22  ;;  %v2045_v12 = vsel %vm6874_vm6, %v2043_v10, %v6129_v26  ;;  %vm6880_vm3 = vmmov %vm6878_vm1 }
 0x5ab   :  { %v2046_v16 = vadd.f32 %v2044_v21, %v6089_v30  ;;  %v2047_v14 = vadd.f32 %v2045_v12, %v6094_v31  ;;  %v2236_v31 = vld [vmem:[#allocation12] sm:$0x3]  ;;  %vm6881_vm6 = vmmov %vm6878_vm1 }
 0x5ad   :  { %v2048_v11 = vmul.f32 0.5, %v2046_v16  ;;  %v2049_v24 = vmul.f32 0.5, %v2047_v14 }
 0x5af   :  { %v2050_v25 = vpack.c.bf16 %v2049_v24, %v2048_v11 }
 0x5b1   :  { %4369 = vmatmul.mubr.bf16.vlgmr.msra.gmra.mrb[20].mxu0 %v2050_v25 }
 0x5b2   :  { %4402 = vmatprep.mubr.msk.bf16.mxu0 %vm6834_vm10, %v5093_v15 }
 0x684   :  { %v2159_v27 = vpop.f32.mrb[20].mxu0 }
 0x685   :  { %v4370_v28 = vpop.f32.mrb[21].mxu0 }
 0x686   :  { %v2162_v29 = vpop.f32.mrb[22].mxu0 }
 0x687   :  { %v6429_v18 = vpack.c.bf16 %v2162_v29, %v2159_v27  ;;  %v4371_v22 = vpop.f32.mrb[23].mxu0 }
 0x689   :  { %4379 = vmatmul.mubr.msk.bf16.vlgmr.msra.gmra.mrb[20].mxu1 %vm2191_vm11, %v6429_v18  ;;  %v2193_v30 = vsel %vm2191_vm11, %v6429_v18, 0 }
 0x68a   :  { %4383 = vmatpush3.bf16.xpose.msra.mxu1 %v2193_v30  ;;  %4384 = vmatprep.mubr.msk.bf16.mxu1 %vm6834_vm10, %v5093_v15 }
 0x68b   :  { %4388 = vmatprep.subr.bf16.mxu1 %v5093_v15 }
 0x691   :  { %4385 = vmatmul.mubr.msk.bf16.vlgmr.msra.gmra.mrb[24].mxu1 %vm2191_vm11, %v2236_v31 }
 0x692   :  { %4389 = vmatpush3.bf16.msra.mxu1 %v6429_v18  ;;  %4390 = vmatprep.mubr.msk.bf16.mxu1 %vm6834_vm10, %v5093_v15 }
 0x693   :  { %4394 = vmatprep.subr.bf16.mxu1 %v5093_v15 }
 0x75c   :  { %v2229_v19 = vpop.f32.mrb[20].mxu1 }
 0x75d   :  { %2282 = vperm.xlu1 %4539, %v2229_v19   ;;  %v4380_v26 = vpop.f32.mrb[21].mxu1 }
 0x75e   :  { %v2232_v32 = vpop.f32.mrb[22].mxu1 }
 0x75f   :  { %v4381_v34 = vpop.f32.mrb[23].mxu1 }
 0x761   :  { %4541 = vset.pattern.permute.xlu1 %v5095_v35 }
 0x762   :  { %2372 = vperm.xlu1 %4541, %v2229_v19  }
 0x764   :  { %v2274_v36 = vpop.f32.mrb[24].mxu1 }
 0x765   :  { %v4386_v37 = vpop.f32.mrb[25].mxu1  ;;  %v2293_v62 = vrot.slane %v2274_v36, %v5552_v46  ;;  %v2382_v57 = vrot.slane %v2274_v36, %v5555_v48  ;;  %v2475_v3 = vrot.slane %v2274_v36, %v5546_v44 }
 0x766   :  { %4542 = vset.pattern.permute.xlu1 %v5092_v0  ;;  %v2277_v38 = vpop.f32.mrb[26].mxu1 }
 0x767   :  { %2287 = vperm.xlu1 %4542, %v2232_v32   ;;  %v4387_v39 = vpop.f32.mrb[27].mxu1 }
 0x76b   :  { %4543 = vset.pattern.permute.xlu1 %v5096_v40 }
 0x76c   :  { %2465 = vperm.xlu1 %4543, %v2229_v19  }
 0x770   :  { %4544 = vset.pattern.permute.xlu1 %v5095_v35 }
 0x771   :  { %2376 = vperm.xlu1 %4544, %v2232_v32  }
 0x775   :  { %4545 = vset.pattern.permute.xlu1 %v5096_v40 }
 0x776   :  { %2469 = vperm.xlu1 %4545, %v2232_v32  }
 0x77a   :  { %4547 = vset.pattern.permute.xlu1 %v5092_v0 }
 0x7dc   :  { %v2283_v5 = vpop.permute.xlu1 %2282 }
 0x7dd   :  { %v2294_v42 = vadd.f32 %v2293_v62, %v2283_v5 }
 0x7df   :  { %vm2296_vm15 = vcmp.gt.f32.partialorder %v2294_v42, 0.0  ;;  %v2298_v49 = vmul.f32 0.2, %v2294_v42 }
 0x7e1   :  { %v2373_v52 = vpop.permute.xlu1 %2372  ;;  %v2300_v53 = vsel %vm2296_vm15, %v2294_v42, %v2298_v49  ;;  %vm6883_vm15 = vmmov %vm6878_vm1 }
 0x7e2   :  { %v2383_v20 = vadd.f32 %v2382_v57, %v2373_v52  ;;  %v2302_v55 = vadd.f32 %v2300_v53, %v6454_v51 }
 0x7e4   :  { %vm2385_vm13 = vcmp.gt.f32.partialorder %v2383_v20, 0.0  ;;  %v2387_v45 = vmul.f32 0.2, %v2383_v20  ;;  %v2304_v56 = vsel %vm6876_vm4, %v2302_v55, -inf  ;;  %vm6885_vm4 = vmmov %vm6878_vm1 }
 0x7e5   :  { %2305 = vmax.xlane.f32.xlu1 %v2304_v56 }
 0x7e6   :  { %v2288_v54 = vpop.permute.xlu1 %2287  ;;  %v2389_v59 = vsel %vm2385_vm13, %v2383_v20, %v2387_v45  ;;  %vm6884_vm13 = vmmov %vm6878_vm1 }
 0x7e7   :  { %v2295_v61 = vadd.f32 %v2293_v62, %v2288_v54  ;;  %v2391_v63 = vadd.f32 %v2389_v59, %v6454_v51 }
 0x7e9   :  { %vm2297_vm12 = vcmp.gt.f32.partialorder %v2295_v61, 0.0  ;;  %v2299_v1 = vmul.f32 0.2, %v2295_v61  ;;  %v2393_v2 = vsel %vm6877_vm8, %v2391_v63, -inf  ;;  %vm6888_vm8 = vmmov %vm6886_vm0 }
 0x7ea   :  { %2394 = vmax.xlane.f32.xlu1 %v2393_v2 }
 0x7eb   :  { %v2466_v7 = vpop.permute.xlu1 %2465  ;;  %v2301_v6 = vsel %vm2297_vm12, %v2295_v61, %v2299_v1  ;;  %vm6887_vm12 = vmmov %vm6886_vm0 }
 0x7ec   :  { %v2476_v4 = vadd.f32 %v2475_v3, %v2466_v7  ;;  %v2303_v8 = vadd.f32 %v2301_v6, %v6460_v33 }
 0x7ee   :  { %vm2478_vm7 = vcmp.gt.f32.partialorder %v2476_v4, 0.0  ;;  %v2480_v13 = vmul.f32 0.2, %v2476_v4  ;;  %v2307_v17 = vsel %vm6878_vm1, %v2303_v8, -inf  ;;  %vm6890_vm1 = vmmov %vm6886_vm0 }
 0x7ef   :  { %2308 = vmax.xlane.f32.xlu0 %v2307_v17 }
 0x7f0   :  { %v2377_v9 = vpop.permute.xlu1 %2376  ;;  %v2482_v10 = vsel %vm2478_vm7, %v2476_v4, %v2480_v13  ;;  %vm6889_vm7 = vmmov %vm6886_vm0 }
 0x7f1   :  { %v2384_v21 = vadd.f32 %v2382_v57, %v2377_v9  ;;  %v2484_v12 = vadd.f32 %v2482_v10, %v6454_v51 }
 0x7f3   :  { %vm2386_vm9 = vcmp.gt.f32.partialorder %v2384_v21, 0.0  ;;  %v2388_v16 = vmul.f32 0.2, %v2384_v21  ;;  %v2486_v14 = vsel %vm6879_vm14, %v2484_v12, -inf  ;;  %vm6892_vm14 = vcmask 261120  }
 0x7f4   :  { %2487 = vmax.xlane.f32.xlu1 %v2486_v14 }
 0x7f5   :  { %v2470_v11 = vpop.permute.xlu1 %2469  ;;  %v2390_v24 = vsel %vm2386_vm9, %v2384_v21, %v2388_v16  ;;  %v4660_v16 = vld [vmem:[%s6774_s14] sm:$0xff]   ;;  %vm6891_vm9 = vmmov %vm6886_vm0 }
 0x7f6   :  { %v2477_v25 = vadd.f32 %v2475_v3, %v2470_v11  ;;  %v2392_v27 = vadd.f32 %v2390_v24, %v6460_v33 }
 0x7f8   :  { %vm2479_vm2 = vcmp.gt.f32.partialorder %v2477_v25, 0.0  ;;  %v2481_v28 = vmul.f32 0.2, %v2477_v25  ;;  %v2396_v29 = vsel %vm6880_vm3, %v2392_v27, -inf  ;;  %vm6894_vm3 = vmmov %vm6892_vm14 }
 0x7f9   :  { %2397 = vmax.xlane.f32.xlu1 %v2396_v29 }
 0x7fa   :  { %v2483_v22 = vsel %vm2479_vm2, %v2477_v25, %v2481_v28  ;;  %vm6893_vm2 = vmmov %vm6886_vm0 }
 0x7fb   :  { %v2485_v30 = vadd.f32 %v2483_v22, %v6460_v33 }
 0x7fd   :  { %v2489_v31 = vsel %vm6881_vm6, %v2485_v30, -inf }
 0x7fe   :  { %2490 = vmax.xlane.f32.xlu0 %v2489_v31 }
 0x80a   :  { %2415 = vrot.lane.b32.xlu1 %v6429_v18, %s5098_s1 }
 0x814   :  { %2507 = vrot.lane.b32.xlu0 %v6429_v18, %s5099_s11 }
 0x872   :  { %v2306_v19 = vpop.xlane.xlu1 %2305 }
 0x873   :  { %v2310_v32 = vsub.f32 %v2302_v55, %v2306_v19 }
 0x875   :  { %v2312_v37 = vmul.f32 1.442695, %v2310_v32 }
 0x877   :  { %v2395_v26 = vpop.xlane.xlu1 %2394 }
 0x878   :  { %v2399_v34 = vsub.f32 %v2391_v63, %v2395_v26 }
 0x87a   :  { %v2401_v36 = vmul.f32 1.442695, %v2399_v34  ;;  %v4662_v34 = vld [vmem:[%s6774_s14 + $0x10] sm:$0xff]  }
 0x87c   :  { %4703 = vpow2.f32 %v2401_v36  ;;  %v2309_v38 = vpop.xlane.xlu0 %2308  ;;  %v4663_v36 = vld [vmem:[%s6775_s15] sm:$0xff]  }
 0x87d   :  { %v2311_v39 = vsub.f32 %v2303_v8, %v2309_v38  ;;  %4705 = vpow2.f32 %v2312_v37 }
 0x87f   :  { %v2314_v41 = vmul.f32 1.442695, %v2311_v39  ;;  %v4664_v39 = vld [vmem:[%s6775_s15 + $0x8] sm:$0xff]  }
 0x881   :  { %4707 = vpow2.f32 %v2314_v41  ;;  %v2488_v58 = vpop.xlane.xlu1 %2487 }
 0x882   :  { %v2492_v60 = vsub.f32 %v2484_v12, %v2488_v58 }
 0x884   :  { %v2494_v62 = vmul.f32 1.442695, %v2492_v60 }
 0x886   :  { %v4704_v5 = vpop.eup %4703  ;;  %4709 = vpow2.f32 %v2494_v62  ;;  %v2398_v42 = vpop.xlane.xlu1 %2397 }
 0x887   :  { %v2400_v57 = vsub.f32 %v2392_v27, %v2398_v42  ;;  %v2405_v18 = vsel %vm6882_vm5, %v4704_v5, 0.0  ;;  %v4706_v49 = vpop.eup %4705 }
 0x888   :  { %2406 = vadd.xlane.f32.xlu1 %v2405_v18  ;;  %v2316_v61 = vsel %vm6885_vm4, %v4706_v49, 0.0 }
 0x889   :  { %v2403_v47 = vmul.f32 1.442695, %v2400_v57 }
 0x88a   :  { %v2416_v55 = vpop.permute.xlu1 %2415 }
 0x88b   :  { %v4708_v50 = vpop.eup %4707  ;;  %4711 = vpow2.f32 %v2403_v47  ;;  %v2491_v52 = vpop.xlane.xlu0 %2490 }
 0x88c   :  { %v2493_v53 = vsub.f32 %v2485_v30, %v2491_v52  ;;  %v2324_v20 = vpack.c.bf16 %v4708_v50, %v4706_v49  ;;  %v2319_v6 = vsel %vm6890_vm1, %v4708_v50, 0.0  ;;  %v4661_v30 = vld [vmem:[%s6774_s14 + $0x8] sm:$0xff]   ;;  %v4108_v52 = vld [vmem:[#allocation13] ss:$0 sm:$0xff]  ;;  %vm6897_vm1 = vmmov %vm6886_vm0 }
 0x88e   :  { %v2496_v23 = vmul.f32 1.442695, %v2493_v53  ;;  %4391 = vmatmul.mubr.msk.bf16.vlgmr.msra.gmra.mrb[28].mxu1 %vm6883_vm15, %v2324_v20 }
 0x88f   :  { %4395 = vmatpush3.bf16.msra.mxu1 %v2416_v55  ;;  %v2508_v45 = vpop.permute.xlu0 %2507  ;;  %4396 = vmatprep.mubr.msk.bf16.mxu1 %vm6834_vm10, %v5093_v15 }
 0x890   :  { %v4710_v56 = vpop.eup %4709  ;;  %4713 = vpow2.f32 %v2496_v23  ;;  %4401 = vmatpush3.bf16.msra.mxu0 %v2508_v45  ;;  %4406 = vmatprep.subr.bf16.mxu1 %v5093_v15 }
 0x891   :  { %v2498_v54 = vsel %vm6884_vm13, %v4710_v56, 0.0  ;;  %4416 = vmatprep.subr.bf16.mxu0 %v5093_v15  ;;  %vm6895_vm13 = vmmov %vm6886_vm0 }
 0x892   :  { %2499 = vadd.xlane.f32.xlu1 %v2498_v54 }
 0x895   :  { %v4712_v59 = vpop.eup %4711 }
 0x896   :  { %2317 = vadd.xlane.f32.xlu1 %v2316_v61  ;;  %v2408_v63 = vsel %vm6886_vm0, %v4712_v59, 0.0  ;;  %v2413_v1 = vpack.c.bf16 %v4712_v59, %v4704_v5 }
 0x897   :  { %2409 = vadd.xlane.f32.xlu0 %v2408_v63 }
 0x898   :  { %4397 = vmatmul.mubr.msk.bf16.vlgmr.msra.gmra.mrb[32].mxu1 %vm6887_vm12, %v2413_v1 }
 0x899   :  { %4412 = vmatprep.mubr.msk.bf16.mxu1 %vm6834_vm10, %v5093_v15  ;;  %4407 = vmatpush3.bf16.msra.mxu1 %v4660_v16 }
 0x89a   :  { %v4714_v2 = vpop.eup %4713  ;;  %4408 = vmatprep.subr.bf16.mxu1 %v5093_v15 }
 0x89b   :  { %v2501_v3 = vsel %vm6888_vm8, %v4714_v2, 0.0  ;;  %v2506_v7 = vpack.c.bf16 %v4714_v2, %v4710_v56  ;;  %v4109_v56 = vld [vmem:[#allocation15] ss:$0 sm:$0xff]  ;;  %v4665_v2 = vld [vmem:[%s6775_s15 + $0x10] sm:$0xff]   ;;  %vm6896_vm8 = vmmov %vm6886_vm0 }
 0x89c   :  { %2502 = vadd.xlane.f32.xlu0 %v2501_v3 }
 0x89d   :  { %4403 = vmatmul.mubr.msk.bf16.vlgmr.msra.gmra.mrb[24].mxu0 %vm6889_vm7, %v2506_v7  ;;  %4409 = vmatpush3.bf16.msra.mxu1 %v4661_v30 }
 0x89e   :  { %4422 = vmatprep.mubr.msk.bf16.mxu0 %vm6834_vm10, %v5093_v15  ;;  %4410 = vmatprep.subr.bf16.mxu1 %v5093_v15 }
 0x89f   :  { %4417 = vmatpush3.bf16.msra.mxu0 %v4663_v36 }
 0x8a0   :  { %2320 = vadd.xlane.f32.xlu0 %v2319_v6  ;;  %4418 = vmatprep.subr.bf16.mxu0 %v5093_v15 }
 0x8a1   :  { %4411 = vmatpush3.bf16.msra.mxu1 %v4662_v34 }
 0x8a2   :  { %4426 = vmatprep.subr.bf16.mxu1 %v5093_v15 }
 0x8a3   :  { %4419 = vmatpush3.bf16.msra.mxu0 %v4664_v39 }
 0x8a4   :  { %4420 = vmatprep.subr.bf16.mxu0 %v5093_v15 }
 0x8a7   :  { %4421 = vmatpush3.bf16.msra.mxu0 %v4665_v2 }
 0x8a8   :  { %4432 = vmatprep.subr.bf16.mxu0 %v5093_v15 }
 0x915   :  { %v2407_v4 = vpop.xlane.xlu1 %2406 }
 0x916   :  { %4715 = vrcp.f32 %v2407_v4 }
 0x91f   :  { %v2500_v9 = vpop.xlane.xlu1 %2499 }
 0x920   :  { %v4716_v14 = vpop.eup %4715 }
 0x923   :  { %v2318_v60 = vpop.xlane.xlu1 %2317 }
 0x924   :  { %v2410_v8 = vpop.xlane.xlu0 %2409 }
 0x925   :  { %4717 = vrcp.f32 %v2410_v8 }
 0x926   :  { %4719 = vrcp.f32 %v2500_v9 }
 0x929   :  { %v2503_v12 = vpop.xlane.xlu0 %2502 }
 0x92a   :  { %4721 = vrcp.f32 %v2503_v12 }
 0x92b   :  { %4723 = vrcp.f32 %v2318_v60 }
 0x92d   :  { %v2321_v62 = vpop.xlane.xlu0 %2320 }
 0x92e   :  { %4725 = vrcp.f32 %v2321_v62 }
 0x92f   :  { %v4718_v27 = vpop.eup %4717 }
 0x930   :  { %v4720_v31 = vpop.eup %4719 }
 0x934   :  { %v4722_v41 = vpop.eup %4721 }
 0x935   :  { %v4724_v42 = vpop.eup %4723 }
 0x938   :  { %v4726_v49 = vpop.eup %4725 }
 0x961   :  { %v2362_v13 = vpop.f32.mrb[28].mxu1 }
 0x962   :  { %v4392_v17 = vpop.f32.mrb[29].mxu1  ;;  %v2369_v57 = vmul.f32 %v4724_v42, %v2362_v13 }
 0x963   :  { %v2365_v10 = vpop.f32.mrb[30].mxu1  ;;  %v2732_v17 = vld [vmem:[#allocation16] sm:$0x3] }
 0x964   :  { %v4393_v21 = vpop.f32.mrb[31].mxu1  ;;  %v2370_v20 = vmul.f32 %v4726_v49, %v2365_v10 }
 0x96b   :  { %v2455_v11 = vpop.f32.mrb[32].mxu1 }
 0x96c   :  { %v2462_v24 = vmul.f32 %v4716_v14, %v2455_v11  ;;  %v4398_v25 = vpop.f32.mrb[33].mxu1 }
 0x96d   :  { %v2458_v28 = vpop.f32.mrb[34].mxu1 }
 0x96e   :  { %v2463_v29 = vmul.f32 %v4718_v27, %v2458_v28  ;;  %2558 = vrot.lane.b32.xlu1 %v2462_v24, %s5076_s25  ;;  %v4399_v22 = vpop.f32.mrb[35].mxu1 }
 0x970   :  { %v2547_v19 = vpop.f32.mrb[24].mxu0  ;;  %2560 = vrot.lane.b32.xlu0 %v2463_v29, %s5076_s25 }
 0x971   :  { %v2554_v26 = vmul.f32 %v4720_v31, %v2547_v19  ;;  %v4404_v32 = vpop.f32.mrb[25].mxu0 }
 0x972   :  { %v2550_v37 = vpop.f32.mrb[26].mxu0 }
 0x973   :  { %v4405_v38 = vpop.f32.mrb[27].mxu0  ;;  %2566 = vrot.lane.b32.xlu1 %v2554_v26, %s5100_s3  ;;  %v2555_v58 = vmul.f32 %v4722_v41, %v2550_v37 }
 0x977   :  { %2568 = vrot.lane.b32.xlu1 %v2555_v58, %s5100_s3 }
 0x9e0   :  { %v2559_v5 = vpop.permute.xlu1 %2558 }
 0x9e1   :  { %v2572_v18 = vsel %vm6891_vm9, %v2369_v57, %v2559_v5  ;;  %vm6898_vm9 = vmmov %vm6886_vm0 }
 0x9e2   :  { %v2561_v50 = vpop.permute.xlu0 %2560 }
 0x9e3   :  { %v2573_v55 = vsel %vm6893_vm2, %v2370_v20, %v2561_v50  ;;  %vm6900_vm2 = vmmov %vm6886_vm0 }
 0x9e5   :  { %v2567_v47 = vpop.permute.xlu1 %2566 }
 0x9e6   :  { %v2574_v53 = vsel %vm6892_vm14, %v2572_v18, %v2567_v47  ;;  %vm6899_vm14 = vmmov %vm6886_vm0 }
 0x9e7   :  { %v2583_v23 = vmul.f32 %v4108_v52, %v2574_v53 }
 0x9e9   :  { %v2569_v45 = vpop.permute.xlu1 %2568  ;;  %v2592_v61 = vadd.f32 %v4109_v56, %v2583_v23 }
 0x9ea   :  { %v2575_v54 = vsel %vm6894_vm3, %v2573_v55, %v2569_v45  ;;  %vm6901_vm3 = vmmov %vm6886_vm0 }
 0x9eb   :  { %v2584_v59 = vmul.f32 %v4108_v52, %v2575_v54 }
 0x9ed   :  { %v2593_v63 = vadd.f32 %v4109_v56, %v2584_v59 }
 0x9ef   :  { %v2594_v1 = vpack.c.bf16 %v2593_v63, %v2592_v61 }
 0x9f1   :  { %4413 = vmatmul.mubr.msk.bf16.vlgmr.msra.gmra.mrb[36].mxu1 %vm2191_vm11, %v2594_v1 }
 0x9f2   :  { %4428 = vmatprep.mubr.msk.bf16.mxu1 %vm6834_vm10, %v5093_v15 }
 0xac4   :  { %v2656_v3 = vpop.f32.mrb[36].mxu1 }
 0xac5   :  { %v4414_v7 = vpop.f32.mrb[37].mxu1 }
 0xac6   :  { %v2659_v6 = vpop.f32.mrb[38].mxu1 }
 0xac7   :  { %v6527_v4 = vpack.c.bf16 %v2659_v6, %v2656_v3  ;;  %v4415_v8 = vpop.f32.mrb[39].mxu1 }
 0xac9   :  { %4423 = vmatmul.mubr.msk.bf16.vlgmr.msra.gmra.mrb[28].mxu0 %vm2191_vm11, %v6527_v4  ;;  %v2689_v13 = vsel %vm2191_vm11, %v6527_v4, 0 }
 0xaca   :  { %4433 = vmatpush3.bf16.msra.mxu0 %v6527_v4  ;;  %4427 = vmatpush3.bf16.xpose.msra.mxu1 %v2689_v13 }
 0xacb   :  { %4438 = vmatprep.subr.bf16.mxu1 %v5093_v15  ;;  %4434 = vmatprep.mubr.msk.bf16.mxu0 %vm6834_vm10, %v5093_v15 }
 0xacc   :  { %4444 = vmatprep.subr.bf16.mxu0 %v5093_v15 }
 0xad1   :  { %4429 = vmatmul.mubr.msk.bf16.vlgmr.msra.gmra.mrb[40].mxu1 %vm2191_vm11, %v2732_v17 }
 0xad2   :  { %4440 = vmatprep.mubr.msk.bf16.mxu1 %vm6834_vm10, %v5093_v15 }
 0xb9c   :  { %v2725_v9 = vpop.f32.mrb[28].mxu0 }
 0xb9d   :  { %2778 = vperm.xlu0 %4540, %v2725_v9   ;;  %v4424_v10 = vpop.f32.mrb[29].mxu0 }
 0xb9e   :  { %v2728_v21 = vpop.f32.mrb[30].mxu0 }
 0xb9f   :  { %2783 = vperm.xlu1 %4547, %v2728_v21   ;;  %v4425_v12 = vpop.f32.mrb[31].mxu0 }
 0xba1   :  { %4546 = vset.pattern.permute.xlu0 %v5095_v35 }
 0xba2   :  { %2868 = vperm.xlu0 %4546, %v2725_v9  }
 0xba3   :  { %4548 = vset.pattern.permute.xlu1 %v5095_v35 }
 0xba4   :  { %2872 = vperm.xlu1 %4548, %v2728_v21   ;;  %v2770_v16 = vpop.f32.mrb[40].mxu1 }
 0xba5   :  { %v4430_v14 = vpop.f32.mrb[41].mxu1  ;;  %v2789_v25 = vrot.slane %v2770_v16, %v5552_v46  ;;  %v2878_v22 = vrot.slane %v2770_v16, %v5555_v48  ;;  %v2971_v60 = vrot.slane %v2770_v16, %v5546_v44 }
 0xba6   :  { %4550 = vset.pattern.permute.xlu0 %v5096_v40  ;;  %v2773_v11 = vpop.f32.mrb[42].mxu1 }
 0xba7   :  { %2965 = vperm.xlu0 %4550, %v2728_v21   ;;  %v4431_v24 = vpop.f32.mrb[43].mxu1 }
 0xba8   :  { %4549 = vset.pattern.permute.xlu1 %v5096_v40 }
 0xba9   :  { %2961 = vperm.xlu1 %4549, %v2725_v9  }
 0xbab   :  { %4551 = vset.pattern.permute.xlu0 %v5092_v0 }
 0xbad   :  { %4552 = vset.pattern.permute.xlu1 %v5092_v0 }
 0xc1c   :  { %v2779_v27 = vpop.permute.xlu0 %2778 }
 0xc1d   :  { %v2790_v28 = vadd.f32 %v2789_v25, %v2779_v27 }
 0xc1e   :  { %v2784_v29 = vpop.permute.xlu1 %2783 }
 0xc1f   :  { %vm2792_vm6 = vcmp.gt.f32.partialorder %v2790_v28, 0.0  ;;  %v2794_v30 = vmul.f32 0.2, %v2790_v28  ;;  %v2791_v31 = vadd.f32 %v2789_v25, %v2784_v29 }
 0xc21   :  { %vm2793_vm5 = vcmp.gt.f32.partialorder %v2791_v31, 0.0  ;;  %v2795_v19 = vmul.f32 0.2, %v2791_v31  ;;  %v2869_v26 = vpop.permute.xlu0 %2868  ;;  %v2796_v32 = vsel %vm2792_vm6, %v2790_v28, %v2794_v30  ;;  %vm6902_vm6 = vmmov %vm6886_vm0 }
 0xc22   :  { %v2879_v34 = vadd.f32 %v2878_v22, %v2869_v26  ;;  %v2798_v36 = vadd.f32 %v2796_v32, %v6454_v51 }
 0xc23   :  { %v2873_v37 = vpop.permute.xlu1 %2872  ;;  %v2797_v38 = vsel %vm2793_vm5, %v2791_v31, %v2795_v19  ;;  %vm6903_vm5 = vmmov %vm6886_vm0 }
 0xc24   :  { %vm2881_vm15 = vcmp.gt.f32.partialorder %v2879_v34, 0.0  ;;  %v2883_v39 = vmul.f32 0.2, %v2879_v34  ;;  %v2880_v41 = vadd.f32 %v2878_v22, %v2873_v37  ;;  %v2800_v58 = vsel %vm6895_vm13, %v2798_v36, -inf  ;;  %vm6905_vm13 = vmmov %vm6886_vm0 }
 0xc25   :  { %2801 = vmax.xlane.f32.xlu1 %v2800_v58  ;;  %v2799_v62 = vadd.f32 %v2797_v38, %v6460_v33 }
 0xc26   :  { %vm2882_vm4 = vcmp.gt.f32.partialorder %v2880_v41, 0.0  ;;  %v2884_v5 = vmul.f32 0.2, %v2880_v41  ;;  %v2966_v42 = vpop.permute.xlu0 %2965  ;;  %v2885_v57 = vsel %vm2881_vm15, %v2879_v34, %v2883_v39  ;;  %vm6904_vm15 = vmmov %vm6886_vm0 }
 0xc27   :  { %v2973_v18 = vadd.f32 %v2971_v60, %v2966_v42  ;;  %v2803_v47 = vsel %vm6886_vm0, %v2799_v62, -inf  ;;  %v2887_v49 = vadd.f32 %v2885_v57, %v6454_v51 }
 0xc28   :  { %2804 = vmax.xlane.f32.xlu0 %v2803_v47  ;;  %v2962_v50 = vpop.permute.xlu1 %2961  ;;  %v2886_v52 = vsel %vm2882_vm4, %v2880_v41, %v2884_v5  ;;  %vm6906_vm4 = vmmov %vm6886_vm0  ;;  %v4668_v47 = vld [vmem:[%s6779_s19 + $0x4] ss:$12 sps:$4 sm:$0xff]  }
 0xc29   :  { %vm2975_vm12 = vcmp.gt.f32.partialorder %v2973_v18, 0.0  ;;  %v2977_v53 = vmul.f32 0.2, %v2973_v18  ;;  %v2972_v20 = vadd.f32 %v2971_v60, %v2962_v50  ;;  %v2889_v55 = vsel %vm6896_vm8, %v2887_v49, -inf  ;;  %vm6908_vm8 = vmmov %vm6886_vm0 }
 0xc2a   :  { %2890 = vmax.xlane.f32.xlu1 %v2889_v55  ;;  %v2888_v23 = vadd.f32 %v2886_v52, %v6460_v33  ;;  %v4669_v55 = vld [vmem:[%s6779_s19 + $0x8] ss:$12 sps:$4 sm:$0xff]  }
 0xc2b   :  { %vm2974_vm7 = vcmp.gt.f32.partialorder %v2972_v20, 0.0  ;;  %v2976_v45 = vmul.f32 0.2, %v2972_v20  ;;  %v2979_v56 = vsel %vm2975_vm12, %v2973_v18, %v2977_v53  ;;  %vm6907_vm12 = vmmov %vm6886_vm0  ;;  %v4666_v18 = vld [vmem:[%s6779_s19] ss:$12 sps:$4 sm:$0xff]  }
 0xc2c   :  { %v2892_v54 = vsel %vm6897_vm1, %v2888_v23, -inf  ;;  %v2981_v59 = vadd.f32 %v2979_v56, %v6460_v33  ;;  %vm6910_vm1 = vmmov %vm6886_vm0 }
 0xc2d   :  { %2893 = vmax.xlane.f32.xlu0 %v2892_v54  ;;  %v2978_v61 = vsel %vm2974_vm7, %v2972_v20, %v2976_v45  ;;  %v4672_v45 = vld [vmem:[%s6779_s19 + $0x1c] ss:$12 sps:$4 sm:$0xff]   ;;  %vm6909_vm7 = vcmask 261120  }
 0xc2e   :  { %v2985_v63 = vsel %vm6898_vm9, %v2981_v59, -inf  ;;  %v2980_v1 = vadd.f32 %v2978_v61, %v6454_v51  ;;  %vm6911_vm9 = vmmov %vm6909_vm7 }
 0xc30   :  { %v2982_v2 = vsel %vm6899_vm14, %v2980_v1, -inf }
 0xc31   :  { %2986 = vmax.xlane.f32.xlu0 %v2985_v63  ;;  %2983 = vmax.xlane.f32.xlu1 %v2982_v2 }
 0xc42   :  { %2911 = vrot.lane.b32.xlu1 %v6527_v4, %s5098_s1 }
 0xc47   :  { %3003 = vrot.lane.b32.xlu0 %v6527_v4, %s5099_s11 }
 0xcb2   :  { %v2802_v3 = vpop.xlane.xlu1 %2801 }
 0xcb3   :  { %v2806_v7 = vsub.f32 %v2798_v36, %v2802_v3 }
 0xcb5   :  { %v2808_v6 = vmul.f32 1.442695, %v2806_v7  ;;  %v2805_v8 = vpop.xlane.xlu0 %2804  ;;  %v4673_v7 = vld [vmem:[%s6779_s19 + $0x20] ss:$12 sps:$4 sm:$0xff]  }
 0xcb6   :  { %v2807_v13 = vsub.f32 %v2799_v62, %v2805_v8  ;;  %v4676_v8 = vld [vmem:[%s6779_s19 + $0x34] ss:$12 sps:$4 sm:$0xff]  }
 0xcb7   :  { %v2891_v17 = vpop.xlane.xlu1 %2890  ;;  %4727 = vpow2.f32 %v2808_v6  ;;  %v4674_v6 = vld [vmem:[%s6779_s19 + $0x30] ss:$12 sps:$4 sm:$0xff]  }
 0xcb8   :  { %v2810_v9 = vmul.f32 1.442695, %v2807_v13  ;;  %v2895_v10 = vsub.f32 %v2887_v49, %v2891_v17 }
 0xcba   :  { %4729 = vpow2.f32 %v2810_v9  ;;  %v2897_v21 = vmul.f32 1.442695, %v2895_v10  ;;  %v2894_v12 = vpop.xlane.xlu0 %2893 }
 0xcbb   :  { %v2896_v16 = vsub.f32 %v2888_v23, %v2894_v12  ;;  %v4670_v23 = vld [vmem:[%s6779_s19 + $0x18] ss:$12 sps:$4 sm:$0xff]  }
 0xcbc   :  { %4731 = vpow2.f32 %v2897_v21  ;;  %v4677_v21 = vld [vmem:[%s6779_s19 + $0x38] ss:$12 sps:$4 sm:$0xff]  }
 0xcbd   :  { %v2899_v14 = vmul.f32 1.442695, %v2896_v16  ;;  %v4678_v12 = vld [vmem:[%s6780_s20 + $0x40] sm:$0xff]  }
 0xcbe   :  { %v2987_v11 = vpop.xlane.xlu0 %2986  ;;  %v2984_v24 = vpop.xlane.xlu1 %2983 }
 0xcbf   :  { %4733 = vpow2.f32 %v2899_v14  ;;  %v2989_v25 = vsub.f32 %v2981_v59, %v2987_v11  ;;  %v2988_v4 = vsub.f32 %v2980_v1, %v2984_v24 }
 0xcc1   :  { %v2992_v27 = vmul.f32 1.442695, %v2989_v25  ;;  %v2990_v28 = vmul.f32 1.442695, %v2988_v4  ;;  %v4728_v22 = vpop.eup %4727 }
 0xcc2   :  { %v2912_v29 = vpop.permute.xlu1 %2911  ;;  %v3004_v26 = vpop.permute.xlu0 %3003  ;;  %v2812_v5 = vsel %vm6907_vm12, %v4728_v22, 0.0  ;;  %vm6915_vm12 = vmmov %vm6886_vm0 }
 0xcc3   :  { %4735 = vpow2.f32 %v2992_v27  ;;  %4439 = vmatpush3.bf16.msra.mxu1 %v2912_v29 }
 0xcc4   :  { %v4730_v30 = vpop.eup %4729  ;;  %4737 = vpow2.f32 %v2990_v28  ;;  %3154 = vmatprep.subr.bf16.mxu1 %v4668_v47  ;;  %v4684_v47 = vld [vmem:[%s6780_s20 + $0x88] sm:$0xff]  }
 0xcc5   :  { %v2820_v31 = vpack.c.bf16 %v4730_v30, %v4728_v22  ;;  %v2815_v62 = vsel %vm6886_vm0, %v4730_v30, 0.0 }
 0xcc6   :  { %v4732_v19 = vpop.eup %4731 }
 0xcc7   :  { %4435 = vmatmul.mubr.msk.bf16.vlgmr.msra.gmra.mrb[32].mxu0 %vm6900_vm2, %v2820_v31  ;;  %v2901_v32 = vsel %vm6901_vm3, %v4732_v19, 0.0  ;;  %vm6912_vm2 = vmmov %vm6886_vm0 }
 0xcc8   :  { %4445 = vmatpush3.bf16.msra.mxu0 %v3004_v26  ;;  %2902 = vadd.xlane.f32.xlu1 %v2901_v32  ;;  %v4122_v26 = vld [vmem:[#allocation18] ss:$0 sm:$0xff] }
 0xcc9   :  { %v4734_v34 = vpop.eup %4733  ;;  %4446 = vmatprep.mubr.msk.bf16.mxu0 %vm6834_vm10, %v5093_v15  ;;  %4450 = vmatprep.subr.bf16.mxu0 %v5093_v15 }
 0xcca   :  { %v2904_v36 = vsel %vm6902_vm6, %v4734_v34, 0.0  ;;  %v2909_v37 = vpack.c.bf16 %v4734_v34, %v4732_v19 }
 0xccb   :  { %2905 = vadd.xlane.f32.xlu0 %v2904_v36 }
 0xccc   :  { %4441 = vmatmul.mubr.msk.bf16.vlgmr.msra.gmra.mrb[44].mxu1 %vm6903_vm5, %v2909_v37  ;;  %vm6913_vm5 = vmmov %vm6886_vm0 }
 0xccd   :  { %v4736_v38 = vpop.eup %4735  ;;  %3186 = vmatprep.mubr.bf16.mxu1 %v5092_v0  ;;  %3155 = vmatpush1.bf16.msra.mxu1 %v4666_v18  ;;  %v4682_v18 = vld [vmem:[%s6780_s20 + $0x8] sm:$0xff]  }
 0xcce   :  { %v4738_v39 = vpop.eup %4737  ;;  %v2997_v41 = vsel %vm6904_vm15, %v4736_v38, 0.0  ;;  %3156 = vmatprep.subr.bf16.mxu1 %v4672_v45  ;;  %v4691_v45 = vld [vmem:[%s6780_s20 + $0x20] sm:$0xff]  }
 0xccf   :  { %2998 = vadd.xlane.f32.xlu0 %v2997_v41  ;;  %v2994_v58 = vsel %vm6905_vm13, %v4738_v39, 0.0  ;;  %v3002_v60 = vpack.c.bf16 %v4736_v38, %v4738_v39  ;;  %v4123_v39 = vld [vmem:[#allocation19] ss:$0 sm:$0xff]  ;;  %vm6914_vm13 = vmmov %vm6886_vm0 }
 0xcd0   :  { %2995 = vadd.xlane.f32.xlu1 %v2994_v58 }
 0xcd1   :  { %4447 = vmatmul.mubr.msk.bf16.vlgmr.msra.gmra.mrb[36].mxu0 %vm6906_vm4, %v3002_v60  ;;  %3157 = vmatpush1.bf16.msra.mxu1 %v4670_v23  ;;  %v4689_v23 = vld [vmem:[%s6780_s20 + $0x60] sm:$0xff]  }
 0xcd2   :  { %4456 = vmatprep.mubr.msk.bf16.mxu0 %vm6834_vm10, %v5093_v15  ;;  %4451 = vmatpush3.bf16.msra.mxu0 %v4669_v55  ;;  %v4690_v55 = vld [vmem:[%s6780_s20 + $0x98] sm:$0xff]  }
 0xcd3   :  { %2816 = vadd.xlane.f32.xlu0 %v2815_v62  ;;  %4452 = vmatprep.subr.bf16.mxu0 %v5093_v15 }
 0xcd4   :  { %2813 = vadd.xlane.f32.xlu1 %v2812_v5  ;;  %3158 = vmatprep.subr.bf16.mxu1 %v4676_v8  ;;  %v4679_v5 = vld [vmem:[%s6780_s20] sm:$0xff]   ;;  %v5101_v8 = vmov 1983009808  }
 0xcd5   :  { %3159 = vmatpush1.bf16.msra.mxu1 %v4674_v6  ;;  %v4701_v6 = vld [vmem:[%s6780_s20 + $0xb8] sm:$0xff]  }
 0xcd6   :  { %4453 = vmatpush3.bf16.msra.mxu0 %v4673_v7  ;;  %4301 = vmatprep.subr.bf16.mxu1 %v4678_v12  ;;  %v4700_v7 = vld [vmem:[%s6780_s20 + $0x38] sm:$0xff]  }
 0xcd7   :  { %4454 = vmatprep.subr.bf16.mxu0 %v5093_v15 }
 0xcda   :  { %4455 = vmatpush3.bf16.msra.mxu0 %v4677_v21 }
 0xcdb   :  { %4460 = vmatprep.subr.bf16.mxu0 %v5093_v15 }
 0xd55   :  { %v2903_v0 = vpop.xlane.xlu1 %2902 }
 0xd56   :  { %4739 = vrcp.f32 %v2903_v0  ;;  %v4681_v0 = vld [vmem:[%s6780_s20 + $0x80] sm:$0xff]  }
 0xd58   :  { %v2906_v42 = vpop.xlane.xlu0 %2905 }
 0xd59   :  { %4741 = vrcp.f32 %v2906_v42 }
 0xd5c   :  { %v2999_v50 = vpop.xlane.xlu0 %2998 }
 0xd5d   :  { %v2996_v57 = vpop.xlane.xlu1 %2995 }
 0xd5e   :  { %4743 = vrcp.f32 %v2996_v57  ;;  %v4680_v57 = vld [vmem:[%s6780_s20 + $0x48] sm:$0xff]  }
 0xd5f   :  { %4745 = vrcp.f32 %v2999_v50  ;;  %v4685_v50 = vld [vmem:[%s6780_s20 + $0x10] sm:$0xff]  }
 0xd60   :  { %v4740_v56 = vpop.eup %4739  ;;  %v2817_v4 = vpop.xlane.xlu0 %2816 }
 0xd61   :  { %v2814_v25 = vpop.xlane.xlu1 %2813 }
 0xd62   :  { %4747 = vrcp.f32 %v2814_v25 }
 0xd63   :  { %v4742_v63 = vpop.eup %4741  ;;  %4749 = vrcp.f32 %v2817_v4 }
 0xd68   :  { %v4744_v13 = vpop.eup %4743 }
 0xd69   :  { %v4746_v11 = vpop.eup %4745 }
 0xd6c   :  { %v4748_v28 = vpop.eup %4747 }
 0xd6d   :  { %v4750_v31 = vpop.eup %4749 }
 0xd9a   :  { %v2858_v49 = vpop.f32.mrb[32].mxu0 }
 0xd9b   :  { %v4436_v52 = vpop.f32.mrb[33].mxu0  ;;  %v2865_v29 = vmul.f32 %v4748_v28, %v2858_v49  ;;  %v4683_v49 = vld [vmem:[%s6780_s20 + $0x50] sm:$0xff]  }
 0xd9c   :  { %v2861_v53 = vpop.f32.mrb[34].mxu0  ;;  %v4687_v52 = vld [vmem:[%s6780_s20 + $0x90] sm:$0xff]  }
 0xd9d   :  { %v4437_v20 = vpop.f32.mrb[35].mxu0  ;;  %v2866_v34 = vmul.f32 %v4750_v31, %v2861_v53  ;;  %v4686_v53 = vld [vmem:[%s6780_s20 + $0x58] sm:$0xff]  }
 0xd9e   :  { %v4688_v20 = vld [vmem:[%s6780_s20 + $0x18] sm:$0xff]  }
 0xd9f   :  { %v2951_v54 = vpop.f32.mrb[44].mxu1 }
 0xda0   :  { %v2958_v59 = vmul.f32 %v4740_v56, %v2951_v54  ;;  %v4442_v61 = vpop.f32.mrb[45].mxu1  ;;  %v4693_v56 = vld [vmem:[%s6780_s20 + $0xa0] sm:$0xff]   ;;  %v4692_v54 = vld [vmem:[%s6780_s20 + $0x68] sm:$0xff]  }
 0xda1   :  { %v2954_v1 = vpop.f32.mrb[46].mxu1  ;;  %v4696_v61 = vld [vmem:[%s6780_s20 + $0xa8] sm:$0xff]  }
 0xda2   :  { %v2959_v2 = vmul.f32 %v4742_v63, %v2954_v1  ;;  %3054 = vrot.lane.b32.xlu1 %v2958_v59, %s5076_s25  ;;  %v4443_v3 = vpop.f32.mrb[47].mxu1  ;;  %v4694_v59 = vld [vmem:[%s6780_s20 + $0x28] sm:$0xff]   ;;  %v4695_v63 = vld [vmem:[%s6780_s20 + $0x70] sm:$0xff]  }
 0xda3   :  { %v4697_v1 = vld [vmem:[%s6780_s20 + $0x30] sm:$0xff]   ;;  %v4698_v3 = vld [vmem:[%s6780_s20 + $0x78] sm:$0xff]  }
 0xda4   :  { %v3043_v17 = vpop.f32.mrb[36].mxu0  ;;  %3056 = vrot.lane.b32.xlu0 %v2959_v2, %s5076_s25  ;;  %v4699_v2 = vld [vmem:[%s6780_s20 + $0xb0] sm:$0xff]  }
 0xda5   :  { %v3050_v9 = vmul.f32 %v4744_v13, %v3043_v17  ;;  %v4448_v10 = vpop.f32.mrb[37].mxu0  ;;  %v3519_v13 = vunpack.c.l.s4 %v5101_v8 }
 0xda6   :  { %v3046_v16 = vpop.f32.mrb[38].mxu0  ;;  %v3515_v10 = vld [vmem:[#allocation21] sm:$0x3f] }
 0xda7   :  { %v4449_v14 = vpop.f32.mrb[39].mxu0  ;;  %3062 = vrot.lane.b32.xlu1 %v3050_v9, %s5100_s3  ;;  %v3051_v24 = vmul.f32 %v4746_v11, %v3046_v16  ;;  %v3520_v17 = vunpack.c.0.s8 %v3519_v13 }
 0xda9   :  { %v3523_v9 = vsub.s32 %v3520_v17, %v5543_v43  ;;  %v3517_v43 = vcombine.high %v3515_v10, %v3515_v10 }
 0xdab   :  { %3064 = vrot.lane.b32.xlu1 %v3051_v24, %s5100_s3  ;;  %v3524_v16 = vrot.slane %v3515_v10, %v3523_v9  ;;  %v3531_v31 = vrot.slane %v3517_v43, %v3523_v9 }
 0xe14   :  { %v3055_v27 = vpop.permute.xlu1 %3054 }
 0xe15   :  { %v3068_v22 = vsel %vm6908_vm8, %v2865_v29, %v3055_v27  ;;  %vm6916_vm8 = vmmov %vm6886_vm0 }
 0xe16   :  { %v3057_v19 = vpop.permute.xlu0 %3056 }
 0xe17   :  { %v3069_v36 = vsel %vm6910_vm1, %v2866_v34, %v3057_v19  ;;  %vm6918_vm1 = vmmov %vm6886_vm0 }
 0xe19   :  { %v3063_v30 = vpop.permute.xlu1 %3062 }
 0xe1a   :  { %v3070_v32 = vsel %vm6909_vm7, %v3068_v22, %v3063_v30  ;;  %v3532_v30 = vcombine.high %v3524_v16, %v3524_v16  ;;  %vm6917_vm7 = vmmov %vm6886_vm0 }
 0xe1b   :  { %v3079_v37 = vmul.f32 %v4122_v26, %v3070_v32 }
 0xe1d   :  { %v3065_v38 = vpop.permute.xlu1 %3064  ;;  %v3088_v60 = vadd.f32 %v4123_v39, %v3079_v37 }
 0xe1e   :  { %v3071_v41 = vsel %vm6911_vm9, %v3069_v36, %v3065_v38  ;;  %vm6919_vm9 = vmmov %vm6886_vm0 }
 0xe1f   :  { %v3080_v58 = vmul.f32 %v4122_v26, %v3071_v41 }
 0xe21   :  { %v3089_v62 = vadd.f32 %v4123_v39, %v3080_v58 }
 0xe23   :  { %v3090_v42 = vpack.c.bf16 %v3089_v62, %v3088_v60 }
 0xe25   :  { %4133 = vmatmul.mubr.msk.bf16.vlgmr.msra.gmra.mrb[48].mxu1 %vm2191_vm11, %v3090_v42  ;;  %4457 = vmatmul.mubr.msk.bf16.vlgmr.msra.gmra.mrb[40].mxu0 %vm2191_vm11, %v3090_v42 }
 0xe26   :  { %4302 = vmatpush3.bf16.msra.mxu1 %v4679_v5  ;;  %4461 = vmatpush3.bf16.msra.mxu0 %v4681_v0 }
 0xe27   :  { %4303 = vmatprep.subr.bf16.mxu1 %v4680_v57  ;;  %4462 = vmatprep.subr.bf16.mxu0 %v5093_v15 }
 0xe28   :  { %4476 = vmatprep.mubr.msk.bf16.mxu0 %vm6834_vm10, %v5093_v15 }
 0xe2a   :  { %4304 = vmatpush3.bf16.msra.mxu1 %v4682_v18  ;;  %4463 = vmatpush3.bf16.msra.mxu0 %v4684_v47 }
 0xe2b   :  { %4305 = vmatprep.subr.bf16.mxu1 %v4683_v49  ;;  %4464 = vmatprep.subr.bf16.mxu0 %v5093_v15 }
 0xe2e   :  { %4306 = vmatpush3.bf16.msra.mxu1 %v4685_v50  ;;  %4465 = vmatpush3.bf16.msra.mxu0 %v4687_v52 }
 0xe2f   :  { %4307 = vmatprep.subr.bf16.mxu1 %v4686_v53  ;;  %4466 = vmatprep.subr.bf16.mxu0 %v5093_v15 }
 0xe32   :  { %4308 = vmatpush3.bf16.msra.mxu1 %v4688_v20  ;;  %4467 = vmatpush3.bf16.msra.mxu0 %v4690_v55 }
 0xe33   :  { %4309 = vmatprep.subr.bf16.mxu1 %v4689_v23  ;;  %4468 = vmatprep.subr.bf16.mxu0 %v5093_v15 }
 0xe36   :  { %4310 = vmatpush3.bf16.msra.mxu1 %v4691_v45  ;;  %4469 = vmatpush3.bf16.msra.mxu0 %v4693_v56 }
 0xe37   :  { %4311 = vmatprep.subr.bf16.mxu1 %v4692_v54  ;;  %4470 = vmatprep.subr.bf16.mxu0 %v5093_v15 }
 0xe3a   :  { %4312 = vmatpush3.bf16.msra.mxu1 %v4694_v59  ;;  %4471 = vmatpush3.bf16.msra.mxu0 %v4696_v61 }
 0xe3b   :  { %4313 = vmatprep.subr.bf16.mxu1 %v4695_v63  ;;  %4472 = vmatprep.subr.bf16.mxu0 %v5093_v15 }
 0xe3e   :  { %4314 = vmatpush3.bf16.msra.mxu1 %v4697_v1  ;;  %4473 = vmatpush3.bf16.msra.mxu0 %v4699_v2 }
 0xe3f   :  { %4315 = vmatprep.subr.bf16.mxu1 %v4698_v3  ;;  %4474 = vmatprep.subr.bf16.mxu0 %v5093_v15 }
 0xe42   :  { %4316 = vmatpush3.bf16.msra.mxu1 %v4700_v7  ;;  %4475 = vmatpush3.bf16.msra.mxu0 %v4701_v6 }
 0xe43   :  { %4486 = vmatprep.subr.bf16.mxu0 %v5093_v15 }
 0xef8   :  { %v3188_v21 = vpop.f32.mrb[48].mxu1  ;;  %v3231_v12 = vpop.f32.mrb[40].mxu0 }
 0xef9   :  { %v3190_v14 = vpop.f32.mrb[49].mxu1  ;;  %v4458_v11 = vpop.f32.mrb[41].mxu0 }
 0xefa   :  { %v3192_v24 = vpop.f32.mrb[50].mxu1  ;;  %v3234_v25 = vpop.f32.mrb[42].mxu0 }
 0xefb   :  { %v3238_v4 = vpack.c.bf16 %v3192_v24, %v3188_v21  ;;  %v3240_v27 = vpack.c.bf16 %v3234_v25, %v3231_v12  ;;  %v3194_v28 = vpop.f32.mrb[51].mxu1  ;;  %v4459_v29 = vpop.f32.mrb[43].mxu0 }
 0xefc   :  { %v6704_v22 = vpack.c.bf16 %v3194_v28, %v3190_v14 }
 0xefd   :  { %4477 = vmatmul.mubr.bf16.vlgmr.msra.gmra.mrb[44].mxu0 %v3240_v27 }
 0xefe   :  { %4487 = vmatpush3.bf16.msra.mxu0 %v3238_v4  ;;  %3465 = vmatprep.mubr.bf16.mxu1 %v6704_v22 }
 0xeff   :  { %3536 = vmatprep.subr.bf16.mxu1 %v6704_v22  ;;  %3466 = vmatmul.mubr.bf16.vlgmr.msra.gmra.mrb[52].mxu1 %v3238_v4 }
 0xf00   :  { %3537 = vmatpush1.bf16.xpose.msra.mxu1 %v3238_v4  ;;  %3568 = vmatprep.mubr.bf16.mxu1 %v3532_v30 }
 0xf01   :  { %4480 = vmatprep.subr.bf16.mxu1 %v5093_v15  ;;  %4488 = vmatprep.mubr.msk.bf16.mxu0 %vm6834_vm10, %v5093_v15 }
 0xf02   :  { %4492 = vmatprep.subr.bf16.mxu0 %v5093_v15 }
 0xf07   :  { %3569 = vmatmul.mubr.bf16.vlgmr.msra.gmra.mrb[56].mxu1 %v3524_v16 }
 0xf08   :  { %4481 = vmatpush3.bf16.xpose.msra.mxu1 %v3240_v27  ;;  %4482 = vmatprep.mubr.msk.bf16.mxu1 %vm6834_vm10, %v5093_v15 }
 0xf09   :  { %4498 = vmatprep.subr.bf16.mxu1 %v5093_v15 }
 0xf13   :  { %4483 = vmatmul.mubr.bf16.vlgmr.msra.gmra.mrb[56].mxu1 %v3531_v31 }
 0xf14   :  { %4499 = vmatpush3.bf16.msra.mxu1 %v3240_v27  ;;  %4500 = vmatprep.mubr.msk.bf16.mxu1 %vm6834_vm10, %v5093_v15 }
 0xfd0   :  { %v3508_v19 = vpop.f32.mrb[44].mxu0 }
 0xfd1   :  { %v4478_v26 = vpop.f32.mrb[45].mxu0 }
 0xfd2   :  { %v4317_v32 = vpop.f32.mrb[52].mxu1  ;;  %v3511_v34 = vpop.f32.mrb[46].mxu0 }
 0xfd3   :  { %v4318_v36 = vpop.f32.mrb[53].mxu1  ;;  %v4479_v37 = vpop.f32.mrb[47].mxu0 }
 0xfd4   :  { %v4319_v38 = vadd.f32 %v4318_v36, %v4317_v32  ;;  %v4320_v39 = vpop.f32.mrb[54].mxu1 }
 0xfd5   :  { %v4321_v41 = vpop.f32.mrb[55].mxu1 }
 0xfd6   :  { %v3509_v58 = vadd.f32 %v4319_v38, %v3508_v19  ;;  %v4322_v60 = vadd.f32 %v4321_v41, %v4320_v39 }
 0xfd8   :  { %v3512_v62 = vadd.f32 %v4322_v60, %v3511_v34  ;;  %3618 = vperm.xlu0 %4551, %v3509_v58  }
 0xfda   :  { %3623 = vperm.xlu1 %4552, %v3512_v62  }
 0xfdc   :  { %4554 = vset.pattern.permute.xlu0 %v5095_v35 }
 0xfdd   :  { %3712 = vperm.xlu0 %4554, %v3512_v62  }
 0xfde   :  { %4553 = vset.pattern.permute.xlu1 %v5095_v35 }
 0xfdf   :  { %3708 = vperm.xlu1 %4553, %v3509_v58  }
 0xfe1   :  { %4556 = vset.pattern.permute.xlu0 %v5096_v40 }
 0xfe3   :  { %4555 = vset.pattern.permute.xlu1 %v5096_v40 }
 0xfe4   :  { %3797 = vperm.xlu1 %4555, %v3509_v58  }
 0xfe6   :  { %v3610_v5 = vpop.f32.mrb[56].mxu1 }
 0xfe7   :  { %v4484_v0 = vpop.f32.mrb[57].mxu1  ;;  %v3629_v18 = vrot.slane %v3610_v5, %v5552_v46  ;;  %v3718_v35 = vrot.slane %v3610_v5, %v5555_v48  ;;  %v3807_v2 = vrot.slane %v3610_v5, %v5546_v44 }
 0xfe8   :  { %3801 = vperm.xlu1 %4555, %v3512_v62   ;;  %v3613_v42 = vpop.f32.mrb[58].mxu1 }
 0xfe9   :  { %v4485_v57 = vpop.f32.mrb[59].mxu1 }
0x1057   :  { %v3619_v47 = vpop.permute.xlu0 %3618 }
0x1058   :  { %v3630_v49 = vadd.f32 %v3629_v18, %v3619_v47 }
0x1059   :  { %v3624_v50 = vpop.permute.xlu1 %3623 }
0x105a   :  { %vm3632_vm11 = vcmp.gt.f32.partialorder %v3630_v49, 0.0  ;;  %v3634_v52 = vmul.f32 0.2, %v3630_v49  ;;  %v3631_v53 = vadd.f32 %v3629_v18, %v3624_v50 }
0x105c   :  { %vm3633_vm14 = vcmp.gt.f32.partialorder %v3631_v53, 0.0  ;;  %v3635_v20 = vmul.f32 0.2, %v3631_v53  ;;  %v3713_v55 = vpop.permute.xlu0 %3712  ;;  %v3636_v40 = vsel %vm3632_vm11, %v3630_v49, %v3634_v52  ;;  %vm6920_vm11 = vmmov %vm6886_vm0 }
0x105d   :  { %v3720_v23 = vadd.f32 %v3718_v35, %v3713_v55  ;;  %v3638_v45 = vadd.f32 %v3636_v40, %v6454_v51 }
0x105e   :  { %v3709_v56 = vpop.permute.xlu1 %3708  ;;  %v3637_v54 = vsel %vm3633_vm14, %v3631_v53, %v3635_v20  ;;  %vm6921_vm14 = vmmov %vm6886_vm0 }
0x105f   :  { %v3724_v59 = vmul.f32 0.2, %v3720_v23  ;;  %v3719_v61 = vadd.f32 %v3718_v35, %v3709_v56  ;;  %v3640_v46 = vsel %vm6912_vm2, %v3638_v45, -inf  ;;  %vm3722_vm3 = vcmp.gt.f32.partialorder %v3720_v23, 0.0  ;;  %vm6922_vm2 = vmmov %vm6886_vm0 }
0x1060   :  { %3641 = vmax.xlane.f32.xlu0 %v3640_v46  ;;  %v3639_v63 = vadd.f32 %v3637_v54, %v6460_v33 }
0x1061   :  { %vm3721_vm6 = vcmp.gt.f32.partialorder %v3719_v61, 0.0  ;;  %v3723_v1 = vmul.f32 0.2, %v3719_v61  ;;  %v3726_v6 = vsel %vm3722_vm3, %v3720_v23, %v3724_v59  ;;  %vm6923_vm3 = vmmov %vm6886_vm0 }
0x1062   :  { %v3643_v48 = vsel %vm6913_vm5, %v3639_v63, -inf  ;;  %v3728_v10 = vadd.f32 %v3726_v6, %v6460_v33 }
0x1063   :  { %3644 = vmax.xlane.f32.xlu1 %v3643_v48  ;;  %v3798_v3 = vpop.permute.xlu1 %3797  ;;  %v3725_v7 = vsel %vm3721_vm6, %v3719_v61, %v3723_v1  ;;  %vm6924_vm6 = vmmov %vm6886_vm0 }
0x1064   :  { %v3808_v8 = vadd.f32 %v3807_v2, %v3798_v3  ;;  %v3727_v13 = vadd.f32 %v3725_v7, %v6454_v51  ;;  %v3732_v11 = vsel %vm6886_vm0, %v3728_v10, -inf }
0x1066   :  { %vm3810_vm15 = vcmp.gt.f32.partialorder %v3808_v8, 0.0  ;;  %v3812_v17 = vmul.f32 0.2, %v3808_v8  ;;  %v3729_v9 = vsel %vm6914_vm13, %v3727_v13, -inf }
0x1067   :  { %v3802_v21 = vpop.permute.xlu1 %3801  ;;  %3730 = vmax.xlane.f32.xlu0 %v3729_v9 }
0x1068   :  { %v3809_v12 = vadd.f32 %v3807_v2, %v3802_v21  ;;  %v3814_v16 = vsel %vm3810_vm15, %v3808_v8, %v3812_v17 }
0x1069   :  { %v3816_v14 = vadd.f32 %v3814_v16, %v6454_v51 }
0x106a   :  { %vm3811_vm4 = vcmp.gt.f32.partialorder %v3809_v12, 0.0  ;;  %v3813_v44 = vmul.f32 0.2, %v3809_v12 }
0x106b   :  { %3733 = vmax.xlane.f32.xlu0 %v3732_v11  ;;  %v3818_v24 = vsel %vm6915_vm12, %v3816_v14, -inf }
0x106c   :  { %3819 = vmax.xlane.f32.xlu1 %v3818_v24  ;;  %v3815_v25 = vsel %vm3811_vm4, %v3809_v12, %v3813_v44 }
0x106d   :  { %v3817_v4 = vadd.f32 %v3815_v25, %v6460_v33 }
0x106f   :  { %v3821_v27 = vsel %vm6916_vm8, %v3817_v4, -inf }
0x1070   :  { %3822 = vmax.xlane.f32.xlu0 %v3821_v27 }
0x10ed   :  { %v3642_v28 = vpop.xlane.xlu0 %3641 }
0x10ee   :  { %v3646_v29 = vsub.f32 %v3638_v45, %v3642_v28 }
0x10f0   :  { %v3648_v30 = vmul.f32 1.442695, %v3646_v29  ;;  %v3645_v43 = vpop.xlane.xlu1 %3644 }
0x10f1   :  { %v3647_v31 = vsub.f32 %v3639_v63, %v3645_v43  ;;  %v4163_v43 = vld [vmem:[%s6926_s26] ss:$0 sm:$0xff] }
0x10f2   :  { %4751 = vpow2.f32 %v3648_v30 }
0x10f3   :  { %v3650_v51 = vmul.f32 1.442695, %v3647_v31 }
0x10f4   :  { %v3731_v19 = vpop.xlane.xlu0 %3730 }
0x10f5   :  { %4753 = vpow2.f32 %v3650_v51  ;;  %v3735_v26 = vsub.f32 %v3727_v13, %v3731_v19 }
0x10f7   :  { %v3737_v32 = vmul.f32 1.442695, %v3735_v26 }
0x10f8   :  { %v3734_v34 = vpop.xlane.xlu0 %3733 }
0x10f9   :  { %4755 = vpow2.f32 %v3737_v32  ;;  %v3736_v36 = vsub.f32 %v3728_v10, %v3734_v34  ;;  %v3820_v37 = vpop.xlane.xlu1 %3819 }
0x10fa   :  { %v3824_v38 = vsub.f32 %v3816_v14, %v3820_v37 }
0x10fb   :  { %v3739_v33 = vmul.f32 1.442695, %v3736_v36 }
0x10fc   :  { %v4752_v39 = vpop.eup %4751  ;;  %v3826_v41 = vmul.f32 1.442695, %v3824_v38 }
0x10fd   :  { %4757 = vpow2.f32 %v3739_v33  ;;  %v3823_v58 = vpop.xlane.xlu0 %3822  ;;  %v3652_v60 = vsel %vm6917_vm7, %v4752_v39, 0.0 }
0x10fe   :  { %4759 = vpow2.f32 %v3826_v41  ;;  %v3825_v62 = vsub.f32 %v3817_v4, %v3823_v58  ;;  %3653 = vadd.xlane.f32.xlu1 %v3652_v60  ;;  %v4162_v4 = vld [vmem:[%s6782_s22] ss:$0 sm:$0xff] }
0x10ff   :  { %v4754_v5 = vpop.eup %4753 }
0x1100   :  { %v3828_v0 = vmul.f32 1.442695, %v3825_v62  ;;  %v3655_v42 = vsel %vm6918_vm1, %v4754_v5, 0.0  ;;  %v3660_v57 = vpack.c.bf16 %v4754_v5, %v4752_v39 }
0x1101   :  { %3656 = vadd.xlane.f32.xlu0 %v3655_v42 }
0x1102   :  { %4761 = vpow2.f32 %v3828_v0  ;;  %4489 = vmatmul.mubr.msk.bf16.vlgmr.msra.gmra.mrb[48].mxu0 %vm6919_vm9, %v3660_v57 }
0x1103   :  { %v4756_v18 = vpop.eup %4755  ;;  %4493 = vmatpush3.bf16.msra.mxu0 %v6704_v22  ;;  %4494 = vmatprep.mubr.msk.bf16.mxu0 %vm6834_vm10, %v5093_v15  ;;  %vm6925_vm10 = vmmov %vm6886_vm0 }
0x1104   :  { %v3741_v47 = vsel %vm6920_vm11, %v4756_v18, 0.0 }
0x1105   :  { %3742 = vadd.xlane.f32.xlu1 %v3741_v47 }
0x1107   :  { %v4758_v49 = vpop.eup %4757 }
0x1108   :  { %v4760_v50 = vpop.eup %4759  ;;  %v3744_v52 = vsel %vm6921_vm14, %v4758_v49, 0.0  ;;  %v3749_v53 = vpack.c.bf16 %v4758_v49, %v4756_v18 }
0x1109   :  { %3745 = vadd.xlane.f32.xlu0 %v3744_v52  ;;  %v3830_v35 = vsel %vm6922_vm2, %v4760_v50, 0.0 }
0x110a   :  { %3831 = vadd.xlane.f32.xlu1 %v3830_v35  ;;  %4495 = vmatmul.mubr.msk.bf16.vlgmr.msra.gmra.mrb[52].mxu0 %vm6923_vm3, %v3749_v53 }
0x110c   :  { %v4762_v20 = vpop.eup %4761 }
0x110d   :  { %v3833_v22 = vsel %vm6924_vm6, %v4762_v20, 0.0  ;;  %v3838_v55 = vpack.c.bf16 %v4762_v20, %v4760_v50 }
0x110e   :  { %3834 = vadd.xlane.f32.xlu0 %v3833_v22 }
0x110f   :  { %4501 = vmatmul.mubr.msk.bf16.vlgmr.msra.gmra.mrb[60].mxu1 %vm6925_vm10, %v3838_v55 }
0x118b   :  { %v3654_v15 = vpop.xlane.xlu1 %3653 }
0x118c   :  { %4763 = vrcp.f32 %v3654_v15 }
0x118e   :  { %v3657_v40 = vpop.xlane.xlu0 %3656 }
0x1192   :  { %v3743_v23 = vpop.xlane.xlu1 %3742 }
0x1193   :  { %4765 = vrcp.f32 %v3743_v23 }
0x1194   :  { %4767 = vrcp.f32 %v3657_v40 }
0x1196   :  { %v3746_v45 = vpop.xlane.xlu0 %3745  ;;  %v4764_v1 = vpop.eup %4763 }
0x1197   :  { %4769 = vrcp.f32 %v3746_v45  ;;  %v3832_v56 = vpop.xlane.xlu1 %3831 }
0x1198   :  { %4771 = vrcp.f32 %v3832_v56 }
0x119b   :  { %v3835_v61 = vpop.xlane.xlu0 %3834 }
0x119c   :  { %4773 = vrcp.f32 %v3835_v61 }
0x119d   :  { %v4766_v48 = vpop.eup %4765 }
0x119e   :  { %v4768_v3 = vpop.eup %4767 }
0x11a1   :  { %v4770_v13 = vpop.eup %4769 }
0x11a2   :  { %v4772_v16 = vpop.eup %4771 }
0x11a6   :  { %v4774_v25 = vpop.eup %4773 }
0x11d5   :  { %v3698_v54 = vpop.f32.mrb[48].mxu0 }
0x11d6   :  { %v4490_v59 = vpop.f32.mrb[49].mxu0  ;;  %v3705_v7 = vmul.f32 %v4764_v1, %v3698_v54 }
0x11d7   :  { %v3701_v46 = vpop.f32.mrb[50].mxu0 }
0x11d8   :  { %v4491_v63 = vpop.f32.mrb[51].mxu0  ;;  %v3706_v9 = vmul.f32 %v4768_v3, %v3701_v46 }
0x11dd   :  { %v3787_v2 = vpop.f32.mrb[52].mxu0 }
0x11de   :  { %v3794_v6 = vmul.f32 %v4766_v48, %v3787_v2  ;;  %v4496_v8 = vpop.f32.mrb[53].mxu0 }
0x11df   :  { %v3790_v17 = vpop.f32.mrb[54].mxu0 }
0x11e0   :  { %v3885_v10 = vadd.f32 %v3794_v6, %v3705_v7  ;;  %v3795_v21 = vmul.f32 %v4770_v13, %v3790_v17  ;;  %v4497_v12 = vpop.f32.mrb[55].mxu0 }
0x11e2   :  { %v3886_v14 = vadd.f32 %v3795_v21, %v3706_v9  ;;  %v3876_v44 = vpop.f32.mrb[60].mxu1 }
0x11e3   :  { %v3883_v11 = vmul.f32 %v4772_v16, %v3876_v44  ;;  %v4502_v24 = vpop.f32.mrb[61].mxu1 }
0x11e4   :  { %v3879_v27 = vpop.f32.mrb[62].mxu1 }
0x11e5   :  { %v3887_v28 = vadd.f32 %v3885_v10, %v3883_v11  ;;  %v3884_v29 = vmul.f32 %v4774_v25, %v3879_v27  ;;  %v4503_v30 = vpop.f32.mrb[63].mxu1 }
0x11e7   :  { %v3896_v31 = vmul.f32 %v4162_v4, %v3887_v28  ;;  %v3888_v51 = vadd.f32 %v3886_v14, %v3884_v29 }
0x11e9   :  { %v3905_v19 = vadd.f32 %v4163_v43, %v3896_v31  ;;  %v3897_v26 = vmul.f32 %v4162_v4, %v3888_v51 }
0x11eb   :  { %3907 = vst [vmem:[%s6927_s18] sm:$0xff] %v3905_v19  ;;  %v3906_v32 = vadd.f32 %v4163_v43, %v3897_v26 }
0x11ed   :  { %3908 = vst [vmem:[%s6927_s18 + $0x8] sm:$0xff] %v3906_v32 }
0x11ee   :  { %3913 = vsyncpa [#allocation3], 1 }
0x11ef   :  { %3914 = vsyncpa [#allocation5], 1 }
0x11f0   :  { %3915 = vsyncpa [#allocation8], 1 }
0x11f1   :  { %3916 = vsyncpa [#allocation11], 1 }
0x11f2   :  { %3917 = vsyncpa [#allocation14], 1 }
0x11f3   :  { %3918 = vsyncpa [#allocation17], 1 }
0x11f4   :  { %3919 = vsyncpa [#allocation20], 1 }

</bundles_post_ra>
